<compile_context>
chip_gen: v6e
topology: v6e:2x2x1
jax: 0.10.0
libtpu: 0.0.40
codegen_flags: <defaults>
</compile_context>

<pallas_src>
import numpy as np
import jax
import jax.numpy as jnp
from jax.experimental import pallas as pl
from jax.experimental.pallas import tpu as pltpu

# ---------------- model hyperparameters (small, shape-consistent) ----------------
IN_PTS = 3        # input_ch_pts
IN_VIEW = 3       # input_ch_view
D_PTS = 8         # D
W_HID = 32        # W (small stand-in for 256)
SKIP = 4          # skips = [4]
W_RGB = W_HID // 2
D_RGB = 2

PACK = 8          # packed input height: rows 0-2 = x^T, rows 3-5 = v^T, rows 6-7 = 0
TN_MAX = 8192     # max points per grid step (points live on the lane axis)


def _round_up(n, m):
    return ((n + m - 1) // m) * m


def _choose_tile(n):
    """Lane tile: multiple of 128, capped at TN_MAX, and >=2 grid steps when possible
    (v7x has 2 TensorCores; the parallel grid axis is what shards across them)."""
    n128 = _round_up(max(n, 128), 128)
    tn = min(TN_MAX, n128)
    if n128 // tn < 2 and n128 >= 256:
        tn = _round_up(n128 // 2, 128)
    return tn


def _pick_act_dtype():
    """bf16 activations/weights on chips with a bf16 VPU path (v6e/v7x), f32 otherwise."""
    try:
        kind = jax.devices()[0].device_kind.lower()
    except Exception:
        return jnp.float32
    return jnp.bfloat16 if (("v6" in kind) or ("v7" in kind)) else jnp.float32


# ---------------- Pallas kernel (batch-on-lanes layout) ----------------
def nerf_kernel(xv_ref, xw_ref, hw_ref, hb_ref, w_head_ref, b_head_ref,
                vw_ref, w_r1_ref, b_r1_ref, w_r2_ref, b_r2_ref,
                rgb_ref, sigma_ref):
    act_dt = hw_ref.dtype
    f32 = jnp.float32

    def mm(w, a, out_dt):
        return jnp.dot(w, a, preferred_element_type=out_dt)

    # packed input tile: (PACK, TN) = (x^T | v^T | zero-pad), already in act dtype.
    xv = xv_ref[...]

    # ---- pts hidden layers (ReLU); skip-concat replaced by split-weight matmuls. ----
    # layer 0: x projection (x columns live in xw, v/pad columns are zero)
    h = jnp.maximum(mm(xw_ref[0], xv, act_dt) + hb_ref[0], 0.0)          # (W_HID, TN)
    # layers 1..3
    for i in range(1, SKIP):
        h = jnp.maximum(mm(hw_ref[i - 1], h, act_dt) + hb_ref[i], 0.0)
    # layer 4 (skip): x-contribution + h-contribution accumulate into one result
    h = jnp.maximum(mm(xw_ref[1], xv, act_dt) + mm(hw_ref[SKIP - 1], h, act_dt)
                    + hb_ref[SKIP], 0.0)
    # layers 5..7
    for i in range(SKIP + 1, D_PTS):
        h = jnp.maximum(mm(hw_ref[i - 1], h, act_dt) + hb_ref[i], 0.0)

    # ---- fused head: pts output Linear (no activation) pre-folded into
    #      [rgb layer-0 h-contribution ; sigma] -> single (W_RGB+1, W_HID) dot, f32 out.
    head = mm(w_head_ref[...], h, f32) + b_head_ref[...]                  # (W_RGB+1, TN)
    sigma_ref[...] = head[W_RGB:W_RGB + 1, :]                             # (1, TN) store

    # ---- rgb blocks: layer 0 = head h-part + v-contribution, 1 hidden, output+sigmoid.
    a0 = jnp.maximum(head[:W_RGB, :] + mm(vw_ref[...], xv, f32), 0.0)     # (W_RGB, TN) f32
    a1 = jnp.maximum(mm(w_r1_ref[...], a0.astype(act_dt), act_dt) + b_r1_ref[...], 0.0)
    rgb_ref[...] = jax.nn.sigmoid(mm(w_r2_ref[...], a1, f32) + b_r2_ref[...])  # (3, TN)


# ---------------- wrapper ----------------
def nerf_forward(x, v, packed, act_dtype):
    """x: (N, 3) normalized coords, v: (N, 3) view dirs; packed: dict from pack_params."""
    N = x.shape[0]
    tn = _choose_tile(N)
    n_pad = _round_up(N, tn)

    # lane-dense packed input slab (PACK, n_pad); tail columns are zero padding.
    xv = jnp.zeros((PACK, n_pad), act_dtype)
    xv = xv.at[:IN_PTS, :N].set(x.T.astype(act_dtype))
    xv = xv.at[IN_PTS:IN_PTS + IN_VIEW, :N].set(v.T.astype(act_dtype))

    weight_order = ("xw", "hw", "hb", "w_head", "b_head",
                    "vw", "w_r1", "b_r1", "w_r2", "b_r2")
    weights = [packed[k] for k in weight_order]

    in_specs = [pl.BlockSpec((PACK, tn), lambda i: (0, i))]               # streamed input
    for w in weights:                                                     # resident weights
        in_specs.append(pl.BlockSpec(w.shape, lambda i, nd=w.ndim: (0,) * nd))

    rgb_t, sigma_t = pl.pallas_call(
        nerf_kernel,
        grid=(n_pad // tn,),
        in_specs=in_specs,
        out_specs=[pl.BlockSpec((3, tn), lambda i: (0, i)),
                   pl.BlockSpec((1, tn), lambda i: (0, i))],
        out_shape=(jax.ShapeDtypeStruct((3, n_pad), jnp.float32),
                   jax.ShapeDtypeStruct((1, n_pad), jnp.float32)),
        compiler_params=pltpu.CompilerParams(
            dimension_semantics=("parallel",),
            vmem_limit_bytes=32 * 1024 * 1024,
        ),
    )(xv, *weights)

    # wrapper-side layout plumbing back to the PyTorch convention
    return dict(radiances=rgb_t[:, :N].T, sigma=sigma_t[0, :N])


# ---------------- deterministic parameter init (original layer layout) ----------------
def init_params(key):
    """Returns flat list [w, b, w, b, ...] in the original (unfolded) layer order."""
    layer_dims = []
    d_in = IN_PTS
    for i in range(D_PTS):                       # pts hidden layers
        if i == SKIP:
            d_in = IN_PTS + W_HID
        layer_dims.append((d_in, W_HID))
        d_in = W_HID
    layer_dims.append((W_HID, W_HID))            # pts output linear (no activation)
    layer_dims.append((W_HID, 1))                # sigma layer
    layer_dims.append((W_HID + IN_VIEW, W_RGB))  # rgb layer 0
    layer_dims.append((W_RGB, W_RGB))            # rgb layer 1
    layer_dims.append((W_RGB, 3))                # rgb output

    params = []
    for (fan_in, fan_out) in layer_dims:
        key, kw, kb = jax.random.split(key, 3)
        scale = 1.0 / np.sqrt(fan_in)
        w = jax.random.normal(kw, (fan_in, fan_out), jnp.float32) * scale
        b = jax.random.normal(kb, (1, fan_out), jnp.float32) * 0.01
        params += [w, b]
    return params


# ---------------- pack / fold / transpose parameters for the kernel ----------------
def pack_params(params, act_dtype):
    ws = [params[2 * i] for i in range(13)]
    bs = [params[2 * i + 1] for i in range(13)]
    # layer order: 0..7 pts hidden, 8 pts out, 9 sigma, 10..12 rgb blocks

    def pad_x_cols(w):  # (IN_PTS, C) -> (C, PACK), x weights in columns 0..2, rest zero
        return jnp.zeros((w.shape[1], PACK), jnp.float32).at[:, :IN_PTS].set(w.T)

    w_skip = ws[SKIP]                                   # (IN_PTS + W_HID, W_HID)
    w_skip_x, w_skip_h = w_skip[:IN_PTS], w_skip[IN_PTS:]

    xw = jnp.stack([pad_x_cols(ws[0]), pad_x_cols(w_skip_x)], 0)           # (2, W, PACK)
    hw = jnp.stack([ws[1].T, ws[2].T, ws[3].T, w_skip_h.T,
                    ws[5].T, ws[6].T, ws[7].T], 0)                         # (7, W, W)
    hb = jnp.stack([bs[i].T for i in range(D_PTS)], 0)                     # (8, W, 1)

    # Fold the no-activation pts output Linear into sigma head + rgb0 h-part (exact).
    w_out, b_out = ws[8], bs[8]
    w_sig, b_sig = ws[9], bs[9]
    w_r0, b_r0 = ws[10], bs[10]
    w_r0_h, w_r0_v = w_r0[:W_HID], w_r0[W_HID:]

    w_head = jnp.concatenate([w_out @ w_r0_h, w_out @ w_sig], 1).T         # (W_RGB+1, W)
    b_head = jnp.concatenate([b_out @ w_r0_h + b_r0,
                              b_out @ w_sig + b_sig], 1).T                 # (W_RGB+1, 1)

    vw = jnp.zeros((W_RGB, PACK), jnp.float32).at[:, IN_PTS:IN_PTS + IN_VIEW].set(w_r0_v.T)

    ad = act_dtype
    return dict(
        xw=xw.astype(ad), hw=hw.astype(ad), hb=hb.astype(ad),
        w_head=w_head.astype(ad), b_head=b_head.astype(jnp.float32),
        vw=vw.astype(ad),
        w_r1=ws[11].T.astype(ad), b_r1=bs[11].T.astype(ad),
        w_r2=ws[12].T.astype(ad), b_r2=bs[12].T.astype(jnp.float32),
    )


# ---------------- pure-JAX reference (faithful, unfolded, f32) ----------------
def nerf_reference(x, v, params):
    idx = [0]

    def next_wb():
        w, b = params[idx[0]], params[idx[0] + 1]
        idx[0] += 2
        return w, b

    h = x
    for i in range(D_PTS):
        if i == SKIP:
            h = jnp.concatenate([x, h], axis=-1)
        w, b = next_wb()
        h = jnp.maximum(h @ w + b, 0.0)
    w, b = next_wb()
    h = h @ w + b                     # pts output linear, no activation
    w, b = next_wb()
    sigma = h @ w + b                 # sigma head, no activation
    hv = jnp.concatenate([h, v], axis=-1)
    for _ in range(D_RGB):
        w, b = next_wb()
        hv = jnp.maximum(hv @ w + b, 0.0)
    w, b = next_wb()
    rgb = jax.nn.sigmoid(hv @ w + b)
    return dict(radiances=rgb, sigma=jnp.squeeze(sigma, axis=-1))


if __name__ == "__main__":
    key = jax.random.PRNGKey(0)
    k_p, k_x, k_v = jax.random.split(key, 3)

    params = init_params(k_p)

    N = 4096  # number of sample points (>=2 grid steps so both v7x TensorCores get work)
    x = jax.random.uniform(k_x, (N, IN_PTS), jnp.float32, minval=-1.0, maxval=1.0)
    v_raw = jax.random.normal(k_v, (N, IN_VIEW), jnp.float32)
    v = v_raw / jnp.linalg.norm(v_raw, axis=-1, keepdims=True)

    act_dtype = _pick_act_dtype()

    def run(dt):
        packed = pack_params(params, dt)
        o = nerf_forward(x, v, packed, dt)
        jax.block_until_ready(o)
        return o

    try:
        out = run(act_dtype)
    except Exception:
        if act_dtype == jnp.float32:
            raise
        # If this toolchain/chip rejects bf16-carry matmuls, the identical kernel
        # structure in pure f32 (the v5e path) is always valid.
        act_dtype = jnp.float32
        out = run(act_dtype)

    ref = nerf_reference(x, v, params)
    # Tolerance covers the bf16 MXU/VPU path and the exact-but-fp-reassociated head fold.
    np.testing.assert_allclose(np.asarray(out["radiances"]), np.asarray(ref["radiances"]),
                               rtol=5e-2, atol=5e-2)
    np.testing.assert_allclose(np.asarray(out["sigma"]), np.asarray(ref["sigma"]),
                               rtol=5e-2, atol=5e-2)

    assert out["radiances"].shape == (N, 3)
    assert out["sigma"].shape == (N,)

    print("KERNEL_OK")
</pallas_src>

<mosaic_0001>
module attributes {stable_mosaic.version = 11 : i64} {
  func.func @nerf_kernel(%arg0: i32, %arg1: memref<8x2048xf32, #tpu.memory_space<vmem>>, %arg2: memref<2x32x8xf32, #tpu.memory_space<vmem>>, %arg3: memref<7x32x32xf32, #tpu.memory_space<vmem>>, %arg4: memref<8x32x1xf32, #tpu.memory_space<vmem>>, %arg5: memref<17x32xf32, #tpu.memory_space<vmem>>, %arg6: memref<17x1xf32, #tpu.memory_space<vmem>>, %arg7: memref<16x8xf32, #tpu.memory_space<vmem>>, %arg8: memref<16x16xf32, #tpu.memory_space<vmem>>, %arg9: memref<16x1xf32, #tpu.memory_space<vmem>>, %arg10: memref<3x16xf32, #tpu.memory_space<vmem>>, %arg11: memref<3x1xf32, #tpu.memory_space<vmem>>, %arg12: memref<3x2048xf32, #tpu.memory_space<vmem>>, %arg13: memref<1x2048xf32, #tpu.memory_space<vmem>>) attributes {dimension_semantics = [#tpu.dimension_semantics<parallel>], iteration_bounds = array<i64: 2>, scalar_prefetch = 0 : i64, scratch_operands = 0 : i64, tpu.core_type = #tpu.core_type<tc>, window_params = [{transform_indices = @transform_0, window_bounds = array<i64: 8, 2048>}, {pipeline_mode = #tpu.pipeline_mode<synchronous>, transform_indices = @transform_1, window_bounds = array<i64: 2, 32, 8>}, {pipeline_mode = #tpu.pipeline_mode<synchronous>, transform_indices = @transform_2, window_bounds = array<i64: 7, 32, 32>}, {pipeline_mode = #tpu.pipeline_mode<synchronous>, transform_indices = @transform_3, window_bounds = array<i64: 8, 32, 1>}, {pipeline_mode = #tpu.pipeline_mode<synchronous>, transform_indices = @transform_4, window_bounds = array<i64: 17, 32>}, {pipeline_mode = #tpu.pipeline_mode<synchronous>, transform_indices = @transform_5, window_bounds = array<i64: 17, 1>}, {pipeline_mode = #tpu.pipeline_mode<synchronous>, transform_indices = @transform_6, window_bounds = array<i64: 16, 8>}, {pipeline_mode = #tpu.pipeline_mode<synchronous>, transform_indices = @transform_7, window_bounds = array<i64: 16, 16>}, {pipeline_mode = #tpu.pipeline_mode<synchronous>, transform_indices = @transform_8, window_bounds = array<i64: 16, 1>}, {pipeline_mode = #tpu.pipeline_mode<synchronous>, transform_indices = @transform_9, window_bounds = array<i64: 3, 16>}, {pipeline_mode = #tpu.pipeline_mode<synchronous>, transform_indices = @transform_10, window_bounds = array<i64: 3, 1>}, {transform_indices = @transform_11, window_bounds = array<i64: 3, 2048>}, {transform_indices = @transform_12, window_bounds = array<i64: 1, 2048>}]} {
    %c0 = arith.constant 0 : index
    %c0_0 = arith.constant 0 : index
    %0 = vector.load %arg1[%c0, %c0_0] : memref<8x2048xf32, #tpu.memory_space<vmem>>, vector<8x2048xf32>
    %c0_1 = arith.constant 0 : index
    %c0_2 = arith.constant 0 : index
    %c0_3 = arith.constant 0 : index
    %1 = vector.load %arg2[%c0_1, %c0_2, %c0_3] : memref<2x32x8xf32, #tpu.memory_space<vmem>>, vector<1x32x8xf32>
    %2 = vector.shape_cast %1 : vector<1x32x8xf32> to vector<32x8xf32>
    %cst = arith.constant dense<0.000000e+00> : vector<32x2048xf32>
    %3 = tpu.matmul %2, %0, %cst {dimension_numbers = #tpu.dot_dimension_numbers<[1], [0], [0], [1], [0, 0, 1, 1], [], []>} : vector<32x8xf32>, vector<8x2048xf32>, vector<32x2048xf32> -> vector<32x2048xf32>
    %c0_4 = arith.constant 0 : index
    %c0_5 = arith.constant 0 : index
    %c0_6 = arith.constant 0 : index
    %4 = vector.load %arg4[%c0_4, %c0_5, %c0_6] : memref<8x32x1xf32, #tpu.memory_space<vmem>>, vector<1x32x1xf32>
    %5 = vector.shape_cast %4 : vector<1x32x1xf32> to vector<32x1xf32>
    %6 = vector.broadcast %5 : vector<32x1xf32> to vector<32x2048xf32>
    %7 = arith.addf %3, %6 : vector<32x2048xf32>
    %cst_7 = arith.constant 0.000000e+00 : f32
    %8 = vector.broadcast %cst_7 : f32 to vector<32x2048xf32>
    %9 = arith.maximumf %7, %8 : vector<32x2048xf32>
    %c0_8 = arith.constant 0 : index
    %c0_9 = arith.constant 0 : index
    %c0_10 = arith.constant 0 : index
    %10 = vector.load %arg3[%c0_8, %c0_9, %c0_10] : memref<7x32x32xf32, #tpu.memory_space<vmem>>, vector<1x32x32xf32>
    %11 = vector.shape_cast %10 : vector<1x32x32xf32> to vector<32x32xf32>
    %cst_11 = arith.constant dense<0.000000e+00> : vector<32x2048xf32>
    %12 = tpu.matmul %11, %9, %cst_11 {dimension_numbers = #tpu.dot_dimension_numbers<[1], [0], [0], [1], [0, 0, 1, 1], [], []>} : vector<32x32xf32>, vector<32x2048xf32>, vector<32x2048xf32> -> vector<32x2048xf32>
    %c1 = arith.constant 1 : index
    %c0_12 = arith.constant 0 : index
    %c0_13 = arith.constant 0 : index
    %13 = vector.load %arg4[%c1, %c0_12, %c0_13] : memref<8x32x1xf32, #tpu.memory_space<vmem>>, vector<1x32x1xf32>
    %14 = vector.shape_cast %13 : vector<1x32x1xf32> to vector<32x1xf32>
    %15 = vector.broadcast %14 : vector<32x1xf32> to vector<32x2048xf32>
    %16 = arith.addf %12, %15 : vector<32x2048xf32>
    %cst_14 = arith.constant 0.000000e+00 : f32
    %17 = vector.broadcast %cst_14 : f32 to vector<32x2048xf32>
    %18 = arith.maximumf %16, %17 : vector<32x2048xf32>
    %c1_15 = arith.constant 1 : index
    %c0_16 = arith.constant 0 : index
    %c0_17 = arith.constant 0 : index
    %19 = vector.load %arg3[%c1_15, %c0_16, %c0_17] : memref<7x32x32xf32, #tpu.memory_space<vmem>>, vector<1x32x32xf32>
    %20 = vector.shape_cast %19 : vector<1x32x32xf32> to vector<32x32xf32>
    %cst_18 = arith.constant dense<0.000000e+00> : vector<32x2048xf32>
    %21 = tpu.matmul %20, %18, %cst_18 {dimension_numbers = #tpu.dot_dimension_numbers<[1], [0], [0], [1], [0, 0, 1, 1], [], []>} : vector<32x32xf32>, vector<32x2048xf32>, vector<32x2048xf32> -> vector<32x2048xf32>
    %c2 = arith.constant 2 : index
    %c0_19 = arith.constant 0 : index
    %c0_20 = arith.constant 0 : index
    %22 = vector.load %arg4[%c2, %c0_19, %c0_20] : memref<8x32x1xf32, #tpu.memory_space<vmem>>, vector<1x32x1xf32>
    %23 = vector.shape_cast %22 : vector<1x32x1xf32> to vector<32x1xf32>
    %24 = vector.broadcast %23 : vector<32x1xf32> to vector<32x2048xf32>
    %25 = arith.addf %21, %24 : vector<32x2048xf32>
    %cst_21 = arith.constant 0.000000e+00 : f32
    %26 = vector.broadcast %cst_21 : f32 to vector<32x2048xf32>
    %27 = arith.maximumf %25, %26 : vector<32x2048xf32>
    %c2_22 = arith.constant 2 : index
    %c0_23 = arith.constant 0 : index
    %c0_24 = arith.constant 0 : index
    %28 = vector.load %arg3[%c2_22, %c0_23, %c0_24] : memref<7x32x32xf32, #tpu.memory_space<vmem>>, vector<1x32x32xf32>
    %29 = vector.shape_cast %28 : vector<1x32x32xf32> to vector<32x32xf32>
    %cst_25 = arith.constant dense<0.000000e+00> : vector<32x2048xf32>
    %30 = tpu.matmul %29, %27, %cst_25 {dimension_numbers = #tpu.dot_dimension_numbers<[1], [0], [0], [1], [0, 0, 1, 1], [], []>} : vector<32x32xf32>, vector<32x2048xf32>, vector<32x2048xf32> -> vector<32x2048xf32>
    %c3 = arith.constant 3 : index
    %c0_26 = arith.constant 0 : index
    %c0_27 = arith.constant 0 : index
    %31 = vector.load %arg4[%c3, %c0_26, %c0_27] : memref<8x32x1xf32, #tpu.memory_space<vmem>>, vector<1x32x1xf32>
    %32 = vector.shape_cast %31 : vector<1x32x1xf32> to vector<32x1xf32>
    %33 = vector.broadcast %32 : vector<32x1xf32> to vector<32x2048xf32>
    %34 = arith.addf %30, %33 : vector<32x2048xf32>
    %cst_28 = arith.constant 0.000000e+00 : f32
    %35 = vector.broadcast %cst_28 : f32 to vector<32x2048xf32>
    %36 = arith.maximumf %34, %35 : vector<32x2048xf32>
    %c1_29 = arith.constant 1 : index
    %c0_30 = arith.constant 0 : index
    %c0_31 = arith.constant 0 : index
    %37 = vector.load %arg2[%c1_29, %c0_30, %c0_31] : memref<2x32x8xf32, #tpu.memory_space<vmem>>, vector<1x32x8xf32>
    %38 = vector.shape_cast %37 : vector<1x32x8xf32> to vector<32x8xf32>
    %cst_32 = arith.constant dense<0.000000e+00> : vector<32x2048xf32>
    %39 = tpu.matmul %38, %0, %cst_32 {dimension_numbers = #tpu.dot_dimension_numbers<[1], [0], [0], [1], [0, 0, 1, 1], [], []>} : vector<32x8xf32>, vector<8x2048xf32>, vector<32x2048xf32> -> vector<32x2048xf32>
    %c3_33 = arith.constant 3 : index
    %c0_34 = arith.constant 0 : index
    %c0_35 = arith.constant 0 : index
    %40 = vector.load %arg3[%c3_33, %c0_34, %c0_35] : memref<7x32x32xf32, #tpu.memory_space<vmem>>, vector<1x32x32xf32>
    %41 = vector.shape_cast %40 : vector<1x32x32xf32> to vector<32x32xf32>
    %cst_36 = arith.constant dense<0.000000e+00> : vector<32x2048xf32>
    %42 = tpu.matmul %41, %36, %cst_36 {dimension_numbers = #tpu.dot_dimension_numbers<[1], [0], [0], [1], [0, 0, 1, 1], [], []>} : vector<32x32xf32>, vector<32x2048xf32>, vector<32x2048xf32> -> vector<32x2048xf32>
    %43 = arith.addf %39, %42 : vector<32x2048xf32>
    %c4 = arith.constant 4 : index
    %c0_37 = arith.constant 0 : index
    %c0_38 = arith.constant 0 : index
    %44 = vector.load %arg4[%c4, %c0_37, %c0_38] : memref<8x32x1xf32, #tpu.memory_space<vmem>>, vector<1x32x1xf32>
    %45 = vector.shape_cast %44 : vector<1x32x1xf32> to vector<32x1xf32>
    %46 = vector.broadcast %45 : vector<32x1xf32> to vector<32x2048xf32>
    %47 = arith.addf %43, %46 : vector<32x2048xf32>
    %cst_39 = arith.constant 0.000000e+00 : f32
    %48 = vector.broadcast %cst_39 : f32 to vector<32x2048xf32>
    %49 = arith.maximumf %47, %48 : vector<32x2048xf32>
    %c4_40 = arith.constant 4 : index
    %c0_41 = arith.constant 0 : index
    %c0_42 = arith.constant 0 : index
    %50 = vector.load %arg3[%c4_40, %c0_41, %c0_42] : memref<7x32x32xf32, #tpu.memory_space<vmem>>, vector<1x32x32xf32>
    %51 = vector.shape_cast %50 : vector<1x32x32xf32> to vector<32x32xf32>
    %cst_43 = arith.constant dense<0.000000e+00> : vector<32x2048xf32>
    %52 = tpu.matmul %51, %49, %cst_43 {dimension_numbers = #tpu.dot_dimension_numbers<[1], [0], [0], [1], [0, 0, 1, 1], [], []>} : vector<32x32xf32>, vector<32x2048xf32>, vector<32x2048xf32> -> vector<32x2048xf32>
    %c5 = arith.constant 5 : index
    %c0_44 = arith.constant 0 : index
    %c0_45 = arith.constant 0 : index
    %53 = vector.load %arg4[%c5, %c0_44, %c0_45] : memref<8x32x1xf32, #tpu.memory_space<vmem>>, vector<1x32x1xf32>
    %54 = vector.shape_cast %53 : vector<1x32x1xf32> to vector<32x1xf32>
    %55 = vector.broadcast %54 : vector<32x1xf32> to vector<32x2048xf32>
    %56 = arith.addf %52, %55 : vector<32x2048xf32>
    %cst_46 = arith.constant 0.000000e+00 : f32
    %57 = vector.broadcast %cst_46 : f32 to vector<32x2048xf32>
    %58 = arith.maximumf %56, %57 : vector<32x2048xf32>
    %c5_47 = arith.constant 5 : index
    %c0_48 = arith.constant 0 : index
    %c0_49 = arith.constant 0 : index
    %59 = vector.load %arg3[%c5_47, %c0_48, %c0_49] : memref<7x32x32xf32, #tpu.memory_space<vmem>>, vector<1x32x32xf32>
    %60 = vector.shape_cast %59 : vector<1x32x32xf32> to vector<32x32xf32>
    %cst_50 = arith.constant dense<0.000000e+00> : vector<32x2048xf32>
    %61 = tpu.matmul %60, %58, %cst_50 {dimension_numbers = #tpu.dot_dimension_numbers<[1], [0], [0], [1], [0, 0, 1, 1], [], []>} : vector<32x32xf32>, vector<32x2048xf32>, vector<32x2048xf32> -> vector<32x2048xf32>
    %c6 = arith.constant 6 : index
    %c0_51 = arith.constant 0 : index
    %c0_52 = arith.constant 0 : index
    %62 = vector.load %arg4[%c6, %c0_51, %c0_52] : memref<8x32x1xf32, #tpu.memory_space<vmem>>, vector<1x32x1xf32>
    %63 = vector.shape_cast %62 : vector<1x32x1xf32> to vector<32x1xf32>
    %64 = vector.broadcast %63 : vector<32x1xf32> to vector<32x2048xf32>
    %65 = arith.addf %61, %64 : vector<32x2048xf32>
    %cst_53 = arith.constant 0.000000e+00 : f32
    %66 = vector.broadcast %cst_53 : f32 to vector<32x2048xf32>
    %67 = arith.maximumf %65, %66 : vector<32x2048xf32>
    %c6_54 = arith.constant 6 : index
    %c0_55 = arith.constant 0 : index
    %c0_56 = arith.constant 0 : index
    %68 = vector.load %arg3[%c6_54, %c0_55, %c0_56] : memref<7x32x32xf32, #tpu.memory_space<vmem>>, vector<1x32x32xf32>
    %69 = vector.shape_cast %68 : vector<1x32x32xf32> to vector<32x32xf32>
    %cst_57 = arith.constant dense<0.000000e+00> : vector<32x2048xf32>
    %70 = tpu.matmul %69, %67, %cst_57 {dimension_numbers = #tpu.dot_dimension_numbers<[1], [0], [0], [1], [0, 0, 1, 1], [], []>} : vector<32x32xf32>, vector<32x2048xf32>, vector<32x2048xf32> -> vector<32x2048xf32>
    %c7 = arith.constant 7 : index
    %c0_58 = arith.constant 0 : index
    %c0_59 = arith.constant 0 : index
    %71 = vector.load %arg4[%c7, %c0_58, %c0_59] : memref<8x32x1xf32, #tpu.memory_space<vmem>>, vector<1x32x1xf32>
    %72 = vector.shape_cast %71 : vector<1x32x1xf32> to vector<32x1xf32>
    %73 = vector.broadcast %72 : vector<32x1xf32> to vector<32x2048xf32>
    %74 = arith.addf %70, %73 : vector<32x2048xf32>
    %cst_60 = arith.constant 0.000000e+00 : f32
    %75 = vector.broadcast %cst_60 : f32 to vector<32x2048xf32>
    %76 = arith.maximumf %74, %75 : vector<32x2048xf32>
    %c0_61 = arith.constant 0 : index
    %c0_62 = arith.constant 0 : index
    %77 = vector.load %arg5[%c0_61, %c0_62] : memref<17x32xf32, #tpu.memory_space<vmem>>, vector<17x32xf32>
    %cst_63 = arith.constant dense<0.000000e+00> : vector<17x2048xf32>
    %78 = tpu.matmul %77, %76, %cst_63 {dimension_numbers = #tpu.dot_dimension_numbers<[1], [0], [0], [1], [0, 0, 1, 1], [], []>} : vector<17x32xf32>, vector<32x2048xf32>, vector<17x2048xf32> -> vector<17x2048xf32>
    %c0_64 = arith.constant 0 : index
    %c0_65 = arith.constant 0 : index
    %79 = vector.load %arg6[%c0_64, %c0_65] : memref<17x1xf32, #tpu.memory_space<vmem>>, vector<17x1xf32>
    %80 = vector.broadcast %79 : vector<17x1xf32> to vector<17x2048xf32>
    %81 = arith.addf %78, %80 : vector<17x2048xf32>
    %82 = vector.extract_strided_slice %81 {offsets = [16, 0], sizes = [1, 2048], strides = [1, 1]} : vector<17x2048xf32> to vector<1x2048xf32>
    %c0_66 = arith.constant 0 : index
    %c0_67 = arith.constant 0 : index
    %83 = vector.load %arg13[%c0_66, %c0_67] : memref<1x2048xf32, #tpu.memory_space<vmem>>, vector<1x2048xf32>
    tpu.vector_store %arg13[%c0_66, %c0_67], %82 {strides = array<i32>} : memref<1x2048xf32, #tpu.memory_space<vmem>>, vector<1x2048xf32>,
    %84 = vector.extract_strided_slice %81 {offsets = [0, 0], sizes = [16, 2048], strides = [1, 1]} : vector<17x2048xf32> to vector<16x2048xf32>
    %c0_68 = arith.constant 0 : index
    %c0_69 = arith.constant 0 : index
    %85 = vector.load %arg7[%c0_68, %c0_69] : memref<16x8xf32, #tpu.memory_space<vmem>>, vector<16x8xf32>
    %cst_70 = arith.constant dense<0.000000e+00> : vector<16x2048xf32>
    %86 = tpu.matmul %85, %0, %cst_70 {dimension_numbers = #tpu.dot_dimension_numbers<[1], [0], [0], [1], [0, 0, 1, 1], [], []>} : vector<16x8xf32>, vector<8x2048xf32>, vector<16x2048xf32> -> vector<16x2048xf32>
    %87 = arith.addf %84, %86 : vector<16x2048xf32>
    %cst_71 = arith.constant 0.000000e+00 : f32
    %88 = vector.broadcast %cst_71 : f32 to vector<16x2048xf32>
    %89 = arith.maximumf %87, %88 : vector<16x2048xf32>
    %c0_72 = arith.constant 0 : index
    %c0_73 = arith.constant 0 : index
    %90 = vector.load %arg8[%c0_72, %c0_73] : memref<16x16xf32, #tpu.memory_space<vmem>>, vector<16x16xf32>
    %cst_74 = arith.constant dense<0.000000e+00> : vector<16x2048xf32>
    %91 = tpu.matmul %90, %89, %cst_74 {dimension_numbers = #tpu.dot_dimension_numbers<[1], [0], [0], [1], [0, 0, 1, 1], [], []>} : vector<16x16xf32>, vector<16x2048xf32>, vector<16x2048xf32> -> vector<16x2048xf32>
    %c0_75 = arith.constant 0 : index
    %c0_76 = arith.constant 0 : index
    %92 = vector.load %arg9[%c0_75, %c0_76] : memref<16x1xf32, #tpu.memory_space<vmem>>, vector<16x1xf32>
    %93 = vector.broadcast %92 : vector<16x1xf32> to vector<16x2048xf32>
    %94 = arith.addf %91, %93 : vector<16x2048xf32>
    %cst_77 = arith.constant 0.000000e+00 : f32
    %95 = vector.broadcast %cst_77 : f32 to vector<16x2048xf32>
    %96 = arith.maximumf %94, %95 : vector<16x2048xf32>
    %c0_78 = arith.constant 0 : index
    %c0_79 = arith.constant 0 : index
    %97 = vector.load %arg10[%c0_78, %c0_79] : memref<3x16xf32, #tpu.memory_space<vmem>>, vector<3x16xf32>
    %cst_80 = arith.constant dense<0.000000e+00> : vector<3x2048xf32>
    %98 = tpu.matmul %97, %96, %cst_80 {dimension_numbers = #tpu.dot_dimension_numbers<[1], [0], [0], [1], [0, 0, 1, 1], [], []>} : vector<3x16xf32>, vector<16x2048xf32>, vector<3x2048xf32> -> vector<3x2048xf32>
    %c0_81 = arith.constant 0 : index
    %c0_82 = arith.constant 0 : index
    %99 = vector.load %arg11[%c0_81, %c0_82] : memref<3x1xf32, #tpu.memory_space<vmem>>, vector<3x1xf32>
    %100 = vector.broadcast %99 : vector<3x1xf32> to vector<3x2048xf32>
    %101 = arith.addf %98, %100 : vector<3x2048xf32>
    %102 = arith.negf %101 : vector<3x2048xf32>
    %103 = math.exp %102 : vector<3x2048xf32>
    %cst_83 = arith.constant 1.000000e+00 : f32
    %104 = vector.broadcast %cst_83 : f32 to vector<3x2048xf32>
    %105 = arith.addf %104, %103 : vector<3x2048xf32>
    %106 = arith.divf %104, %105 : vector<3x2048xf32>
    %c0_84 = arith.constant 0 : index
    %c0_85 = arith.constant 0 : index
    %107 = vector.load %arg12[%c0_84, %c0_85] : memref<3x2048xf32, #tpu.memory_space<vmem>>, vector<3x2048xf32>
    tpu.vector_store %arg12[%c0_84, %c0_85], %106 {strides = array<i32>} : memref<3x2048xf32, #tpu.memory_space<vmem>>, vector<3x2048xf32>,
    return
  }
  func.func @transform_0(%arg0: i32) -> (i32, i32) {
    %c0_i32 = arith.constant 0 : i32
    %c0_i32_0 = arith.constant 0 : i32
    return %c0_i32, %arg0 : i32, i32
  }
  func.func @transform_1(%arg0: i32) -> (i32, i32, i32) {
    %c0_i32 = arith.constant 0 : i32
    %c0_i32_0 = arith.constant 0 : i32
    %c0_i32_1 = arith.constant 0 : i32
    %c0_i32_2 = arith.constant 0 : i32
    return %c0_i32, %c0_i32_0, %c0_i32_1 : i32, i32, i32
  }
  func.func @transform_2(%arg0: i32) -> (i32, i32, i32) {
    %c0_i32 = arith.constant 0 : i32
    %c0_i32_0 = arith.constant 0 : i32
    %c0_i32_1 = arith.constant 0 : i32
    %c0_i32_2 = arith.constant 0 : i32
    return %c0_i32, %c0_i32_0, %c0_i32_1 : i32, i32, i32
  }
  func.func @transform_3(%arg0: i32) -> (i32, i32, i32) {
    %c0_i32 = arith.constant 0 : i32
    %c0_i32_0 = arith.constant 0 : i32
    %c0_i32_1 = arith.constant 0 : i32
    %c0_i32_2 = arith.constant 0 : i32
    return %c0_i32, %c0_i32_0, %c0_i32_1 : i32, i32, i32
  }
  func.func @transform_4(%arg0: i32) -> (i32, i32) {
    %c0_i32 = arith.constant 0 : i32
    %c0_i32_0 = arith.constant 0 : i32
    %c0_i32_1 = arith.constant 0 : i32
    return %c0_i32, %c0_i32_0 : i32, i32
  }
  func.func @transform_5(%arg0: i32) -> (i32, i32) {
    %c0_i32 = arith.constant 0 : i32
    %c0_i32_0 = arith.constant 0 : i32
    %c0_i32_1 = arith.constant 0 : i32
    return %c0_i32, %c0_i32_0 : i32, i32
  }
  func.func @transform_6(%arg0: i32) -> (i32, i32) {
    %c0_i32 = arith.constant 0 : i32
    %c0_i32_0 = arith.constant 0 : i32
    %c0_i32_1 = arith.constant 0 : i32
    return %c0_i32, %c0_i32_0 : i32, i32
  }
  func.func @transform_7(%arg0: i32) -> (i32, i32) {
    %c0_i32 = arith.constant 0 : i32
    %c0_i32_0 = arith.constant 0 : i32
    %c0_i32_1 = arith.constant 0 : i32
    return %c0_i32, %c0_i32_0 : i32, i32
  }
  func.func @transform_8(%arg0: i32) -> (i32, i32) {
    %c0_i32 = arith.constant 0 : i32
    %c0_i32_0 = arith.constant 0 : i32
    %c0_i32_1 = arith.constant 0 : i32
    return %c0_i32, %c0_i32_0 : i32, i32
  }
  func.func @transform_9(%arg0: i32) -> (i32, i32) {
    %c0_i32 = arith.constant 0 : i32
    %c0_i32_0 = arith.constant 0 : i32
    %c0_i32_1 = arith.constant 0 : i32
    return %c0_i32, %c0_i32_0 : i32, i32
  }
  func.func @transform_10(%arg0: i32) -> (i32, i32) {
    %c0_i32 = arith.constant 0 : i32
    %c0_i32_0 = arith.constant 0 : i32
    %c0_i32_1 = arith.constant 0 : i32
    return %c0_i32, %c0_i32_0 : i32, i32
  }
  func.func @transform_11(%arg0: i32) -> (i32, i32) {
    %c0_i32 = arith.constant 0 : i32
    %c0_i32_0 = arith.constant 0 : i32
    return %c0_i32, %arg0 : i32, i32
  }
  func.func @transform_12(%arg0: i32) -> (i32, i32) {
    %c0_i32 = arith.constant 0 : i32
    %c0_i32_0 = arith.constant 0 : i32
    return %c0_i32, %arg0 : i32, i32
  }
}

</mosaic_0001>

<bundles_post_ra>
// kernel: tpu_custom_call.1
= control target key start
LH: loop header
LB: loop body
LE: loop exit
PB: predicated region body
PF: predicated region fallthrough
CT: control target
= control target key end

     0   :  { %s14458_s0 = inlined_call_operand.vmem [shape: f32[8,4096], index: 0, kind: input, shape index: {}]   ;;  %s14459_s1 = inlined_call_operand.vmem [shape: f32[2,32,8], index: 1, kind: input, shape index: {}]   ;;  %s14460_s2 = inlined_call_operand.hbm [shape: f32[7,32,32], index: 2, kind: input, shape index: {}]   ;;  %s14461_s3 = inlined_call_operand.vmem [shape: f32[8,32,1], index: 3, kind: input, shape index: {}]   ;;  %s14462_s4 = inlined_call_operand.vmem [shape: f32[17,32], index: 4, kind: input, shape index: {}]   ;;  %s14463_s5 = inlined_call_operand.vmem [shape: f32[17,1], index: 5, kind: input, shape index: {}]   ;;  %s14464_s6 = inlined_call_operand.vmem [shape: f32[16,8], index: 6, kind: input, shape index: {}]   ;;  %s14465_s7 = inlined_call_operand.vmem [shape: f32[16,16], index: 7, kind: input, shape index: {}]   ;;  %s14466_s8 = inlined_call_operand.vmem [shape: f32[16,1], index: 8, kind: input, shape index: {}]   ;;  %s14467_s9 = inlined_call_operand.vmem [shape: f32[3,16], index: 9, kind: input, shape index: {}]   ;;  %s14468_s10 = inlined_call_operand.vmem [shape: f32[3,1], index: 10, kind: input, shape index: {}]   ;;  %s14469_s11 = inlined_call_operand.hbm [shape: f32[3,4096], index: 11, kind: output, shape index: {0}]   ;;  %s14470_s12 = inlined_call_operand.hbm [shape: f32[1,4096], index: 12, kind: output, shape index: {1}]  }
   0x1   :  { %14473 = sst [smem:[#allocation37_spill]] %s14458_s0 }
   0x2   :  { %14474 = sst [smem:[#allocation38_spill]] %s14459_s1 }
   0x3   :  { %14475 = sst [smem:[#allocation39_spill]] %s14460_s2 }
   0x4   :  { %14476 = sst [smem:[#allocation40_spill]] %s14461_s3 }
   0x5   :  { %14477 = sst [smem:[#allocation41_spill]] %s14462_s4 }
   0x6   :  { %18 = vsyncpa [#allocation3], 0 }
   0x7   :  { %19 = vsyncpa [#allocation4], 0 }
   0x8   :  { %21 = vsyncpa [#allocation4 + $0x1], 0 }
   0x9   :  { %22 = vsyncpa [#allocation7], 0 }
   0xa   :  { %24 = vsyncpa [#allocation7 + $0x1], 0  ;;  %s11587_s21 = smov 0   ;;  %s11589_s22 = smov 0  }
   0xb   :  { %s11591_s23 = smov 0   ;;  %s11593_s24 = smov 0  }
   0xc LB: > { %s11608_s25 = sadd.s32 4294967295, %s11512_s24   ;;  %s10814_s26 = sadd.s32 4294967294, %s11512_s24   ;;  %s11512_s24 = sphi %s11593_s24, %s14543_s24   ;;  %s11508_s23 = sphi %s11591_s23, %s14542_s23   ;;  %s11504_s22 = sphi %s11589_s22, %s14541_s22   ;;  %s11500_s21 = sphi %s11587_s21, %s14540_s21  }
   0xd   : > { %s11612_s27 = sadd.s32 1, %s11512_s24   ;;  %s273_s28 = sadd.s32 1, %s11508_s23 }
   0xe   : > { %s270_s29 = ssub.s32 %s11512_s24, %s11612_s27  ;;  %p283_p0 = scmp.ne.s32.totalorder %s11508_s23, %s11504_s22 }
   0xf   : > { %p271_p1 = scmp.eq.s32.totalorder %s270_s29, 0  ;;  %p284_p2 = scmp.eq.s32.totalorder %s11608_s25, 1 }
  0x10   : > { %p289_p3 = scmp.ne.s32.totalorder %s11504_s22, %s11500_s21  ;;  %p290_p4 = scmp.eq.s32.totalorder %s10814_s26, 1 }
  0x11   : > { %s11623_s30 = scalar_select %p271_p1, %s11508_s23, %s273_s28  }
  0x12   : > { %p11625_p5 = por %p284_p2, %p283_p0  ;;  %p11629_p6 = por %p290_p4, %p289_p3 }
  0x13   : > { %p10815_p7 = scmp.ge.s32.totalorder %s11512_s24, 1  ;;  %p323_p8 = scmp.lt.s32.totalorder %s11512_s24, 3 }
  0x14   : > { %s14479_s14 = scalar_select %p11629_p6, 1, 0 }
  0x15   : > { %p11253_p9 = scmp.eq.s32.totalorder %s11608_s25, 0  ;;  %p11636_p10 = pnand %p10815_p7, %p323_p8 }
  0x16   : > { %s11514_s16 = smov [#allocation2]  }
  0x17   : > { %s338_s17 = sshll.u32 %s11514_s16, 4  ;;  %p11242_p11 = pneg %p11636_p10  ;;  %s339_s17 = int_to_ptr.vmem [resolvable:$true] %s338_s17 }
  0x18   : > { %s11403_s18 = scalar_lea.vmem %s339_s17, 3584  ;;  %p11411_p3 = scmp.lt.s32.totalorder %s339_s17, %s339_s17 }
  0x19   : > { %p11243_p12 = pnand %p11253_p9, %p11242_p11  ;;  %p11404_p0 = scmp.ne.s32.totalorder %s339_s17, %s11403_s18 }
  0x1a   : > { %p11412_p4 = scmp.lt.s32.totalorder %s11403_s18, %s11403_s18 }
  0x1b   : > { %p11394_p13 = pneg %p11243_p12 }
  0x1c   : > { %p11413_p6 = por %p11412_p4, %p11411_p3 }
  0x1d   : > { %p11406_p1 = pnand %p11404_p0, %p11394_p13 }
  0x1f   : > { %p11407_p2 = pneg %p11406_p1 }
  0x21   : > { %p11414_p7 = pnand %p11413_p6, %p11407_p2 }
  0x23   : > { %11417 = shalt.err (!%p11414_p7)
}
  0x24   : > { %s11515_s19 = smov 128   ;;  %s11516_s20 = smov 8  }
  0x25   : > { %s14481_s2 = sld [smem:[#allocation39_spill]] }
  0x27   : > { %387 = sbr.rel (%p11636_p10) target bundleno = 2658 (0xa62), region = 64 }
  0x2b   : > { %11245 = dma.hbm_to_vmem [thread:$0]  (!%p11243_p12), %s14481_s2, 3584, %s339_s17, [#allocation3], %s11515_s19, %s11515_s19, %s11516_s20  }
  0x2c   : > { %11487 = dma.done.wait (%p11253_p9), [#allocation3], 3584  }
  0x2d   : > { %11489 = vsyncadd (%p11253_p9), [#allocation3], 4294963712  ;;  %s10822_s29 = sshll.u32 %s11608_s25, 4  ;;  %v14471_v0 = vmov 0.0   ;;  %v11518_v1 = vmov 0   ;;  %s14482_s0 = sld [smem:[#allocation37_spill]] }
  0x2e   : > { %p435_p8 = scmp.lt.s32.totalorder %s10822_s29, 31  ;;  %563 = vmatprep.mubr.f32.mxu0 %v14471_v0  ;;  %652 = vmatprep.mubr.f32.mxu1 %v14471_v0  ;;  %vm486_vm0 = vcmask 64512   ;;  %s14483_s1 = sld [smem:[#allocation38_spill]]  ;;  %v7798_v54 = vld [vmem:[%s14463_s5 + $0x8] sm:$0xff]  ;;  %v7797_v55 = vld [vmem:[%s14463_s5] sm:$0xff]  ;;  %vm1304_vm1 = vcmask 261120  }
  0x2f   : > { %11294 = vset.pattern.permute.xlu0 %v11518_v1  ;;  %11295 = vset.pattern.permute.xlu1 %v11518_v1  ;;  %s14484_s3 = sld [smem:[#allocation40_spill]]  ;;  %v9297_v56 = vld [vmem:[%s14466_s8 + $0x8] sm:$0xff]  ;;  %v9296_v57 = vld [vmem:[%s14466_s8] sm:$0xff]  ;;  %v7799_v59 = vld [vmem:[%s14463_s5 + $0x10] sm:$0x1]  ;;  %vm9308_vm2 = vcmask 130048  }
  0x30   : > { %s14545_s29 = smov (!%p435_p8, %s10822_s29), 31  ;;  %v9964_v58 = vld [vmem:[%s14468_s10] sm:$0x7]  ;;  %s14538_s4 = sld [smem:[#allocation41_spill]] }
  0x31   : > { %s10823_s15 = sshll.u32 %s14545_s29, 3  ;;  %s11233_s16 = sshll.u32 %s11608_s25, 8 }
  0x32   : > { %s10709_s2 = scalar_lea.hbm %s14470_s12, %s11233_s16  ;;  %s11520_s29 = smov [#allocation6]  }
  0x33   : > { %s11659_s18 = scalar_lea.vmem %s14482_s0, %s10823_s15  ;;  %s11422_s15 = sshll.u32 %s11520_s29, 4  ;;  %s11423_s15 = int_to_ptr.vmem [resolvable:$false] %s11422_s15 }
  0x34   : > { %v443_v2 = vld [vmem:[%s11659_s18 + $0x8] sm:$0xff]  ;;  %v445_v3 = vld [vmem:[%s11659_s18 + $0x18] sm:$0xff]  ;;  %v442_v4 = vld [vmem:[%s11659_s18] sm:$0xff] }
  0x35   : > { %529 = vmatprep.subr.mxu0 %v443_v2  ;;  %618 = vmatprep.subr.mxu1 %v445_v3  ;;  %v444_v5 = vld [vmem:[%s11659_s18 + $0x10] sm:$0xff]  ;;  %v11668_v6 = vld [vmem:[%s14483_s1] sm:$0xff]  ;;  %v447_v7 = vld [vmem:[%s11659_s18 + $0x28] sm:$0xff] }
  0x36   : > { %530 = vmatpush1.msra.mxu0 %v442_v4  ;;  %619 = vmatpush1.msra.mxu1 %v444_v5  ;;  %v449_v8 = vld [vmem:[%s11659_s18 + $0x38] sm:$0xff]  ;;  %v446_v10 = vld [vmem:[%s11659_s18 + $0x20] sm:$0xff]  ;;  %v11685_v11 = vld [vmem:[%s14483_s1 + $0x8] sm:$0xff] }
  0x37   : > { %10824 = vmatmul.mubr.msk.f32.vlgmr.msra.gmra.mxu0 %vm486_vm0, %v11668_v6  ;;  %10828 = vmatmul.mubr.msk.f32.vlgmr.msra.gmra.mxu1 %vm486_vm0, %v11668_v6  ;;  %v465_v9 = vld [vmem:[%s14484_s3 + $0x18] sm:$0xff]  ;;  %v448_v12 = vld [vmem:[%s11659_s18 + $0x30] sm:$0xff]  ;;  %v463_v13 = vld [vmem:[%s14484_s3 + $0x8] sm:$0xff] }
  0x38   : > { %569 = vmatprep.mubr.f32.mxu0 %v14471_v0  ;;  %658 = vmatprep.mubr.f32.mxu1 %v14471_v0  ;;  %v464_v14 = vld [vmem:[%s14484_s3 + $0x10] sm:$0xff]  ;;  %v451_v15 = vld [vmem:[%s11659_s18 + $0x48] sm:$0xff]  ;;  %v462_v17 = vld [vmem:[%s14484_s3] sm:$0xff] }
  0x39   : > { %707 = vmatprep.subr.mxu0 %v447_v7  ;;  %796 = vmatprep.subr.mxu1 %v449_v8  ;;  %v11704_v16 = vld [vmem:[%s14483_s1 + $0x10] sm:$0xff]  ;;  %v453_v18 = vld [vmem:[%s11659_s18 + $0x58] sm:$0xff]  ;;  %v10857_v22 = vld [vmem:[%s14484_s3 + $0x28] sm:$0xff] }
  0x3a   : > { %483 = vperm.xlu0 %11294, %v465_v9   ;;  %708 = vmatpush1.msra.mxu0 %v446_v10  ;;  %v10859_v19 = vld [vmem:[%s14484_s3 + $0x38] sm:$0xff]  ;;  %v10858_v21 = vld [vmem:[%s14484_s3 + $0x30] sm:$0xff]  ;;  %v10856_v23 = vld [vmem:[%s14484_s3 + $0x20] sm:$0xff] }
  0x3b   : > { %10825 = vmatmul.mubr.msk.f32.gmra.mxu0 %vm486_vm0, %v11685_v11  ;;  %10829 = vmatmul.mubr.msk.f32.gmra.mxu1 %vm486_vm0, %v11685_v11  ;;  %v11722_v20 = vld [vmem:[%s14483_s1 + $0x18] sm:$0xff]  ;;  %v450_v24 = vld [vmem:[%s11659_s18 + $0x40] sm:$0xff]  ;;  %v452_v26 = vld [vmem:[%s11659_s18 + $0x50] sm:$0xff] }
  0x3c   : > { %575 = vmatprep.mubr.f32.mxu0 %v14471_v0  ;;  %664 = vmatprep.mubr.f32.mxu1 %v14471_v0  ;;  %v10895_v25 = vld [vmem:[%s14484_s3 + $0x58] sm:$0xff]  ;;  %v10894_v27 = vld [vmem:[%s14484_s3 + $0x50] sm:$0xff]  ;;  %v455_v28 = vld [vmem:[%s11659_s18 + $0x68] sm:$0xff] }
  0x3d   : > { %797 = vmatpush1.msra.mxu1 %v448_v12  ;;  %473 = vperm.xlu1 %11295, %v463_v13   ;;  %v10893_v29 = vld [vmem:[%s14484_s3 + $0x48] sm:$0xff]  ;;  %v457_v30 = vld [vmem:[%s11659_s18 + $0x78] sm:$0xff]  ;;  %v10892_v31 = vld [vmem:[%s14484_s3 + $0x40] sm:$0xff] }
  0x3e   : > { %478 = vperm.xlu0 %11294, %v464_v14   ;;  %885 = vmatprep.subr.mxu0 %v451_v15  ;;  %v10931_v32 = vld [vmem:[%s14484_s3 + $0x78] sm:$0xff]  ;;  %v10930_v33 = vld [vmem:[%s14484_s3 + $0x70] sm:$0xff]  ;;  %v10929_v34 = vld [vmem:[%s14484_s3 + $0x68] sm:$0xff] }
  0x3f   : > { %10826 = vmatmul.mubr.msk.f32.gmra.mxu0 %vm486_vm0, %v11704_v16  ;;  %10830 = vmatmul.mubr.msk.f32.gmra.mxu1 %vm486_vm0, %v11704_v16  ;;  %v10928_v35 = vld [vmem:[%s14484_s3 + $0x60] sm:$0xff]  ;;  %v11035_v37 = vld [vmem:[%s14484_s3 + $0x98] sm:$0xff]  ;;  %v456_v38 = vld [vmem:[%s11659_s18 + $0x70] sm:$0xff] }
  0x40   : > { %581 = vmatprep.mubr.f32.mxu0 %v14471_v0  ;;  %670 = vmatprep.mubr.f32.mxu1 %v14471_v0  ;;  %v454_v36 = vld [vmem:[%s11659_s18 + $0x60] sm:$0xff]  ;;  %v11034_v39 = vld [vmem:[%s14484_s3 + $0x90] sm:$0xff]  ;;  %v11033_v40 = vld [vmem:[%s14484_s3 + $0x88] sm:$0xff] }
  0x41   : > { %468 = vperm.xlu1 %11295, %v462_v17   ;;  %974 = vmatprep.subr.mxu1 %v453_v18  ;;  %v11032_v41 = vld [vmem:[%s14484_s3 + $0x80] sm:$0xff]  ;;  %v11039_v42 = vld [vmem:[%s14484_s3 + $0xb8] sm:$0xff]  ;;  %v11038_v43 = vld [vmem:[%s14484_s3 + $0xb0] sm:$0xff] }
  0x42   : > { %1301 = vperm.xlu0 %11294, %v10859_v19   ;;  %v11037_v44 = vld [vmem:[%s14484_s3 + $0xa8] sm:$0xff]  ;;  %v11036_v45 = vld [vmem:[%s14484_s3 + $0xa0] sm:$0xff]  ;;  %v11075_v46 = vld [vmem:[%s14484_s3 + $0xd8] sm:$0xff] }
  0x43   : > { %10827 = vmatmul.mubr.msk.f32.gmra.mxu0 %vm486_vm0, %v11722_v20  ;;  %10831 = vmatmul.mubr.msk.f32.gmra.mxu1 %vm486_vm0, %v11722_v20  ;;  %v11074_v47 = vld [vmem:[%s14484_s3 + $0xd0] sm:$0xff]  ;;  %v11073_v48 = vld [vmem:[%s14484_s3 + $0xc8] sm:$0xff]  ;;  %v11072_v49 = vld [vmem:[%s14484_s3 + $0xc0] sm:$0xff] }
  0x44   : > { %741 = vmatprep.mubr.f32.mxu0 %v14471_v0  ;;  %830 = vmatprep.mubr.f32.mxu1 %v14471_v0  ;;  %v11111_v50 = vld [vmem:[%s14484_s3 + $0xf8] sm:$0xff]  ;;  %v11110_v51 = vld [vmem:[%s14484_s3 + $0xf0] sm:$0xff]  ;;  %v11109_v52 = vld [vmem:[%s14484_s3 + $0xe8] sm:$0xff] }
  0x45   : > { %1296 = vperm.xlu1 %11295, %v10858_v21   ;;  %v11108_v53 = vld [vmem:[%s14484_s3 + $0xe0] sm:$0xff] }
  0x46   : > { %1291 = vperm.xlu0 %11294, %v10857_v22  }
  0x47   : > { %10832 = vmatmul.mubr.msk.f32.vlgmr.msra.gmra.mxu0 %vm486_vm0, %v11668_v6  ;;  %10836 = vmatmul.mubr.msk.f32.vlgmr.msra.gmra.mxu1 %vm486_vm0, %v11668_v6 }
  0x48   : > { %747 = vmatprep.mubr.f32.mxu0 %v14471_v0  ;;  %836 = vmatprep.mubr.f32.mxu1 %v14471_v0 }
  0x49   : > { %1286 = vperm.xlu1 %11295, %v10856_v23   ;;  %886 = vmatpush1.msra.mxu0 %v450_v24 }
  0x4a   : > { %2120 = vperm.xlu0 %11294, %v10895_v25   ;;  %975 = vmatpush1.msra.mxu1 %v452_v26 }
  0x4b   : > { %10833 = vmatmul.mubr.msk.f32.gmra.mxu0 %vm486_vm0, %v11685_v11  ;;  %10837 = vmatmul.mubr.msk.f32.gmra.mxu1 %vm486_vm0, %v11685_v11 }
  0x4c   : > { %753 = vmatprep.mubr.f32.mxu0 %v14471_v0  ;;  %842 = vmatprep.mubr.f32.mxu1 %v14471_v0 }
  0x4d   : > { %2115 = vperm.xlu1 %11295, %v10894_v27   ;;  %1063 = vmatprep.subr.mxu0 %v455_v28 }
  0x4e   : > { %2110 = vperm.xlu0 %11294, %v10893_v29   ;;  %1152 = vmatprep.subr.mxu1 %v457_v30 }
  0x4f   : > { %10834 = vmatmul.mubr.msk.f32.gmra.mxu0 %vm486_vm0, %v11704_v16  ;;  %10838 = vmatmul.mubr.msk.f32.gmra.mxu1 %vm486_vm0, %v11704_v16 }
  0x50   : > { %759 = vmatprep.mubr.f32.mxu0 %v14471_v0  ;;  %848 = vmatprep.mubr.f32.mxu1 %v14471_v0 }
  0x51   : > { %2105 = vperm.xlu1 %11295, %v10892_v31  }
  0x52   : > { %2938 = vperm.xlu0 %11294, %v10931_v32  }
  0x53   : > { %10835 = vmatmul.mubr.msk.f32.gmra.mxu0 %vm486_vm0, %v11722_v20  ;;  %10839 = vmatmul.mubr.msk.f32.gmra.mxu1 %vm486_vm0, %v11722_v20 }
  0x54   : > { %919 = vmatprep.mubr.f32.mxu0 %v14471_v0  ;;  %1008 = vmatprep.mubr.f32.mxu1 %v14471_v0 }
  0x55   : > { %2933 = vperm.xlu1 %11295, %v10930_v33  }
  0x56   : > { %2928 = vperm.xlu0 %11294, %v10929_v34  }
  0x57   : > { %10840 = vmatmul.mubr.msk.f32.vlgmr.msra.gmra.mxu0 %vm486_vm0, %v11668_v6  ;;  %10844 = vmatmul.mubr.msk.f32.vlgmr.msra.gmra.mxu1 %vm486_vm0, %v11668_v6 }
  0x58   : > { %925 = vmatprep.mubr.f32.mxu0 %v14471_v0  ;;  %1014 = vmatprep.mubr.f32.mxu1 %v14471_v0 }
  0x59   : > { %2923 = vperm.xlu1 %11295, %v10928_v35   ;;  %1064 = vmatpush1.msra.mxu0 %v454_v36 }
  0x5a   : > { %5209 = vperm.xlu0 %11294, %v11035_v37   ;;  %1153 = vmatpush1.msra.mxu1 %v456_v38 }
  0x5b   : > { %10841 = vmatmul.mubr.msk.f32.gmra.mxu0 %vm486_vm0, %v11685_v11  ;;  %10845 = vmatmul.mubr.msk.f32.gmra.mxu1 %vm486_vm0, %v11685_v11 }
  0x5c   : > { %931 = vmatprep.mubr.f32.mxu0 %v14471_v0  ;;  %1020 = vmatprep.mubr.f32.mxu1 %v14471_v0 }
  0x5d   : > { %5204 = vperm.xlu1 %11295, %v11034_v39  }
  0x5e   : > { %5199 = vperm.xlu0 %11294, %v11033_v40  }
  0x5f   : > { %10842 = vmatmul.mubr.msk.f32.gmra.mxu0 %vm486_vm0, %v11704_v16  ;;  %10846 = vmatmul.mubr.msk.f32.gmra.mxu1 %vm486_vm0, %v11704_v16 }
  0x60   : > { %937 = vmatprep.mubr.f32.mxu0 %v14471_v0  ;;  %1026 = vmatprep.mubr.f32.mxu1 %v14471_v0 }
  0x61   : > { %5194 = vperm.xlu1 %11295, %v11032_v41  }
  0x62   : > { %5367 = vperm.xlu0 %11294, %v11039_v42  }
  0x63   : > { %10843 = vmatmul.mubr.msk.f32.gmra.mxu0 %vm486_vm0, %v11722_v20  ;;  %10847 = vmatmul.mubr.msk.f32.gmra.mxu1 %vm486_vm0, %v11722_v20 }
  0x64   : > { %1097 = vmatprep.mubr.f32.mxu0 %v14471_v0  ;;  %1186 = vmatprep.mubr.f32.mxu1 %v14471_v0 }
  0x65   : > { %5362 = vperm.xlu1 %11295, %v11038_v43  }
  0x66   : > { %5357 = vperm.xlu0 %11294, %v11037_v44  }
  0x67   : > { %10848 = vmatmul.mubr.msk.f32.vlgmr.msra.gmra.mxu0 %vm486_vm0, %v11668_v6  ;;  %10852 = vmatmul.mubr.msk.f32.vlgmr.msra.gmra.mxu1 %vm486_vm0, %v11668_v6 }
  0x68   : > { %1103 = vmatprep.mubr.f32.mxu0 %v14471_v0  ;;  %1192 = vmatprep.mubr.f32.mxu1 %v14471_v0 }
  0x69   : > { %5352 = vperm.xlu1 %11295, %v11036_v45  }
  0x6a   : > { %6185 = vperm.xlu0 %11294, %v11075_v46  }
  0x6b   : > { %10849 = vmatmul.mubr.msk.f32.gmra.mxu0 %vm486_vm0, %v11685_v11  ;;  %10853 = vmatmul.mubr.msk.f32.gmra.mxu1 %vm486_vm0, %v11685_v11 }
  0x6c   : > { %1109 = vmatprep.mubr.f32.mxu0 %v14471_v0  ;;  %1198 = vmatprep.mubr.f32.mxu1 %v14471_v0 }
  0x6d   : > { %6180 = vperm.xlu1 %11295, %v11074_v47  }
  0x6e   : > { %6175 = vperm.xlu0 %11294, %v11073_v48  }
  0x6f   : > { %10850 = vmatmul.mubr.msk.f32.gmra.mxu0 %vm486_vm0, %v11704_v16  ;;  %10854 = vmatmul.mubr.msk.f32.gmra.mxu1 %vm486_vm0, %v11704_v16 }
  0x70   : > { %1115 = vmatprep.mubr.f32.mxu0 %v14471_v0  ;;  %1204 = vmatprep.mubr.f32.mxu1 %v14471_v0 }
  0x71   : > { %6170 = vperm.xlu1 %11295, %v11072_v49  }
  0x72   : > { %7003 = vperm.xlu0 %11294, %v11111_v50  }
  0x73   : > { %10851 = vmatmul.mubr.msk.f32.gmra.mxu0 %vm486_vm0, %v11722_v20  ;;  %10855 = vmatmul.mubr.msk.f32.gmra.mxu1 %vm486_vm0, %v11722_v20 }
  0x74   : > { %1381 = vmatprep.mubr.f32.mxu0 %v14471_v0  ;;  %1470 = vmatprep.mubr.f32.mxu1 %v14471_v0 }
  0x75   : > { %6998 = vperm.xlu1 %11295, %v11110_v51  }
  0x76   : > { %6993 = vperm.xlu0 %11294, %v11109_v52  }
  0x79   : > { %6988 = vperm.xlu1 %11295, %v11108_v53  }
  0x7a   : > { %7807 = vperm.xlu0 %11294, %v7798_v54  }
  0x7d   : > { %7802 = vperm.xlu1 %11295, %v7797_v55  }
  0x7e   : > { %9305 = vperm.xlu0 %11294, %v9297_v56  }
  0x81   : > { %9300 = vperm.xlu1 %11295, %v9296_v57  }
  0x82   : > { %9967 = vperm.xlu0 %11294, %v9964_v58  }
  0x85   : > { %7812 = vperm.xlu1 %11295, %v7799_v59   ;;  %v11943_v59 = vld [vmem:[#allocation2] sm:$0xff] }
  0xb5   : > { %v11907_v5 = vpop.permute.xlu0 %483 }
  0xb8   : > { %v11909_v10 = vpop.permute.xlu1 %473 }
  0xb9   : > { %v11911_v13 = vpop.permute.xlu0 %478 }
  0xbc   : > { %v11925_v26 = vpop.permute.xlu1 %468 }
  0xf7   : > { %v565_v60 = vpop.f32.mrf.mxu0  ;;  %v654_v61 = vpop.f32.mrf.mxu1 }
  0xf8   : > { %v566_v41 = vadd.f32 %v565_v60, %v11925_v26  ;;  %v655_v42 = vadd.f32 %v654_v61, %v11925_v26 }
  0xf9   : > { %v567_v62 = vpop.f32.mrf.mxu0  ;;  %v656_v63 = vpop.f32.mrf.mxu1 }
  0xfa   : > { %v568_v37 = vadd.f32 %v567_v62, %v11925_v26  ;;  %v657_v38 = vadd.f32 %v656_v63, %v11925_v26  ;;  %v1211_v55 = vmax.f32 %v566_v41, 0.0  ;;  %v1213_v56 = vmax.f32 %v655_v42, 0.0 }
  0xfb   : > { %v571_v1 = vpop.f32.mrf.mxu0  ;;  %v660_v2 = vpop.f32.mrf.mxu1 }
  0xfc   : > { %v572_v31 = vadd.f32 %v571_v1, %v11909_v10  ;;  %v661_v32 = vadd.f32 %v660_v2, %v11909_v10  ;;  %v1212_v53 = vmax.f32 %v568_v37, 0.0  ;;  %v1214_v54 = vmax.f32 %v657_v38, 0.0  ;;  %v11951_v1 = vld [vmem:[#allocation2 + $0x8] sm:$0xff] }
  0xfd   : > { %v573_v3 = vpop.f32.mrf.mxu0  ;;  %v662_v4 = vpop.f32.mrf.mxu1 }
  0xfe   : > { %v574_v27 = vadd.f32 %v573_v3, %v11909_v10  ;;  %v663_v28 = vadd.f32 %v662_v4, %v11909_v10  ;;  %v1227_v49 = vmax.f32 %v572_v31, 0.0  ;;  %v1229_v50 = vmax.f32 %v661_v32, 0.0 }
  0xff   : > { %v577_v6 = vpop.f32.mrf.mxu0  ;;  %v666_v7 = vpop.f32.mrf.mxu1 }
 0x100   : > { %v578_v22 = vadd.f32 %v577_v6, %v11911_v13  ;;  %v667_v23 = vadd.f32 %v666_v7, %v11911_v13  ;;  %v1228_v47 = vmax.f32 %v574_v27, 0.0  ;;  %v1230_v48 = vmax.f32 %v663_v28, 0.0 }
 0x101   : > { %v579_v8 = vpop.f32.mrf.mxu0  ;;  %v668_v9 = vpop.f32.mrf.mxu1 }
 0x102   : > { %v580_v18 = vadd.f32 %v579_v8, %v11911_v13  ;;  %v669_v19 = vadd.f32 %v668_v9, %v11911_v13  ;;  %v1243_v43 = vmax.f32 %v578_v22, 0.0  ;;  %v1245_v44 = vmax.f32 %v667_v23, 0.0 }
 0x103   : > { %v583_v11 = vpop.f32.mrf.mxu0  ;;  %v672_v12 = vpop.f32.mrf.mxu1 }
 0x104   : > { %v584_v14 = vadd.f32 %v583_v11, %v11907_v5  ;;  %v673_v15 = vadd.f32 %v672_v12, %v11907_v5  ;;  %v1244_v39 = vmax.f32 %v580_v18, 0.0  ;;  %v1246_v40 = vmax.f32 %v669_v19, 0.0 }
 0x105   : > { %v585_v16 = vpop.f32.mrf.mxu0  ;;  %v674_v17 = vpop.f32.mrf.mxu1 }
 0x106   : > { %v586_v20 = vadd.f32 %v585_v16, %v11907_v5  ;;  %v675_v21 = vadd.f32 %v674_v17, %v11907_v5  ;;  %v1259_v33 = vmax.f32 %v584_v14, 0.0  ;;  %v1261_v34 = vmax.f32 %v673_v15, 0.0  ;;  %v11969_v15 = vld [vmem:[#allocation2 + $0x10] sm:$0xff] }
 0x107   : > { %v11921_v24 = vpop.f32.mrf.mxu0  ;;  %v11923_v25 = vpop.f32.mrf.mxu1 }
 0x108   : > { %v1260_v29 = vmax.f32 %v586_v20, 0.0  ;;  %v1262_v30 = vmax.f32 %v675_v21, 0.0 }
 0x109   : > { %v11931_v35 = vpop.f32.mrf.mxu0  ;;  %v11933_v36 = vpop.f32.mrf.mxu1 }
 0x10a   : > { %1341 = vmatprep.subr.mxu0 %v1260_v29  ;;  %1430 = vmatprep.subr.mxu1 %v1262_v30  ;;  %v746_v37 = vadd.f32 %v11931_v35, %v11925_v26  ;;  %v835_v38 = vadd.f32 %v11933_v36, %v11925_v26  ;;  %v833_v35 = vadd.f32 %v11923_v25, %v11925_v26 }
 0x10b   : > { %v11939_v45 = vpop.f32.mrf.mxu0  ;;  %v11941_v46 = vpop.f32.mrf.mxu1  ;;  %1342 = vmatpush1.msra.mxu0 %v1259_v33  ;;  %1431 = vmatpush1.msra.mxu1 %v1261_v34 }
 0x10c   : > { %1343 = vmatprep.subr.mxu0 %v1244_v39  ;;  %1432 = vmatprep.subr.mxu1 %v1246_v40  ;;  %v750_v33 = vadd.f32 %v11939_v45, %v11909_v10  ;;  %v839_v34 = vadd.f32 %v11941_v46, %v11909_v10 }
 0x10d   : > { %v751_v51 = vpop.f32.mrf.mxu0  ;;  %v840_v52 = vpop.f32.mrf.mxu1  ;;  %1344 = vmatpush1.msra.mxu0 %v1243_v43  ;;  %1433 = vmatpush1.msra.mxu1 %v1245_v44  ;;  %v11999_v43 = vld [vmem:[#allocation2 + $0x18] sm:$0xff]  ;;  %v744_v44 = vadd.f32 %v11921_v24, %v11925_v26  ;;  %v1216_v24 = vmax.f32 %v746_v37, 0.0 }
 0x10e   : > { %1345 = vmatprep.subr.mxu0 %v1228_v47  ;;  %1434 = vmatprep.subr.mxu1 %v1230_v48  ;;  %v752_v27 = vadd.f32 %v751_v51, %v11909_v10  ;;  %v841_v28 = vadd.f32 %v840_v52, %v11909_v10  ;;  %v1231_v48 = vmax.f32 %v750_v33, 0.0 }
 0x10f   : > { %v755_v57 = vpop.f32.mrf.mxu0  ;;  %v844_v58 = vpop.f32.mrf.mxu1  ;;  %1346 = vmatpush1.msra.mxu0 %v1227_v49  ;;  %1435 = vmatpush1.msra.mxu1 %v1229_v50  ;;  %v1233_v49 = vmax.f32 %v839_v34, 0.0  ;;  %v1218_v50 = vmax.f32 %v835_v38, 0.0  ;;  %v1215_v52 = vmax.f32 %v744_v44, 0.0 }
 0x110   : > { %1347 = vmatprep.subr.mxu0 %v1212_v53  ;;  %1436 = vmatprep.subr.mxu1 %v1214_v54  ;;  %v756_v18 = vadd.f32 %v755_v57, %v11911_v13  ;;  %v845_v19 = vadd.f32 %v844_v58, %v11911_v13  ;;  %v1232_v36 = vmax.f32 %v752_v27, 0.0  ;;  %v1234_v45 = vmax.f32 %v841_v28, 0.0 }
 0x111   : > { %v757_v60 = vpop.f32.mrf.mxu0  ;;  %v846_v61 = vpop.f32.mrf.mxu1  ;;  %1348 = vmatpush1.msra.mxu0 %v1211_v55  ;;  %1437 = vmatpush1.msra.mxu1 %v1213_v56  ;;  %v1217_v53 = vmax.f32 %v833_v35, 0.0 }
 0x112   : > { %10860 = vmatmul.mubr.msk.f32.vlgmr.msra.gmra.mxu0 %vm1304_vm1, %v11943_v59  ;;  %10864 = vmatmul.mubr.msk.f32.vlgmr.msra.gmra.mxu1 %vm1304_vm1, %v11943_v59  ;;  %v758_v9 = vadd.f32 %v757_v60, %v11911_v13  ;;  %v847_v11 = vadd.f32 %v846_v61, %v11911_v13  ;;  %v1247_v39 = vmax.f32 %v756_v18, 0.0  ;;  %v1249_v40 = vmax.f32 %v845_v19, 0.0 }
 0x113   : > { %v761_v62 = vpop.f32.mrf.mxu0  ;;  %v850_v63 = vpop.f32.mrf.mxu1  ;;  %1387 = vmatprep.mubr.f32.mxu0 %v14471_v0  ;;  %1476 = vmatprep.mubr.f32.mxu1 %v14471_v0 }
 0x114   : > { %v762_v2 = vadd.f32 %v761_v62, %v11907_v5  ;;  %v851_v6 = vadd.f32 %v850_v63, %v11907_v5  ;;  %v1248_v29 = vmax.f32 %v758_v9, 0.0  ;;  %v1250_v30 = vmax.f32 %v847_v11, 0.0 }
 0x115   : > { %v763_v3 = vpop.f32.mrf.mxu0  ;;  %v852_v4 = vpop.f32.mrf.mxu1 }
 0x116   : > { %v764_v7 = vadd.f32 %v763_v3, %v11907_v5  ;;  %v853_v8 = vadd.f32 %v852_v4, %v11907_v5  ;;  %10861 = vmatmul.mubr.msk.f32.gmra.mxu0 %vm1304_vm1, %v11951_v1  ;;  %10865 = vmatmul.mubr.msk.f32.gmra.mxu1 %vm1304_vm1, %v11951_v1  ;;  %v1263_v22 = vmax.f32 %v762_v2, 0.0  ;;  %v1265_v23 = vmax.f32 %v851_v6, 0.0 }
 0x117   : > { %v11963_v12 = vpop.f32.mrf.mxu0  ;;  %v11965_v14 = vpop.f32.mrf.mxu1  ;;  %1393 = vmatprep.mubr.f32.mxu0 %v14471_v0  ;;  %1482 = vmatprep.mubr.f32.mxu1 %v14471_v0 }
 0x118   : > { %v1264_v16 = vmax.f32 %v764_v7, 0.0  ;;  %v1266_v17 = vmax.f32 %v853_v8, 0.0  ;;  %v1011_v44 = vadd.f32 %v11965_v14, %v11925_v26 }
 0x119   : > { %v11973_v20 = vpop.f32.mrf.mxu0  ;;  %v11975_v21 = vpop.f32.mrf.mxu1 }
 0x11a   : > { %10862 = vmatmul.mubr.msk.f32.gmra.mxu0 %vm1304_vm1, %v11969_v15  ;;  %10866 = vmatmul.mubr.msk.f32.gmra.mxu1 %vm1304_vm1, %v11969_v15  ;;  %v924_v38 = vadd.f32 %v11973_v20, %v11925_v26 }
 0x11b   : > { %1519 = vmatprep.subr.mxu0 %v1264_v16  ;;  %1608 = vmatprep.subr.mxu1 %v1266_v17  ;;  %v11983_v31 = vpop.f32.mrf.mxu0  ;;  %v11985_v32 = vpop.f32.mrf.mxu1 }
 0x11c   : > { %1520 = vmatpush1.msra.mxu0 %v1263_v22  ;;  %1609 = vmatpush1.msra.mxu1 %v1265_v23  ;;  %v928_v34 = vadd.f32 %v11983_v31, %v11909_v10  ;;  %v1017_v37 = vadd.f32 %v11985_v32, %v11909_v10  ;;  %v922_v32 = vadd.f32 %v11963_v12, %v11925_v26  ;;  %v1220_v12 = vmax.f32 %v924_v38, 0.0 }
 0x11d   : > { %1521 = vmatprep.subr.mxu0 %v1248_v29  ;;  %1610 = vmatprep.subr.mxu1 %v1250_v30  ;;  %v11995_v41 = vpop.f32.mrf.mxu0  ;;  %v11997_v42 = vpop.f32.mrf.mxu1 }
 0x11e   : > { %1399 = vmatprep.mubr.f32.mxu0 %v14471_v0  ;;  %1488 = vmatprep.mubr.f32.mxu1 %v14471_v0  ;;  %v930_v23 = vadd.f32 %v11995_v41, %v11909_v10  ;;  %v1019_v27 = vadd.f32 %v11997_v42, %v11909_v10 }
 0x11f   : > { %1522 = vmatpush1.msra.mxu0 %v1247_v39  ;;  %1611 = vmatpush1.msra.mxu1 %v1249_v40  ;;  %v933_v46 = vpop.f32.mrf.mxu0  ;;  %v1022_v47 = vpop.f32.mrf.mxu1  ;;  %v1013_v39 = vadd.f32 %v11975_v21, %v11925_v26 }
 0x120   : > { %10863 = vmatmul.mubr.msk.f32.gmra.mxu0 %vm1304_vm1, %v11999_v43  ;;  %10867 = vmatmul.mubr.msk.f32.gmra.mxu1 %vm1304_vm1, %v11999_v43  ;;  %v934_v11 = vadd.f32 %v933_v46, %v11911_v13  ;;  %v1023_v16 = vadd.f32 %v1022_v47, %v11911_v13  ;;  %v1236_v20 = vmax.f32 %v930_v23, 0.0  ;;  %v1238_v35 = vmax.f32 %v1019_v27, 0.0 }
 0x121   : > { %1523 = vmatprep.subr.mxu0 %v1232_v36  ;;  %1612 = vmatprep.subr.mxu1 %v1234_v45  ;;  %v935_v51 = vpop.f32.mrf.mxu0  ;;  %v1024_v25 = vpop.f32.mrf.mxu1  ;;  %v1235_v45 = vmax.f32 %v928_v34, 0.0  ;;  %v1237_v46 = vmax.f32 %v1017_v37, 0.0  ;;  %v1222_v47 = vmax.f32 %v1013_v39, 0.0 }
 0x122   : > { %1524 = vmatpush1.msra.mxu0 %v1231_v48  ;;  %1613 = vmatpush1.msra.mxu1 %v1233_v49  ;;  %v936_v6 = vadd.f32 %v935_v51, %v11911_v13  ;;  %v1025_v7 = vadd.f32 %v1024_v25, %v11911_v13  ;;  %v1251_v40 = vmax.f32 %v934_v11, 0.0  ;;  %v1253_v41 = vmax.f32 %v1023_v16, 0.0 }
 0x123   : > { %1525 = vmatprep.subr.mxu0 %v1216_v24  ;;  %1614 = vmatprep.subr.mxu1 %v1218_v50  ;;  %v939_v54 = vpop.f32.mrf.mxu0  ;;  %v1028_v55 = vpop.f32.mrf.mxu1  ;;  %v1219_v49 = vmax.f32 %v922_v32, 0.0  ;;  %v1221_v24 = vmax.f32 %v1011_v44, 0.0 }
 0x124   : > { %1526 = vmatpush1.msra.mxu0 %v1215_v52  ;;  %1559 = vmatprep.mubr.f32.mxu0 %v14471_v0  ;;  %v940_v61 = vadd.f32 %v939_v54, %v11907_v5  ;;  %v1029_v62 = vadd.f32 %v1028_v55, %v11907_v5  ;;  %v1252_v28 = vmax.f32 %v936_v6, 0.0  ;;  %v1254_v29 = vmax.f32 %v1025_v7, 0.0 }
 0x125   : > { %1615 = vmatpush1.msra.mxu1 %v1217_v53  ;;  %1648 = vmatprep.mubr.f32.mxu1 %v14471_v0  ;;  %v941_v56 = vpop.f32.mrf.mxu0  ;;  %v1030_v57 = vpop.f32.mrf.mxu1 }
 0x126   : > { %10868 = vmatmul.mubr.msk.f32.vlgmr.msra.gmra.mxu0 %vm1304_vm1, %v11943_v59  ;;  %10872 = vmatmul.mubr.msk.f32.vlgmr.msra.gmra.mxu1 %vm1304_vm1, %v11943_v59  ;;  %v942_v58 = vadd.f32 %v941_v56, %v11907_v5  ;;  %v1031_v60 = vadd.f32 %v1030_v57, %v11907_v5  ;;  %v1267_v17 = vmax.f32 %v940_v61, 0.0  ;;  %v1269_v18 = vmax.f32 %v1029_v62, 0.0 }
 0x127   : > { %1565 = vmatprep.mubr.f32.mxu0 %v14471_v0  ;;  %1654 = vmatprep.mubr.f32.mxu1 %v14471_v0  ;;  %v12023_v63 = vpop.f32.mrf.mxu0  ;;  %v12025_v2 = vpop.f32.mrf.mxu1 }
 0x128   : > { %v1268_v3 = vmax.f32 %v942_v58, 0.0  ;;  %v1270_v4 = vmax.f32 %v1031_v60, 0.0  ;;  %v1189_v27 = vadd.f32 %v12025_v2, %v11925_v26 }
 0x129   : > { %v12029_v8 = vpop.f32.mrf.mxu0  ;;  %v12031_v9 = vpop.f32.mrf.mxu1 }
 0x12a   : > { %10869 = vmatmul.mubr.msk.f32.gmra.mxu0 %vm1304_vm1, %v11951_v1  ;;  %10873 = vmatmul.mubr.msk.f32.gmra.mxu1 %vm1304_vm1, %v11951_v1  ;;  %v1191_v23 = vadd.f32 %v12031_v9, %v11925_v26 }
 0x12b   : > { %1571 = vmatprep.mubr.f32.mxu0 %v14471_v0  ;;  %1660 = vmatprep.mubr.f32.mxu1 %v14471_v0  ;;  %v12041_v19 = vpop.f32.mrf.mxu0  ;;  %v12043_v22 = vpop.f32.mrf.mxu1 }
 0x12c   : > { %1697 = vmatprep.subr.mxu0 %v1268_v3  ;;  %1786 = vmatprep.subr.mxu1 %v1270_v4  ;;  %v1195_v11 = vadd.f32 %v12043_v22, %v11909_v10  ;;  %v1226_v9 = vmax.f32 %v1191_v23, 0.0 }
 0x12d   : > { %1698 = vmatpush1.msra.mxu0 %v1267_v17  ;;  %1787 = vmatpush1.msra.mxu1 %v1269_v18  ;;  %v12049_v30 = vpop.f32.mrf.mxu0  ;;  %v12051_v33 = vpop.f32.mrf.mxu1  ;;  %v1102_v18 = vadd.f32 %v12029_v8, %v11925_v26 }
 0x12e   : > { %10870 = vmatmul.mubr.msk.f32.gmra.mxu0 %vm1304_vm1, %v11969_v15  ;;  %10874 = vmatmul.mubr.msk.f32.gmra.mxu1 %vm1304_vm1, %v11969_v15  ;;  %v1108_v3 = vadd.f32 %v12049_v30, %v11909_v10  ;;  %v1197_v4 = vadd.f32 %v12051_v33, %v11909_v10 }
 0x12f   : > { %1699 = vmatprep.subr.mxu0 %v1252_v28  ;;  %1788 = vmatprep.subr.mxu1 %v1254_v29  ;;  %v1111_v31 = vpop.f32.mrf.mxu0  ;;  %v1200_v42 = vpop.f32.mrf.mxu1  ;;  %v1241_v28 = vmax.f32 %v1195_v11, 0.0 }
 0x130   : > { %1577 = vmatprep.mubr.f32.mxu0 %v14471_v0  ;;  %1666 = vmatprep.mubr.f32.mxu1 %v14471_v0  ;;  %v1112_v60 = vadd.f32 %v1111_v31, %v11911_v13  ;;  %v1201_v61 = vadd.f32 %v1200_v42, %v11911_v13  ;;  %v1242_v22 = vmax.f32 %v1197_v4, 0.0  ;;  %v12149_v31 = vpop.permute.xlu0 %1301  ;;  %v12151_v42 = vpop.permute.xlu1 %1296 }
 0x131   : > { %1700 = vmatpush1.msra.mxu0 %v1251_v40  ;;  %1789 = vmatpush1.msra.mxu1 %v1253_v41  ;;  %v1113_v21 = vpop.f32.mrf.mxu0  ;;  %v1202_v36 = vpop.f32.mrf.mxu1 }
 0x132   : > { %10871 = vmatmul.mubr.msk.f32.gmra.mxu0 %vm1304_vm1, %v11999_v43  ;;  %10875 = vmatmul.mubr.msk.f32.gmra.mxu1 %vm1304_vm1, %v11999_v43  ;;  %v1114_v55 = vadd.f32 %v1113_v21, %v11911_v13  ;;  %v1203_v56 = vadd.f32 %v1202_v36, %v11911_v13  ;;  %v1106_v13 = vadd.f32 %v12041_v19, %v11909_v10  ;;  %v1255_v16 = vmax.f32 %v1112_v60, 0.0 }
 0x133   : > { %1701 = vmatprep.subr.mxu0 %v1236_v20  ;;  %1790 = vmatprep.subr.mxu1 %v1238_v35  ;;  %v1117_v48 = vpop.f32.mrf.mxu0  ;;  %v1206_v14 = vpop.f32.mrf.mxu1  ;;  %v1257_v17 = vmax.f32 %v1201_v61, 0.0  ;;  %v1100_v19 = vadd.f32 %v12023_v63, %v11925_v26  ;;  %v1240_v10 = vmax.f32 %v1108_v3, 0.0  ;;  %v1224_v63 = vmax.f32 %v1102_v18, 0.0 }
 0x134   : > { %1702 = vmatpush1.msra.mxu0 %v1235_v45  ;;  %1791 = vmatpush1.msra.mxu1 %v1237_v46  ;;  %v1118_v50 = vadd.f32 %v1117_v48, %v11907_v5  ;;  %v1207_v51 = vadd.f32 %v1206_v14, %v11907_v5  ;;  %v1256_v6 = vmax.f32 %v1114_v55, 0.0  ;;  %v1258_v7 = vmax.f32 %v1203_v56, 0.0 }
 0x135   : > { %1703 = vmatprep.subr.mxu0 %v1220_v12  ;;  %1792 = vmatprep.subr.mxu1 %v1222_v47  ;;  %v1119_v25 = vpop.f32.mrf.mxu0  ;;  %v1208_v52 = vpop.f32.mrf.mxu1  ;;  %v1239_v8 = vmax.f32 %v1106_v13, 0.0  ;;  %v1223_v29 = vmax.f32 %v1100_v19, 0.0  ;;  %v1225_v26 = vmax.f32 %v1189_v27, 0.0 }
 0x136   : > { %1704 = vmatpush1.msra.mxu0 %v1219_v49  ;;  %1737 = vmatprep.mubr.f32.mxu0 %v14471_v0  ;;  %v1120_v53 = vadd.f32 %v1119_v25, %v11907_v5  ;;  %v1209_v54 = vadd.f32 %v1208_v52, %v11907_v5  ;;  %v1271_v5 = vmax.f32 %v1118_v50, 0.0  ;;  %v1273_v62 = vmax.f32 %v1207_v51, 0.0  ;;  %v12159_v47 = vpop.permute.xlu0 %1291  ;;  %v12163_v49 = vpop.permute.xlu1 %1286 }
 0x137   : > { %1793 = vmatpush1.msra.mxu1 %v1221_v24  ;;  %1826 = vmatprep.mubr.f32.mxu1 %v14471_v0 }
 0x138   : > { %10876 = vmatmul.mubr.msk.f32.vlgmr.msra.gmra.mxu0 %vm1304_vm1, %v11943_v59  ;;  %10880 = vmatmul.mubr.msk.f32.vlgmr.msra.gmra.mxu1 %vm1304_vm1, %v11943_v59  ;;  %v1272_v57 = vmax.f32 %v1120_v53, 0.0  ;;  %v1274_v58 = vmax.f32 %v1209_v54, 0.0 }
 0x139   : > { %1743 = vmatprep.mubr.f32.mxu0 %v14471_v0  ;;  %1832 = vmatprep.mubr.f32.mxu1 %v14471_v0 }
 0x13a   : > { %1875 = vmatprep.subr.mxu0 %v1272_v57  ;;  %1964 = vmatprep.subr.mxu1 %v1274_v58 }
 0x13b   : > { %1876 = vmatpush1.msra.mxu0 %v1271_v5  ;;  %1965 = vmatpush1.msra.mxu1 %v1273_v62 }
 0x13c   : > { %10877 = vmatmul.mubr.msk.f32.gmra.mxu0 %vm1304_vm1, %v11951_v1  ;;  %10881 = vmatmul.mubr.msk.f32.gmra.mxu1 %vm1304_vm1, %v11951_v1 }
 0x13d   : > { %1749 = vmatprep.mubr.f32.mxu0 %v14471_v0  ;;  %1838 = vmatprep.mubr.f32.mxu1 %v14471_v0 }
 0x13e   : > { %1877 = vmatprep.subr.mxu0 %v1256_v6  ;;  %1966 = vmatprep.subr.mxu1 %v1258_v7 }
 0x13f   : > { %1878 = vmatpush1.msra.mxu0 %v1255_v16  ;;  %1967 = vmatpush1.msra.mxu1 %v1257_v17 }
 0x140   : > { %10878 = vmatmul.mubr.msk.f32.gmra.mxu0 %vm1304_vm1, %v11969_v15  ;;  %10882 = vmatmul.mubr.msk.f32.gmra.mxu1 %vm1304_vm1, %v11969_v15 }
 0x141   : > { %1755 = vmatprep.mubr.f32.mxu0 %v14471_v0  ;;  %1844 = vmatprep.mubr.f32.mxu1 %v14471_v0 }
 0x142   : > { %1879 = vmatprep.subr.mxu0 %v1240_v10  ;;  %1968 = vmatprep.subr.mxu1 %v1242_v22 }
 0x143   : > { %1880 = vmatpush1.msra.mxu0 %v1239_v8  ;;  %1969 = vmatpush1.msra.mxu1 %v1241_v28 }
 0x144   : > { %10879 = vmatmul.mubr.msk.f32.gmra.mxu0 %vm1304_vm1, %v11999_v43  ;;  %10883 = vmatmul.mubr.msk.f32.gmra.mxu1 %vm1304_vm1, %v11999_v43 }
 0x145   : > { %1881 = vmatprep.subr.mxu0 %v1224_v63  ;;  %1970 = vmatprep.subr.mxu1 %v1226_v9  ;;  %v12181_v9 = vld [vmem:[#allocation2 + $0x20] sm:$0xff] }
 0x146   : > { %1882 = vmatpush1.msra.mxu0 %v1223_v29  ;;  %1915 = vmatprep.mubr.f32.mxu0 %v14471_v0 }
 0x147   : > { %1971 = vmatpush1.msra.mxu1 %v1225_v26  ;;  %2004 = vmatprep.mubr.f32.mxu1 %v14471_v0 }
 0x148   : > { %10884 = vmatmul.mubr.msk.f32.vlgmr.msra.gmra.mxu0 %vm1304_vm1, %v11943_v59  ;;  %10888 = vmatmul.mubr.msk.f32.vlgmr.msra.gmra.mxu1 %vm1304_vm1, %v11943_v59 }
 0x149   : > { %1921 = vmatprep.mubr.f32.mxu0 %v14471_v0  ;;  %2010 = vmatprep.mubr.f32.mxu1 %v14471_v0 }
 0x14c   : > { %10885 = vmatmul.mubr.msk.f32.gmra.mxu0 %vm1304_vm1, %v11951_v1  ;;  %10889 = vmatmul.mubr.msk.f32.gmra.mxu1 %vm1304_vm1, %v11951_v1 }
 0x14d   : > { %1927 = vmatprep.mubr.f32.mxu0 %v14471_v0  ;;  %2016 = vmatprep.mubr.f32.mxu1 %v14471_v0 }
 0x150   : > { %10886 = vmatmul.mubr.msk.f32.gmra.mxu0 %vm1304_vm1, %v11969_v15  ;;  %10890 = vmatmul.mubr.msk.f32.gmra.mxu1 %vm1304_vm1, %v11969_v15 }
 0x151   : > { %1933 = vmatprep.mubr.f32.mxu0 %v14471_v0  ;;  %2022 = vmatprep.mubr.f32.mxu1 %v14471_v0 }
 0x154   : > { %10887 = vmatmul.mubr.msk.f32.gmra.mxu0 %vm1304_vm1, %v11999_v43  ;;  %10891 = vmatmul.mubr.msk.f32.gmra.mxu1 %vm1304_vm1, %v11999_v43 }
 0x155   : > { %2199 = vmatprep.mubr.f32.mxu0 %v14471_v0  ;;  %2288 = vmatprep.mubr.f32.mxu1 %v14471_v0 }
 0x1d2   : > { %v1383_v59 = vpop.f32.mrf.mxu0  ;;  %v1472_v1 = vpop.f32.mrf.mxu1 }
 0x1d3   : > { %v1384_v62 = vadd.f32 %v1383_v59, %v12163_v49  ;;  %v1473_v3 = vadd.f32 %v1472_v1, %v12163_v49 }
 0x1d4   : > { %v1385_v2 = vpop.f32.mrf.mxu0  ;;  %v1474_v30 = vpop.f32.mrf.mxu1 }
 0x1d5   : > { %v1386_v58 = vadd.f32 %v1385_v2, %v12163_v49  ;;  %v1475_v60 = vadd.f32 %v1474_v30, %v12163_v49  ;;  %v2029_v27 = vmax.f32 %v1384_v62, 0.0  ;;  %v2031_v8 = vmax.f32 %v1473_v3, 0.0  ;;  %v12189_v2 = vld [vmem:[#allocation2 + $0x28] sm:$0xff] }
 0x1d6   : > { %v1389_v33 = vpop.f32.mrf.mxu0  ;;  %v1478_v15 = vpop.f32.mrf.mxu1 }
 0x1d7   : > { %v1390_v52 = vadd.f32 %v1389_v33, %v12159_v47  ;;  %v1479_v53 = vadd.f32 %v1478_v15, %v12159_v47  ;;  %v2030_v10 = vmax.f32 %v1386_v58, 0.0  ;;  %v2032_v22 = vmax.f32 %v1475_v60, 0.0 }
 0x1d8   : > { %v1391_v34 = vpop.f32.mrf.mxu0  ;;  %v1480_v37 = vpop.f32.mrf.mxu1 }
 0x1d9   : > { %v1392_v24 = vadd.f32 %v1391_v34, %v12159_v47  ;;  %v1481_v50 = vadd.f32 %v1480_v37, %v12159_v47  ;;  %v2045_v17 = vmax.f32 %v1390_v52, 0.0  ;;  %v2047_v18 = vmax.f32 %v1479_v53, 0.0 }
 0x1da   : > { %v1395_v38 = vpop.f32.mrf.mxu0  ;;  %v1484_v39 = vpop.f32.mrf.mxu1 }
 0x1db   : > { %v1396_v48 = vadd.f32 %v1395_v38, %v12151_v42  ;;  %v1485_v14 = vadd.f32 %v1484_v39, %v12151_v42  ;;  %v2046_v11 = vmax.f32 %v1392_v24, 0.0  ;;  %v2048_v16 = vmax.f32 %v1481_v50, 0.0  ;;  %v12199_v39 = vld [vmem:[#allocation2 + $0x30] sm:$0xff] }
 0x1dc   : > { %v1397_v40 = vpop.f32.mrf.mxu0  ;;  %v1486_v41 = vpop.f32.mrf.mxu1 }
 0x1dd   : > { %v1398_v36 = vadd.f32 %v1397_v40, %v12151_v42  ;;  %v1487_v45 = vadd.f32 %v1486_v41, %v12151_v42  ;;  %v2061_v4 = vmax.f32 %v1396_v48, 0.0  ;;  %v2063_v6 = vmax.f32 %v1485_v14, 0.0 }
 0x1df   : > { %v2062_v61 = vmax.f32 %v1398_v36, 0.0  ;;  %v2064_v5 = vmax.f32 %v1487_v45, 0.0 }
 0x1e0   : > { %v1401_v43 = vpop.f32.mrf.mxu0  ;;  %v1490_v32 = vpop.f32.mrf.mxu1 }
 0x1e1   : > { %v1402_v44 = vadd.f32 %v1401_v43, %v12149_v31  ;;  %v1491_v20 = vadd.f32 %v1490_v32, %v12149_v31 }
 0x1e2   : > { %v1403_v35 = vpop.f32.mrf.mxu0  ;;  %v1492_v21 = vpop.f32.mrf.mxu1 }
 0x1e3   : > { %v1404_v46 = vadd.f32 %v1403_v35, %v12149_v31  ;;  %v1493_v12 = vadd.f32 %v1492_v21, %v12149_v31  ;;  %v2077_v54 = vmax.f32 %v1402_v44, 0.0  ;;  %v2079_v55 = vmax.f32 %v1491_v20, 0.0 }
 0x1e5   : > { %v2078_v51 = vmax.f32 %v1404_v46, 0.0  ;;  %v2080_v25 = vmax.f32 %v1493_v12, 0.0 }
 0x1e6   : > { %v12169_v56 = vpop.f32.mrf.mxu0  ;;  %v12171_v57 = vpop.f32.mrf.mxu1 }
 0x1e7   : > { %2159 = vmatprep.subr.mxu0 %v2078_v51  ;;  %2248 = vmatprep.subr.mxu1 %v2080_v25  ;;  %v1651_v62 = vadd.f32 %v12171_v57, %v12163_v49 }
 0x1e8   : > { %v12177_v7 = vpop.f32.mrf.mxu0  ;;  %v12179_v13 = vpop.f32.mrf.mxu1  ;;  %2160 = vmatpush1.msra.mxu0 %v2077_v54  ;;  %2249 = vmatpush1.msra.mxu1 %v2079_v55 }
 0x1e9   : > { %2161 = vmatprep.subr.mxu0 %v2062_v61  ;;  %2250 = vmatprep.subr.mxu1 %v2064_v5  ;;  %v1564_v52 = vadd.f32 %v12177_v7, %v12163_v49  ;;  %v1653_v53 = vadd.f32 %v12179_v13, %v12163_v49  ;;  %v12229_v61 = vld [vmem:[#allocation2 + $0x38] sm:$0xff]  ;;  %v1562_v5 = vadd.f32 %v12169_v56, %v12163_v49 }
 0x1ea   : > { %v1567_v23 = vpop.f32.mrf.mxu0  ;;  %v1656_v19 = vpop.f32.mrf.mxu1  ;;  %2162 = vmatpush1.msra.mxu0 %v2061_v4  ;;  %2251 = vmatpush1.msra.mxu1 %v2063_v6 }
 0x1eb   : > { %2163 = vmatprep.subr.mxu0 %v2046_v11  ;;  %2252 = vmatprep.subr.mxu1 %v2048_v16  ;;  %v1568_v24 = vadd.f32 %v1567_v23, %v12159_v47  ;;  %v1657_v50 = vadd.f32 %v1656_v19, %v12159_v47  ;;  %v2034_v56 = vmax.f32 %v1564_v52, 0.0  ;;  %v2036_v16 = vmax.f32 %v1653_v53, 0.0 }
 0x1ec   : > { %v1569_v28 = vpop.f32.mrf.mxu0  ;;  %v1658_v63 = vpop.f32.mrf.mxu1  ;;  %2164 = vmatpush1.msra.mxu0 %v2045_v17  ;;  %2253 = vmatpush1.msra.mxu1 %v2047_v18  ;;  %v2033_v18 = vmax.f32 %v1562_v5, 0.0  ;;  %v2035_v23 = vmax.f32 %v1651_v62, 0.0 }
 0x1ed   : > { %2165 = vmatprep.subr.mxu0 %v2030_v10  ;;  %2254 = vmatprep.subr.mxu1 %v2032_v22  ;;  %v1570_v36 = vadd.f32 %v1569_v28, %v12159_v47  ;;  %v1659_v45 = vadd.f32 %v1658_v63, %v12159_v47  ;;  %v2049_v13 = vmax.f32 %v1568_v24, 0.0  ;;  %v2051_v11 = vmax.f32 %v1657_v50, 0.0 }
 0x1ee   : > { %v1573_v29 = vpop.f32.mrf.mxu0  ;;  %v1662_v26 = vpop.f32.mrf.mxu1  ;;  %2166 = vmatpush1.msra.mxu0 %v2029_v27  ;;  %2255 = vmatpush1.msra.mxu1 %v2031_v8 }
 0x1ef   : > { %10896 = vmatmul.mubr.msk.f32.vlgmr.msra.gmra.mxu0 %vm1304_vm1, %v12181_v9  ;;  %10900 = vmatmul.mubr.msk.f32.vlgmr.msra.gmra.mxu1 %vm1304_vm1, %v12181_v9  ;;  %v1574_v44 = vadd.f32 %v1573_v29, %v12151_v42  ;;  %v1663_v20 = vadd.f32 %v1662_v26, %v12151_v42  ;;  %v2050_v3 = vmax.f32 %v1570_v36, 0.0  ;;  %v2052_v4 = vmax.f32 %v1659_v45, 0.0 }
 0x1f0   : > { %v1575_v59 = vpop.f32.mrf.mxu0  ;;  %v1664_v1 = vpop.f32.mrf.mxu1  ;;  %2205 = vmatprep.mubr.f32.mxu0 %v14471_v0  ;;  %2294 = vmatprep.mubr.f32.mxu1 %v14471_v0 }
 0x1f1   : > { %v1576_v40 = vadd.f32 %v1575_v59, %v12151_v42  ;;  %v1665_v41 = vadd.f32 %v1664_v1, %v12151_v42  ;;  %v2065_v54 = vmax.f32 %v1574_v44, 0.0  ;;  %v2067_v55 = vmax.f32 %v1663_v20, 0.0 }
 0x1f2   : > { %v1579_v30 = vpop.f32.mrf.mxu0  ;;  %v1668_v33 = vpop.f32.mrf.mxu1 }
 0x1f3   : > { %10897 = vmatmul.mubr.msk.f32.gmra.mxu0 %vm1304_vm1, %v12189_v2  ;;  %10901 = vmatmul.mubr.msk.f32.gmra.mxu1 %vm1304_vm1, %v12189_v2  ;;  %v1580_v15 = vadd.f32 %v1579_v30, %v12149_v31  ;;  %v1669_v34 = vadd.f32 %v1668_v33, %v12149_v31  ;;  %v2066_v51 = vmax.f32 %v1576_v40, 0.0  ;;  %v2068_v25 = vmax.f32 %v1665_v41, 0.0 }
 0x1f4   : > { %v1581_v37 = vpop.f32.mrf.mxu0  ;;  %v1670_v38 = vpop.f32.mrf.mxu1  ;;  %2211 = vmatprep.mubr.f32.mxu0 %v14471_v0  ;;  %2300 = vmatprep.mubr.f32.mxu1 %v14471_v0 }
 0x1f5   : > { %v1582_v43 = vadd.f32 %v1581_v37, %v12149_v31  ;;  %v1671_v32 = vadd.f32 %v1670_v38, %v12149_v31  ;;  %v2081_v46 = vmax.f32 %v1580_v15, 0.0  ;;  %v2083_v12 = vmax.f32 %v1669_v34, 0.0 }
 0x1f7   : > { %v2082_v35 = vmax.f32 %v1582_v43, 0.0  ;;  %v2084_v21 = vmax.f32 %v1671_v32, 0.0  ;;  %10898 = vmatmul.mubr.msk.f32.gmra.mxu0 %vm1304_vm1, %v12199_v39  ;;  %10902 = vmatmul.mubr.msk.f32.gmra.mxu1 %vm1304_vm1, %v12199_v39 }
 0x1f8   : > { %v12213_v48 = vpop.f32.mrf.mxu0  ;;  %v12215_v14 = vpop.f32.mrf.mxu1  ;;  %2217 = vmatprep.mubr.f32.mxu0 %v14471_v0  ;;  %2306 = vmatprep.mubr.f32.mxu1 %v14471_v0 }
 0x1f9   : > { %2337 = vmatprep.subr.mxu0 %v2082_v35  ;;  %2426 = vmatprep.subr.mxu1 %v2084_v21  ;;  %v1740_v62 = vadd.f32 %v12213_v48, %v12163_v49 }
 0x1fa   : > { %v12225_v58 = vpop.f32.mrf.mxu0  ;;  %v12227_v60 = vpop.f32.mrf.mxu1  ;;  %2338 = vmatpush1.msra.mxu0 %v2081_v46  ;;  %2427 = vmatpush1.msra.mxu1 %v2083_v12 }
 0x1fb   : > { %2339 = vmatprep.subr.mxu0 %v2066_v51  ;;  %2428 = vmatprep.subr.mxu1 %v2068_v25  ;;  %v1742_v25 = vadd.f32 %v12225_v58, %v12163_v49  ;;  %v1831_v52 = vadd.f32 %v12227_v60, %v12163_v49 }
 0x1fc   : > { %v12235_v6 = vpop.f32.mrf.mxu0  ;;  %v12237_v7 = vpop.f32.mrf.mxu1  ;;  %2340 = vmatpush1.msra.mxu0 %v2065_v54  ;;  %2429 = vmatpush1.msra.mxu1 %v2067_v55 }
 0x1fd   : > { %10899 = vmatmul.mubr.msk.f32.gmra.mxu0 %vm1304_vm1, %v12229_v61  ;;  %10903 = vmatmul.mubr.msk.f32.gmra.mxu1 %vm1304_vm1, %v12229_v61  ;;  %v1746_v50 = vadd.f32 %v12235_v6, %v12159_v47  ;;  %v1835_v51 = vadd.f32 %v12237_v7, %v12159_v47  ;;  %v2038_v48 = vmax.f32 %v1742_v25, 0.0 }
 0x1fe   : > { %v1747_v17 = vpop.f32.mrf.mxu0  ;;  %v1836_v57 = vpop.f32.mrf.mxu1  ;;  %2341 = vmatprep.subr.mxu0 %v2050_v3  ;;  %2430 = vmatprep.subr.mxu1 %v2052_v4  ;;  %v1829_v3 = vadd.f32 %v12215_v14, %v12163_v49 }
 0x1ff   : > { %2342 = vmatpush1.msra.mxu0 %v2049_v13  ;;  %2431 = vmatpush1.msra.mxu1 %v2051_v11  ;;  %v1748_v21 = vadd.f32 %v1747_v17, %v12159_v47  ;;  %v1837_v36 = vadd.f32 %v1836_v57, %v12159_v47  ;;  %v2053_v7 = vmax.f32 %v1746_v50, 0.0  ;;  %v2055_v13 = vmax.f32 %v1835_v51, 0.0 }
 0x200   : > { %v1751_v19 = vpop.f32.mrf.mxu0  ;;  %v1840_v10 = vpop.f32.mrf.mxu1  ;;  %2343 = vmatprep.subr.mxu0 %v2034_v56  ;;  %2432 = vmatprep.subr.mxu1 %v2036_v16  ;;  %v2040_v11 = vmax.f32 %v1831_v52, 0.0  ;;  %v2037_v16 = vmax.f32 %v1740_v62, 0.0  ;;  %v2039_v17 = vmax.f32 %v1829_v3, 0.0 }
 0x201   : > { %2344 = vmatpush1.msra.mxu0 %v2033_v18  ;;  %2377 = vmatprep.mubr.f32.mxu0 %v14471_v0  ;;  %v1752_v41 = vadd.f32 %v1751_v19, %v12151_v42  ;;  %v1841_v43 = vadd.f32 %v1840_v10, %v12151_v42  ;;  %v2054_v58 = vmax.f32 %v1748_v21, 0.0  ;;  %v2056_v4 = vmax.f32 %v1837_v36, 0.0  ;;  %v12373_v62 = vpop.permute.xlu0 %2120  ;;  %v12375_v3 = vpop.permute.xlu1 %2115 }
 0x202   : > { %v1753_v22 = vpop.f32.mrf.mxu0  ;;  %v1842_v27 = vpop.f32.mrf.mxu1  ;;  %2433 = vmatpush1.msra.mxu1 %v2035_v23  ;;  %2466 = vmatprep.mubr.f32.mxu1 %v14471_v0 }
 0x203   : > { %10904 = vmatmul.mubr.msk.f32.vlgmr.msra.gmra.mxu0 %vm1304_vm1, %v12181_v9  ;;  %10908 = vmatmul.mubr.msk.f32.vlgmr.msra.gmra.mxu1 %vm1304_vm1, %v12181_v9  ;;  %v1754_v33 = vadd.f32 %v1753_v22, %v12151_v42  ;;  %v1843_v15 = vadd.f32 %v1842_v27, %v12151_v42  ;;  %v2069_v53 = vmax.f32 %v1752_v41, 0.0  ;;  %v2071_v54 = vmax.f32 %v1841_v43, 0.0 }
 0x204   : > { %v1757_v8 = vpop.f32.mrf.mxu0  ;;  %v1846_v28 = vpop.f32.mrf.mxu1  ;;  %2383 = vmatprep.mubr.f32.mxu0 %v14471_v0  ;;  %2472 = vmatprep.mubr.f32.mxu1 %v14471_v0 }
 0x205   : > { %v1758_v63 = vadd.f32 %v1757_v8, %v12149_v31  ;;  %v1847_v59 = vadd.f32 %v1846_v28, %v12149_v31  ;;  %v2070_v45 = vmax.f32 %v1754_v33, 0.0  ;;  %v2072_v46 = vmax.f32 %v1843_v15, 0.0 }
 0x206   : > { %v1759_v29 = vpop.f32.mrf.mxu0  ;;  %v1848_v26 = vpop.f32.mrf.mxu1 }
 0x207   : > { %v1760_v1 = vadd.f32 %v1759_v29, %v12149_v31  ;;  %v1849_v30 = vadd.f32 %v1848_v26, %v12149_v31  ;;  %10905 = vmatmul.mubr.msk.f32.gmra.mxu0 %vm1304_vm1, %v12189_v2  ;;  %10909 = vmatmul.mubr.msk.f32.gmra.mxu1 %vm1304_vm1, %v12189_v2  ;;  %v2085_v20 = vmax.f32 %v1758_v63, 0.0  ;;  %v2087_v35 = vmax.f32 %v1847_v59, 0.0 }
 0x208   : > { %v12261_v34 = vpop.f32.mrf.mxu0  ;;  %v12263_v37 = vpop.f32.mrf.mxu1  ;;  %2389 = vmatprep.mubr.f32.mxu0 %v14471_v0  ;;  %2478 = vmatprep.mubr.f32.mxu1 %v14471_v0 }
 0x209   : > { %v2086_v38 = vmax.f32 %v1760_v1, 0.0  ;;  %v2088_v40 = vmax.f32 %v1849_v30, 0.0  ;;  %v1918_v36 = vadd.f32 %v12261_v34, %v12163_v49 }
 0x20a   : > { %v12269_v32 = vpop.f32.mrf.mxu0  ;;  %v12271_v44 = vpop.f32.mrf.mxu1 }
 0x20b   : > { %10906 = vmatmul.mubr.msk.f32.gmra.mxu0 %vm1304_vm1, %v12199_v39  ;;  %10910 = vmatmul.mubr.msk.f32.gmra.mxu1 %vm1304_vm1, %v12199_v39  ;;  %v1920_v43 = vadd.f32 %v12269_v32, %v12163_v49 }
 0x20c   : > { %2515 = vmatprep.subr.mxu0 %v2086_v38  ;;  %2604 = vmatprep.subr.mxu1 %v2088_v40  ;;  %v12279_v12 = vpop.f32.mrf.mxu0  ;;  %v12281_v24 = vpop.f32.mrf.mxu1 }
 0x20d   : > { %2516 = vmatpush1.msra.mxu0 %v2085_v20  ;;  %2605 = vmatpush1.msra.mxu1 %v2087_v35  ;;  %v1924_v41 = vadd.f32 %v12279_v12, %v12159_v47  ;;  %v2009_v20 = vadd.f32 %v12271_v44, %v12163_v49  ;;  %v2042_v34 = vmax.f32 %v1920_v43, 0.0 }
 0x20e   : > { %2517 = vmatprep.subr.mxu0 %v2070_v45  ;;  %2606 = vmatprep.subr.mxu1 %v2072_v46  ;;  %v1925_v55 = vpop.f32.mrf.mxu0  ;;  %v2014_v5 = vpop.f32.mrf.mxu1 }
 0x20f   : > { %2395 = vmatprep.mubr.f32.mxu0 %v14471_v0  ;;  %2484 = vmatprep.mubr.f32.mxu1 %v14471_v0  ;;  %v1926_v33 = vadd.f32 %v1925_v55, %v12159_v47  ;;  %v2015_v15 = vadd.f32 %v2014_v5, %v12159_v47  ;;  %v2057_v32 = vmax.f32 %v1924_v41, 0.0  ;;  %v2044_v12 = vmax.f32 %v2009_v20, 0.0 }
 0x210   : > { %2518 = vmatpush1.msra.mxu0 %v2069_v53  ;;  %2607 = vmatpush1.msra.mxu1 %v2071_v54  ;;  %v1929_v60 = vpop.f32.mrf.mxu0  ;;  %v2018_v6 = vpop.f32.mrf.mxu1 }
 0x211   : > { %10907 = vmatmul.mubr.msk.f32.gmra.mxu0 %vm1304_vm1, %v12229_v61  ;;  %10911 = vmatmul.mubr.msk.f32.gmra.mxu1 %vm1304_vm1, %v12229_v61  ;;  %v1930_v59 = vadd.f32 %v1929_v60, %v12151_v42  ;;  %v2058_v45 = vmax.f32 %v1926_v33, 0.0  ;;  %v2060_v46 = vmax.f32 %v2015_v15, 0.0 }
 0x212   : > { %2519 = vmatprep.subr.mxu0 %v2054_v58  ;;  %2608 = vmatprep.subr.mxu1 %v2056_v4  ;;  %v1931_v56 = vpop.f32.mrf.mxu0  ;;  %v2020_v14 = vpop.f32.mrf.mxu1 }
 0x213   : > { %2520 = vmatpush1.msra.mxu0 %v2053_v7  ;;  %2609 = vmatpush1.msra.mxu1 %v2055_v13  ;;  %v1932_v29 = vadd.f32 %v1931_v56, %v12151_v42  ;;  %v2021_v26 = vadd.f32 %v2020_v14, %v12151_v42  ;;  %v2073_v35 = vmax.f32 %v1930_v59, 0.0  ;;  %v12383_v14 = vpop.permute.xlu0 %2110 }
 0x214   : > { %2521 = vmatprep.subr.mxu0 %v2038_v48  ;;  %2610 = vmatprep.subr.mxu1 %v2040_v11  ;;  %v1935_v57 = vpop.f32.mrf.mxu0  ;;  %v2024_v18 = vpop.f32.mrf.mxu1 }
 0x215   : > { %2522 = vmatpush1.msra.mxu0 %v2037_v16  ;;  %2555 = vmatprep.mubr.f32.mxu0 %v14471_v0  ;;  %v1936_v27 = vadd.f32 %v1935_v57, %v12149_v31  ;;  %v2025_v8 = vadd.f32 %v2024_v18, %v12149_v31  ;;  %v2074_v38 = vmax.f32 %v1932_v29, 0.0  ;;  %v2076_v40 = vmax.f32 %v2021_v26, 0.0  ;;  %v12387_v57 = vpop.permute.xlu1 %2105 }
 0x216   : > { %2611 = vmatpush1.msra.mxu1 %v2039_v17  ;;  %2644 = vmatprep.mubr.f32.mxu1 %v14471_v0  ;;  %v1937_v23 = vpop.f32.mrf.mxu0  ;;  %v2026_v19 = vpop.f32.mrf.mxu1 }
 0x217   : > { %10912 = vmatmul.mubr.msk.f32.vlgmr.msra.gmra.mxu0 %vm1304_vm1, %v12181_v9  ;;  %10916 = vmatmul.mubr.msk.f32.vlgmr.msra.gmra.mxu1 %vm1304_vm1, %v12181_v9  ;;  %v1938_v10 = vadd.f32 %v1937_v23, %v12149_v31  ;;  %v2027_v22 = vadd.f32 %v2026_v19, %v12149_v31  ;;  %v2019_v31 = vadd.f32 %v2018_v6, %v12151_v42  ;;  %v2089_v1 = vmax.f32 %v1936_v27, 0.0 }
 0x218   : > { %2561 = vmatprep.mubr.f32.mxu0 %v14471_v0  ;;  %2650 = vmatprep.mubr.f32.mxu1 %v14471_v0  ;;  %v2091_v30 = vmax.f32 %v2025_v8, 0.0  ;;  %v2013_v42 = vadd.f32 %v12281_v24, %v12159_v47  ;;  %v2007_v47 = vadd.f32 %v12263_v37, %v12163_v49  ;;  %v2041_v24 = vmax.f32 %v1918_v36, 0.0 }
 0x219   : > { %v2090_v28 = vmax.f32 %v1938_v10, 0.0  ;;  %v2092_v63 = vmax.f32 %v2027_v22, 0.0  ;;  %v2075_v21 = vmax.f32 %v2019_v31, 0.0 }
 0x21a   : > { %v2059_v44 = vmax.f32 %v2013_v42, 0.0  ;;  %v2043_v49 = vmax.f32 %v2007_v47, 0.0 }
 0x21b   : > { %10913 = vmatmul.mubr.msk.f32.gmra.mxu0 %vm1304_vm1, %v12189_v2  ;;  %10917 = vmatmul.mubr.msk.f32.gmra.mxu1 %vm1304_vm1, %v12189_v2 }
 0x21c   : > { %2567 = vmatprep.mubr.f32.mxu0 %v14471_v0  ;;  %2656 = vmatprep.mubr.f32.mxu1 %v14471_v0 }
 0x21d   : > { %2693 = vmatprep.subr.mxu0 %v2090_v28  ;;  %2782 = vmatprep.subr.mxu1 %v2092_v63 }
 0x21e   : > { %2694 = vmatpush1.msra.mxu0 %v2089_v1  ;;  %2783 = vmatpush1.msra.mxu1 %v2091_v30 }
 0x21f   : > { %10914 = vmatmul.mubr.msk.f32.gmra.mxu0 %vm1304_vm1, %v12199_v39  ;;  %10918 = vmatmul.mubr.msk.f32.gmra.mxu1 %vm1304_vm1, %v12199_v39 }
 0x220   : > { %2695 = vmatprep.subr.mxu0 %v2074_v38  ;;  %2784 = vmatprep.subr.mxu1 %v2076_v40 }
 0x221   : > { %2573 = vmatprep.mubr.f32.mxu0 %v14471_v0  ;;  %2662 = vmatprep.mubr.f32.mxu1 %v14471_v0 }
 0x222   : > { %2696 = vmatpush1.msra.mxu0 %v2073_v35  ;;  %2785 = vmatpush1.msra.mxu1 %v2075_v21 }
 0x223   : > { %10915 = vmatmul.mubr.msk.f32.gmra.mxu0 %vm1304_vm1, %v12229_v61  ;;  %10919 = vmatmul.mubr.msk.f32.gmra.mxu1 %vm1304_vm1, %v12229_v61 }
 0x224   : > { %2697 = vmatprep.subr.mxu0 %v2058_v45  ;;  %2786 = vmatprep.subr.mxu1 %v2060_v46 }
 0x225   : > { %2698 = vmatpush1.msra.mxu0 %v2057_v32  ;;  %2787 = vmatpush1.msra.mxu1 %v2059_v44 }
 0x226   : > { %2699 = vmatprep.subr.mxu0 %v2042_v34  ;;  %2788 = vmatprep.subr.mxu1 %v2044_v12  ;;  %v12405_v12 = vld [vmem:[#allocation2 + $0x40] sm:$0xff] }
 0x227   : > { %2700 = vmatpush1.msra.mxu0 %v2041_v24  ;;  %2733 = vmatprep.mubr.f32.mxu0 %v14471_v0 }
 0x228   : > { %2789 = vmatpush1.msra.mxu1 %v2043_v49  ;;  %2822 = vmatprep.mubr.f32.mxu1 %v14471_v0 }
 0x229   : > { %10920 = vmatmul.mubr.msk.f32.vlgmr.msra.gmra.mxu0 %vm1304_vm1, %v12181_v9  ;;  %10924 = vmatmul.mubr.msk.f32.vlgmr.msra.gmra.mxu1 %vm1304_vm1, %v12181_v9 }
 0x22a   : > { %2739 = vmatprep.mubr.f32.mxu0 %v14471_v0  ;;  %2828 = vmatprep.mubr.f32.mxu1 %v14471_v0 }
 0x22d   : > { %10921 = vmatmul.mubr.msk.f32.gmra.mxu0 %vm1304_vm1, %v12189_v2  ;;  %10925 = vmatmul.mubr.msk.f32.gmra.mxu1 %vm1304_vm1, %v12189_v2 }
 0x22e   : > { %2745 = vmatprep.mubr.f32.mxu0 %v14471_v0  ;;  %2834 = vmatprep.mubr.f32.mxu1 %v14471_v0 }
 0x231   : > { %10922 = vmatmul.mubr.msk.f32.gmra.mxu0 %vm1304_vm1, %v12199_v39  ;;  %10926 = vmatmul.mubr.msk.f32.gmra.mxu1 %vm1304_vm1, %v12199_v39 }
 0x232   : > { %2751 = vmatprep.mubr.f32.mxu0 %v14471_v0  ;;  %2840 = vmatprep.mubr.f32.mxu1 %v14471_v0 }
 0x235   : > { %10923 = vmatmul.mubr.msk.f32.gmra.mxu0 %vm1304_vm1, %v12229_v61  ;;  %10927 = vmatmul.mubr.msk.f32.gmra.mxu1 %vm1304_vm1, %v12229_v61 }
 0x236   : > { %3017 = vmatprep.mubr.f32.mxu0 %v14471_v0  ;;  %3106 = vmatprep.mubr.f32.mxu1 %v14471_v0 }
 0x2af   : > { %v2201_v9 = vpop.f32.mrf.mxu0  ;;  %v2290_v2 = vpop.f32.mrf.mxu1 }
 0x2b0   : > { %v2202_v30 = vadd.f32 %v2201_v9, %v12387_v57  ;;  %v2291_v33 = vadd.f32 %v2290_v2, %v12387_v57 }
 0x2b1   : > { %v2203_v37 = vpop.f32.mrf.mxu0  ;;  %v2292_v50 = vpop.f32.mrf.mxu1 }
 0x2b2   : > { %v2204_v26 = vadd.f32 %v2203_v37, %v12387_v57  ;;  %v2293_v59 = vadd.f32 %v2292_v50, %v12387_v57  ;;  %v2847_v46 = vmax.f32 %v2202_v30, 0.0  ;;  %v2849_v32 = vmax.f32 %v2291_v33, 0.0  ;;  %v12413_v37 = vld [vmem:[#allocation2 + $0x48] sm:$0xff] }
 0x2b3   : > { %v2207_v51 = vpop.f32.mrf.mxu0  ;;  %v2296_v39 = vpop.f32.mrf.mxu1 }
 0x2b4   : > { %v2208_v22 = vadd.f32 %v2207_v51, %v12383_v14  ;;  %v2297_v27 = vadd.f32 %v2296_v39, %v12383_v14  ;;  %v2848_v47 = vmax.f32 %v2204_v26, 0.0  ;;  %v2850_v45 = vmax.f32 %v2293_v59, 0.0  ;;  %v12421_v39 = vld [vmem:[#allocation2 + $0x50] sm:$0xff] }
 0x2b5   : > { %v2209_v25 = vpop.f32.mrf.mxu0  ;;  %v2298_v52 = vpop.f32.mrf.mxu1 }
 0x2b6   : > { %v2210_v18 = vadd.f32 %v2209_v25, %v12383_v14  ;;  %v2299_v23 = vadd.f32 %v2298_v52, %v12383_v14  ;;  %v2863_v20 = vmax.f32 %v2208_v22, 0.0  ;;  %v2865_v35 = vmax.f32 %v2297_v27, 0.0 }
 0x2b7   : > { %v2213_v53 = vpop.f32.mrf.mxu0  ;;  %v2302_v54 = vpop.f32.mrf.mxu1 }
 0x2b8   : > { %v2214_v16 = vadd.f32 %v2213_v53, %v12375_v3  ;;  %v2303_v17 = vadd.f32 %v2302_v54, %v12375_v3  ;;  %v2864_v42 = vmax.f32 %v2210_v18, 0.0  ;;  %v2866_v43 = vmax.f32 %v2299_v23, 0.0 }
 0x2b9   : > { %v2215_v55 = vpop.f32.mrf.mxu0  ;;  %v2304_v5 = vpop.f32.mrf.mxu1 }
 0x2ba   : > { %v2216_v13 = vadd.f32 %v2215_v55, %v12375_v3  ;;  %v2305_v48 = vadd.f32 %v2304_v5, %v12375_v3  ;;  %v2879_v15 = vmax.f32 %v2214_v16, 0.0  ;;  %v2881_v38 = vmax.f32 %v2303_v17, 0.0 }
 0x2bc   : > { %v2880_v31 = vmax.f32 %v2216_v13, 0.0  ;;  %v2882_v1 = vmax.f32 %v2305_v48, 0.0 }
 0x2bd   : > { %v2219_v61 = vpop.f32.mrf.mxu0  ;;  %v2308_v58 = vpop.f32.mrf.mxu1 }
 0x2be   : > { %v2220_v4 = vadd.f32 %v2219_v61, %v12373_v62  ;;  %v2309_v60 = vadd.f32 %v2308_v58, %v12373_v62 }
 0x2bf   : > { %v2221_v6 = vpop.f32.mrf.mxu0  ;;  %v2310_v7 = vpop.f32.mrf.mxu1 }
 0x2c0   : > { %v2222_v11 = vadd.f32 %v2221_v6, %v12373_v62  ;;  %v2311_v56 = vadd.f32 %v2310_v7, %v12373_v62  ;;  %v2895_v8 = vmax.f32 %v2220_v4, 0.0  ;;  %v2897_v28 = vmax.f32 %v2309_v60, 0.0 }
 0x2c2   : > { %v2896_v19 = vmax.f32 %v2222_v11, 0.0  ;;  %v2898_v10 = vmax.f32 %v2311_v56, 0.0 }
 0x2c3   : > { %v12393_v63 = vpop.f32.mrf.mxu0  ;;  %v12395_v29 = vpop.f32.mrf.mxu1 }
 0x2c4   : > { %2977 = vmatprep.subr.mxu0 %v2896_v19  ;;  %3066 = vmatprep.subr.mxu1 %v2898_v10  ;;  %v2469_v30 = vadd.f32 %v12395_v29, %v12387_v57 }
 0x2c5   : > { %v12401_v40 = vpop.f32.mrf.mxu0  ;;  %v12403_v41 = vpop.f32.mrf.mxu1  ;;  %2978 = vmatpush1.msra.mxu0 %v2895_v8  ;;  %3067 = vmatpush1.msra.mxu1 %v2897_v28 }
 0x2c6   : > { %2979 = vmatprep.subr.mxu0 %v2880_v31  ;;  %3068 = vmatprep.subr.mxu1 %v2882_v1  ;;  %v2382_v22 = vadd.f32 %v12401_v40, %v12387_v57  ;;  %v2471_v27 = vadd.f32 %v12403_v41, %v12387_v57  ;;  %v12453_v31 = vld [vmem:[#allocation2 + $0x58] sm:$0xff]  ;;  %v2380_v1 = vadd.f32 %v12393_v63, %v12387_v57 }
 0x2c7   : > { %v2385_v21 = vpop.f32.mrf.mxu0  ;;  %v2474_v36 = vpop.f32.mrf.mxu1  ;;  %2980 = vmatpush1.msra.mxu0 %v2879_v15  ;;  %3069 = vmatpush1.msra.mxu1 %v2881_v38 }
 0x2c8   : > { %2981 = vmatprep.subr.mxu0 %v2864_v42  ;;  %3070 = vmatprep.subr.mxu1 %v2866_v43  ;;  %v2386_v18 = vadd.f32 %v2385_v21, %v12383_v14  ;;  %v2475_v23 = vadd.f32 %v2474_v36, %v12383_v14  ;;  %v2852_v63 = vmax.f32 %v2382_v22, 0.0  ;;  %v2854_v43 = vmax.f32 %v2471_v27, 0.0 }
 0x2c9   : > { %v2387_v44 = vpop.f32.mrf.mxu0  ;;  %v2476_v34 = vpop.f32.mrf.mxu1  ;;  %2982 = vmatpush1.msra.mxu0 %v2863_v20  ;;  %3071 = vmatpush1.msra.mxu1 %v2865_v35  ;;  %v2851_v35 = vmax.f32 %v2380_v1, 0.0  ;;  %v2853_v21 = vmax.f32 %v2469_v30, 0.0 }
 0x2ca   : > { %2983 = vmatprep.subr.mxu0 %v2848_v47  ;;  %3072 = vmatprep.subr.mxu1 %v2850_v45  ;;  %v2388_v13 = vadd.f32 %v2387_v44, %v12383_v14  ;;  %v2477_v48 = vadd.f32 %v2476_v34, %v12383_v14  ;;  %v2867_v41 = vmax.f32 %v2386_v18, 0.0  ;;  %v2869_v42 = vmax.f32 %v2475_v23, 0.0 }
 0x2cb   : > { %v2391_v24 = vpop.f32.mrf.mxu0  ;;  %v2480_v49 = vpop.f32.mrf.mxu1  ;;  %2984 = vmatpush1.msra.mxu0 %v2847_v46  ;;  %3073 = vmatpush1.msra.mxu1 %v2849_v32 }
 0x2cc   : > { %10932 = vmatmul.mubr.msk.f32.vlgmr.msra.gmra.mxu0 %vm1304_vm1, %v12405_v12  ;;  %10936 = vmatmul.mubr.msk.f32.vlgmr.msra.gmra.mxu1 %vm1304_vm1, %v12405_v12  ;;  %v2392_v4 = vadd.f32 %v2391_v24, %v12375_v3  ;;  %v2481_v60 = vadd.f32 %v2480_v49, %v12375_v3  ;;  %v2868_v33 = vmax.f32 %v2388_v13, 0.0  ;;  %v2870_v15 = vmax.f32 %v2477_v48, 0.0 }
 0x2cd   : > { %v2393_v9 = vpop.f32.mrf.mxu0  ;;  %v2482_v2 = vpop.f32.mrf.mxu1  ;;  %3023 = vmatprep.mubr.f32.mxu0 %v14471_v0  ;;  %3112 = vmatprep.mubr.f32.mxu1 %v14471_v0 }
 0x2ce   : > { %v2394_v25 = vadd.f32 %v2393_v9, %v12375_v3  ;;  %v2483_v5 = vadd.f32 %v2482_v2, %v12375_v3  ;;  %v2883_v8 = vmax.f32 %v2392_v4, 0.0  ;;  %v2885_v28 = vmax.f32 %v2481_v60, 0.0 }
 0x2d0   : > { %10933 = vmatmul.mubr.msk.f32.gmra.mxu0 %vm1304_vm1, %v12413_v37  ;;  %10937 = vmatmul.mubr.msk.f32.gmra.mxu1 %vm1304_vm1, %v12413_v37  ;;  %v2884_v19 = vmax.f32 %v2394_v25, 0.0  ;;  %v2886_v10 = vmax.f32 %v2483_v5, 0.0 }
 0x2d1   : > { %v2397_v50 = vpop.f32.mrf.mxu0  ;;  %v2486_v51 = vpop.f32.mrf.mxu1  ;;  %3029 = vmatprep.mubr.f32.mxu0 %v14471_v0  ;;  %3118 = vmatprep.mubr.f32.mxu1 %v14471_v0 }
 0x2d2   : > { %v2398_v52 = vadd.f32 %v2397_v50, %v12373_v62  ;;  %v2487_v53 = vadd.f32 %v2486_v51, %v12373_v62 }
 0x2d3   : > { %v2399_v54 = vpop.f32.mrf.mxu0  ;;  %v2488_v55 = vpop.f32.mrf.mxu1 }
 0x2d4   : > { %v2400_v61 = vadd.f32 %v2399_v54, %v12373_v62  ;;  %v2489_v58 = vadd.f32 %v2488_v55, %v12373_v62  ;;  %10934 = vmatmul.mubr.msk.f32.gmra.mxu0 %vm1304_vm1, %v12421_v39  ;;  %10938 = vmatmul.mubr.msk.f32.gmra.mxu1 %vm1304_vm1, %v12421_v39  ;;  %v2899_v11 = vmax.f32 %v2398_v52, 0.0  ;;  %v2901_v56 = vmax.f32 %v2487_v53, 0.0 }
 0x2d5   : > { %3035 = vmatprep.mubr.f32.mxu0 %v14471_v0  ;;  %3124 = vmatprep.mubr.f32.mxu1 %v14471_v0 }
 0x2d6   : > { %v2900_v6 = vmax.f32 %v2400_v61, 0.0  ;;  %v2902_v7 = vmax.f32 %v2489_v58, 0.0 }
 0x2d7   : > { %v12439_v16 = vpop.f32.mrf.mxu0  ;;  %v12441_v17 = vpop.f32.mrf.mxu1 }
 0x2d8   : > { %3155 = vmatprep.subr.mxu0 %v2900_v6  ;;  %3244 = vmatprep.subr.mxu1 %v2902_v7 }
 0x2d9   : > { %v12449_v26 = vpop.f32.mrf.mxu0  ;;  %v12451_v59 = vpop.f32.mrf.mxu1  ;;  %3156 = vmatpush1.msra.mxu0 %v2899_v11  ;;  %3245 = vmatpush1.msra.mxu1 %v2901_v56 }
 0x2da   : > { %3157 = vmatprep.subr.mxu0 %v2884_v19  ;;  %3246 = vmatprep.subr.mxu1 %v2886_v10  ;;  %v2560_v23 = vadd.f32 %v12449_v26, %v12387_v57  ;;  %v2649_v19 = vadd.f32 %v12451_v59, %v12387_v57  ;;  %v2647_v26 = vadd.f32 %v12441_v17, %v12387_v57 }
 0x2db   : > { %v12459_v38 = vpop.f32.mrf.mxu0  ;;  %v12461_v40 = vpop.f32.mrf.mxu1  ;;  %3158 = vmatpush1.msra.mxu0 %v2883_v8  ;;  %3247 = vmatpush1.msra.mxu1 %v2885_v28  ;;  %v2558_v28 = vadd.f32 %v12439_v16, %v12387_v57 }
 0x2dc   : > { %10935 = vmatmul.mubr.msk.f32.gmra.mxu0 %vm1304_vm1, %v12453_v31  ;;  %10939 = vmatmul.mubr.msk.f32.gmra.mxu1 %vm1304_vm1, %v12453_v31  ;;  %v2564_v56 = vadd.f32 %v12459_v38, %v12383_v14  ;;  %v2653_v18 = vadd.f32 %v12461_v40, %v12383_v14  ;;  %v2856_v16 = vmax.f32 %v2560_v23, 0.0  ;;  %v2858_v40 = vmax.f32 %v2649_v19, 0.0 }
 0x2dd   : > { %v2565_v20 = vpop.f32.mrf.mxu0  ;;  %v2654_v29 = vpop.f32.mrf.mxu1  ;;  %3159 = vmatprep.subr.mxu0 %v2868_v33  ;;  %3248 = vmatprep.subr.mxu1 %v2870_v15 }
 0x2de   : > { %3160 = vmatpush1.msra.mxu0 %v2867_v41  ;;  %3249 = vmatpush1.msra.mxu1 %v2869_v42  ;;  %v2566_v60 = vadd.f32 %v2565_v20, %v12383_v14  ;;  %v2655_v6 = vadd.f32 %v2654_v29, %v12383_v14  ;;  %v2871_v15 = vmax.f32 %v2564_v56, 0.0  ;;  %v2873_v38 = vmax.f32 %v2653_v18, 0.0 }
 0x2df   : > { %v2569_v36 = vpop.f32.mrf.mxu0  ;;  %v2658_v47 = vpop.f32.mrf.mxu1  ;;  %3161 = vmatprep.subr.mxu0 %v2852_v63  ;;  %3250 = vmatprep.subr.mxu1 %v2854_v43  ;;  %v2855_v42 = vmax.f32 %v2558_v28, 0.0  ;;  %v2857_v63 = vmax.f32 %v2647_v26, 0.0 }
 0x2e0   : > { %3162 = vmatpush1.msra.mxu0 %v2851_v35  ;;  %3195 = vmatprep.mubr.f32.mxu0 %v14471_v0  ;;  %v2570_v54 = vadd.f32 %v2569_v36, %v12375_v3  ;;  %v2659_v55 = vadd.f32 %v2658_v47, %v12375_v3  ;;  %v2872_v1 = vmax.f32 %v2566_v60, 0.0  ;;  %v2874_v59 = vmax.f32 %v2655_v6, 0.0 }
 0x2e1   : > { %v2571_v45 = vpop.f32.mrf.mxu0  ;;  %v2660_v46 = vpop.f32.mrf.mxu1  ;;  %3251 = vmatpush1.msra.mxu1 %v2853_v21  ;;  %3284 = vmatprep.mubr.f32.mxu1 %v14471_v0 }
 0x2e2   : > { %10940 = vmatmul.mubr.msk.f32.vlgmr.msra.gmra.mxu0 %vm1304_vm1, %v12405_v12  ;;  %10944 = vmatmul.mubr.msk.f32.vlgmr.msra.gmra.mxu1 %vm1304_vm1, %v12405_v12  ;;  %v2572_v51 = vadd.f32 %v2571_v45, %v12375_v3  ;;  %v2661_v25 = vadd.f32 %v2660_v46, %v12375_v3  ;;  %v2887_v10 = vmax.f32 %v2570_v54, 0.0  ;;  %v2889_v22 = vmax.f32 %v2659_v55, 0.0 }
 0x2e3   : > { %v2575_v32 = vpop.f32.mrf.mxu0  ;;  %v2664_v44 = vpop.f32.mrf.mxu1  ;;  %3201 = vmatprep.mubr.f32.mxu0 %v14471_v0  ;;  %3290 = vmatprep.mubr.f32.mxu1 %v14471_v0 }
 0x2e4   : > { %v2576_v34 = vadd.f32 %v2575_v32, %v12373_v62  ;;  %v2665_v9 = vadd.f32 %v2664_v44, %v12373_v62  ;;  %v2888_v7 = vmax.f32 %v2572_v51, 0.0  ;;  %v2890_v13 = vmax.f32 %v2661_v25, 0.0 }
 0x2e5   : > { %v2577_v24 = vpop.f32.mrf.mxu0  ;;  %v2666_v49 = vpop.f32.mrf.mxu1 }
 0x2e6   : > { %v2578_v2 = vadd.f32 %v2577_v24, %v12373_v62  ;;  %v2667_v50 = vadd.f32 %v2666_v49, %v12373_v62  ;;  %10941 = vmatmul.mubr.msk.f32.gmra.mxu0 %vm1304_vm1, %v12413_v37  ;;  %10945 = vmatmul.mubr.msk.f32.gmra.mxu1 %vm1304_vm1, %v12413_v37  ;;  %v2903_v58 = vmax.f32 %v2576_v34, 0.0  ;;  %v2905_v4 = vmax.f32 %v2665_v9, 0.0 }
 0x2e7   : > { %3207 = vmatprep.mubr.f32.mxu0 %v14471_v0  ;;  %3296 = vmatprep.mubr.f32.mxu1 %v14471_v0 }
 0x2e8   : > { %v2904_v52 = vmax.f32 %v2578_v2, 0.0  ;;  %v2906_v53 = vmax.f32 %v2667_v50, 0.0 }
 0x2e9   : > { %v12489_v5 = vpop.f32.mrf.mxu0  ;;  %v12491_v61 = vpop.f32.mrf.mxu1 }
 0x2ea   : > { %10942 = vmatmul.mubr.msk.f32.gmra.mxu0 %vm1304_vm1, %v12421_v39  ;;  %10946 = vmatmul.mubr.msk.f32.gmra.mxu1 %vm1304_vm1, %v12421_v39  ;;  %v2736_v6 = vadd.f32 %v12489_v5, %v12387_v57 }
 0x2eb   : > { %v12499_v48 = vpop.f32.mrf.mxu0  ;;  %v12501_v11 = vpop.f32.mrf.mxu1  ;;  %3333 = vmatprep.subr.mxu0 %v2904_v52  ;;  %3422 = vmatprep.subr.mxu1 %v2906_v53 }
 0x2ec   : > { %3334 = vmatpush1.msra.mxu0 %v2903_v58  ;;  %3423 = vmatpush1.msra.mxu1 %v2905_v4  ;;  %v2738_v55 = vadd.f32 %v12499_v48, %v12387_v57  ;;  %v2827_v58 = vadd.f32 %v12501_v11, %v12387_v57  ;;  %v2859_v18 = vmax.f32 %v2736_v6, 0.0 }
 0x2ed   : > { %v12511_v27 = vpop.f32.mrf.mxu0  ;;  %v12513_v8 = vpop.f32.mrf.mxu1  ;;  %3335 = vmatprep.subr.mxu0 %v2888_v7  ;;  %3424 = vmatprep.subr.mxu1 %v2890_v13 }
 0x2ee   : > { %3213 = vmatprep.mubr.f32.mxu0 %v14471_v0  ;;  %3302 = vmatprep.mubr.f32.mxu1 %v14471_v0  ;;  %v2742_v54 = vadd.f32 %v12511_v27, %v12383_v14  ;;  %v2860_v5 = vmax.f32 %v2738_v55, 0.0  ;;  %v2862_v56 = vmax.f32 %v2827_v58, 0.0 }
 0x2ef   : > { %v2743_v30 = vpop.f32.mrf.mxu0  ;;  %v2832_v33 = vpop.f32.mrf.mxu1  ;;  %3336 = vmatpush1.msra.mxu0 %v2887_v10  ;;  %3425 = vmatpush1.msra.mxu1 %v2889_v22 }
 0x2f0   : > { %10943 = vmatmul.mubr.msk.f32.gmra.mxu0 %vm1304_vm1, %v12453_v31  ;;  %10947 = vmatmul.mubr.msk.f32.gmra.mxu1 %vm1304_vm1, %v12453_v31  ;;  %v2833_v25 = vadd.f32 %v2832_v33, %v12383_v14  ;;  %v2875_v48 = vmax.f32 %v2742_v54, 0.0 }
 0x2f1   : > { %3337 = vmatprep.subr.mxu0 %v2872_v1  ;;  %3426 = vmatprep.subr.mxu1 %v2874_v59  ;;  %v2747_v41 = vpop.f32.mrf.mxu0  ;;  %v2836_v17 = vpop.f32.mrf.mxu1 }
 0x2f2   : > { %3338 = vmatpush1.msra.mxu0 %v2871_v15  ;;  %3427 = vmatpush1.msra.mxu1 %v2873_v38  ;;  %v2748_v9 = vadd.f32 %v2747_v41, %v12375_v3  ;;  %v2837_v2 = vadd.f32 %v2836_v17, %v12375_v3  ;;  %v2878_v13 = vmax.f32 %v2833_v25, 0.0  ;;  %v12597_v1 = vpop.permute.xlu0 %2938  ;;  %v12599_v59 = vpop.permute.xlu1 %2933 }
 0x2f3   : > { %3339 = vmatprep.subr.mxu0 %v2856_v16  ;;  %3428 = vmatprep.subr.mxu1 %v2858_v40  ;;  %v2749_v43 = vpop.f32.mrf.mxu0  ;;  %v2838_v20 = vpop.f32.mrf.mxu1 }
 0x2f4   : > { %3340 = vmatpush1.msra.mxu0 %v2855_v42  ;;  %3373 = vmatprep.mubr.f32.mxu0 %v14471_v0  ;;  %v2750_v44 = vadd.f32 %v2749_v43, %v12375_v3  ;;  %v2839_v34 = vadd.f32 %v2838_v20, %v12375_v3  ;;  %v2831_v3 = vadd.f32 %v12513_v8, %v12383_v14  ;;  %v2891_v4 = vmax.f32 %v2748_v9, 0.0 }
 0x2f5   : > { %3429 = vmatpush1.msra.mxu1 %v2857_v63  ;;  %3462 = vmatprep.mubr.f32.mxu1 %v14471_v0  ;;  %v2753_v29 = vpop.f32.mrf.mxu0  ;;  %v2842_v35 = vpop.f32.mrf.mxu1  ;;  %v2893_v60 = vmax.f32 %v2837_v2, 0.0 }
 0x2f6   : > { %10948 = vmatmul.mubr.msk.f32.vlgmr.msra.gmra.mxu0 %vm1304_vm1, %v12405_v12  ;;  %10952 = vmatmul.mubr.msk.f32.vlgmr.msra.gmra.mxu1 %vm1304_vm1, %v12405_v12  ;;  %v2754_v21 = vadd.f32 %v2753_v29, %v12373_v62  ;;  %v2843_v36 = vadd.f32 %v2842_v35, %v12373_v62  ;;  %v2892_v52 = vmax.f32 %v2750_v44, 0.0  ;;  %v2894_v53 = vmax.f32 %v2839_v34, 0.0  ;;  %v12607_v63 = vpop.permute.xlu0 %2928  ;;  %v12611_v29 = vpop.permute.xlu1 %2923 }
 0x2f7   : > { %v2755_v47 = vpop.f32.mrf.mxu0  ;;  %v2844_v45 = vpop.f32.mrf.mxu1  ;;  %3379 = vmatprep.mubr.f32.mxu0 %v14471_v0  ;;  %3468 = vmatprep.mubr.f32.mxu1 %v14471_v0  ;;  %v2877_v11 = vmax.f32 %v2831_v3, 0.0 }
 0x2f8   : > { %v2756_v46 = vadd.f32 %v2755_v47, %v12373_v62  ;;  %v2845_v32 = vadd.f32 %v2844_v45, %v12373_v62  ;;  %v2907_v50 = vmax.f32 %v2754_v21, 0.0  ;;  %v2909_v51 = vmax.f32 %v2843_v36, 0.0 }
 0x2f9   : > { %v2744_v62 = vadd.f32 %v2743_v30, %v12383_v14  ;;  %v2825_v14 = vadd.f32 %v12491_v61, %v12387_v57 }
 0x2fa   : > { %v2908_v24 = vmax.f32 %v2756_v46, 0.0  ;;  %v2910_v49 = vmax.f32 %v2845_v32, 0.0  ;;  %10949 = vmatmul.mubr.msk.f32.gmra.mxu0 %vm1304_vm1, %v12413_v37  ;;  %10953 = vmatmul.mubr.msk.f32.gmra.mxu1 %vm1304_vm1, %v12413_v37 }
 0x2fb   : > { %3385 = vmatprep.mubr.f32.mxu0 %v14471_v0  ;;  %3474 = vmatprep.mubr.f32.mxu1 %v14471_v0  ;;  %v2876_v7 = vmax.f32 %v2744_v62, 0.0  ;;  %v2861_v57 = vmax.f32 %v2825_v14, 0.0 }
 0x2fc   : > { %3511 = vmatprep.subr.mxu0 %v2908_v24  ;;  %3600 = vmatprep.subr.mxu1 %v2910_v49 }
 0x2fd   : > { %3512 = vmatpush1.msra.mxu0 %v2907_v50  ;;  %3601 = vmatpush1.msra.mxu1 %v2909_v51 }
 0x2fe   : > { %10950 = vmatmul.mubr.msk.f32.gmra.mxu0 %vm1304_vm1, %v12421_v39  ;;  %10954 = vmatmul.mubr.msk.f32.gmra.mxu1 %vm1304_vm1, %v12421_v39 }
 0x2ff   : > { %3513 = vmatprep.subr.mxu0 %v2892_v52  ;;  %3602 = vmatprep.subr.mxu1 %v2894_v53 }
 0x300   : > { %3391 = vmatprep.mubr.f32.mxu0 %v14471_v0  ;;  %3480 = vmatprep.mubr.f32.mxu1 %v14471_v0 }
 0x301   : > { %3514 = vmatpush1.msra.mxu0 %v2891_v4  ;;  %3603 = vmatpush1.msra.mxu1 %v2893_v60 }
 0x302   : > { %10951 = vmatmul.mubr.msk.f32.gmra.mxu0 %vm1304_vm1, %v12453_v31  ;;  %10955 = vmatmul.mubr.msk.f32.gmra.mxu1 %vm1304_vm1, %v12453_v31 }
 0x303   : > { %3515 = vmatprep.subr.mxu0 %v2876_v7  ;;  %3604 = vmatprep.subr.mxu1 %v2878_v13 }
 0x304   : > { %3516 = vmatpush1.msra.mxu0 %v2875_v48  ;;  %3605 = vmatpush1.msra.mxu1 %v2877_v11 }
 0x305   : > { %3517 = vmatprep.subr.mxu0 %v2860_v5  ;;  %3606 = vmatprep.subr.mxu1 %v2862_v56  ;;  %v12629_v56 = vld [vmem:[#allocation2 + $0x60] sm:$0xff] }
 0x306   : > { %3518 = vmatpush1.msra.mxu0 %v2859_v18  ;;  %3551 = vmatprep.mubr.f32.mxu0 %v14471_v0 }
 0x307   : > { %3607 = vmatpush1.msra.mxu1 %v2861_v57  ;;  %3640 = vmatprep.mubr.f32.mxu1 %v14471_v0 }
 0x308   : > { %10956 = vmatmul.mubr.msk.f32.vlgmr.msra.gmra.mxu0 %vm1304_vm1, %v12405_v12  ;;  %10960 = vmatmul.mubr.msk.f32.vlgmr.msra.gmra.mxu1 %vm1304_vm1, %v12405_v12 }
 0x309   : > { %3557 = vmatprep.mubr.f32.mxu0 %v14471_v0  ;;  %3646 = vmatprep.mubr.f32.mxu1 %v14471_v0 }
 0x30c   : > { %10957 = vmatmul.mubr.msk.f32.gmra.mxu0 %vm1304_vm1, %v12413_v37  ;;  %10961 = vmatmul.mubr.msk.f32.gmra.mxu1 %vm1304_vm1, %v12413_v37 }
 0x30d   : > { %3563 = vmatprep.mubr.f32.mxu0 %v14471_v0  ;;  %3652 = vmatprep.mubr.f32.mxu1 %v14471_v0 }
 0x310   : > { %10958 = vmatmul.mubr.msk.f32.gmra.mxu0 %vm1304_vm1, %v12421_v39  ;;  %10962 = vmatmul.mubr.msk.f32.gmra.mxu1 %vm1304_vm1, %v12421_v39 }
 0x311   : > { %3569 = vmatprep.mubr.f32.mxu0 %v14471_v0  ;;  %3658 = vmatprep.mubr.f32.mxu1 %v14471_v0 }
 0x314   : > { %10959 = vmatmul.mubr.msk.f32.gmra.mxu0 %vm1304_vm1, %v12453_v31  ;;  %10963 = vmatmul.mubr.msk.f32.gmra.mxu1 %vm1304_vm1, %v12453_v31 }
 0x315   : > { %3815 = vmatprep.mubr.f32.mxu0 %v14471_v0  ;;  %3904 = vmatprep.mubr.f32.mxu1 %v14471_v0 }
 0x38c   : > { %v3019_v12 = vpop.f32.mrf.mxu0  ;;  %v3108_v37 = vpop.f32.mrf.mxu1 }
 0x38d   : > { %v3020_v51 = vadd.f32 %v3019_v12, %v12611_v29  ;;  %v3109_v62 = vadd.f32 %v3108_v37, %v12611_v29 }
 0x38e   : > { %v3021_v61 = vpop.f32.mrf.mxu0  ;;  %v3110_v23 = vpop.f32.mrf.mxu1 }
 0x38f   : > { %v3022_v49 = vadd.f32 %v3021_v61, %v12611_v29  ;;  %v3111_v9 = vadd.f32 %v3110_v23, %v12611_v29  ;;  %v3665_v13 = vmax.f32 %v3020_v51, 0.0  ;;  %v3667_v48 = vmax.f32 %v3109_v62, 0.0  ;;  %v12637_v61 = vld [vmem:[#allocation2 + $0x68] sm:$0xff] }
 0x390   : > { %v3025_v19 = vpop.f32.mrf.mxu0  ;;  %v3114_v39 = vpop.f32.mrf.mxu1 }
 0x391   : > { %v3026_v45 = vadd.f32 %v3025_v19, %v12607_v63  ;;  %v3115_v46 = vadd.f32 %v3114_v39, %v12607_v63  ;;  %v3666_v14 = vmax.f32 %v3022_v49, 0.0  ;;  %v3668_v7 = vmax.f32 %v3111_v9, 0.0  ;;  %v12645_v39 = vld [vmem:[#allocation2 + $0x70] sm:$0xff] }
 0x392   : > { %v3027_v10 = vpop.f32.mrf.mxu0  ;;  %v3116_v22 = vpop.f32.mrf.mxu1 }
 0x393   : > { %v3028_v35 = vadd.f32 %v3027_v10, %v12607_v63  ;;  %v3117_v21 = vadd.f32 %v3116_v22, %v12607_v63  ;;  %v3681_v58 = vmax.f32 %v3026_v45, 0.0  ;;  %v3683_v4 = vmax.f32 %v3115_v46, 0.0 }
 0x394   : > { %v3031_v27 = vpop.f32.mrf.mxu0  ;;  %v3120_v8 = vpop.f32.mrf.mxu1 }
 0x395   : > { %v3032_v43 = vadd.f32 %v3031_v27, %v12599_v59  ;;  %v3121_v20 = vadd.f32 %v3120_v8, %v12599_v59  ;;  %v3682_v3 = vmax.f32 %v3028_v35, 0.0  ;;  %v3684_v55 = vmax.f32 %v3117_v21, 0.0 }
 0x396   : > { %v3033_v28 = vpop.f32.mrf.mxu0  ;;  %v3122_v26 = vpop.f32.mrf.mxu1 }
 0x397   : > { %v3034_v40 = vadd.f32 %v3033_v28, %v12599_v59  ;;  %v3123_v41 = vadd.f32 %v3122_v26, %v12599_v59  ;;  %v3697_v25 = vmax.f32 %v3032_v43, 0.0  ;;  %v3699_v52 = vmax.f32 %v3121_v20, 0.0 }
 0x399   : > { %v3698_v2 = vmax.f32 %v3034_v40, 0.0  ;;  %v3700_v50 = vmax.f32 %v3123_v41, 0.0 }
 0x39c   : > { %v3037_v31 = vpop.f32.mrf.mxu0  ;;  %v3126_v30 = vpop.f32.mrf.mxu1 }
 0x39d   : > { %v3038_v33 = vadd.f32 %v3037_v31, %v12597_v1  ;;  %v3127_v15 = vadd.f32 %v3126_v30, %v12597_v1 }
 0x39e   : > { %v3039_v38 = vpop.f32.mrf.mxu0  ;;  %v3128_v16 = vpop.f32.mrf.mxu1 }
 0x39f   : > { %v3040_v17 = vadd.f32 %v3039_v38, %v12597_v1  ;;  %v3129_v42 = vadd.f32 %v3128_v16, %v12597_v1  ;;  %v3713_v32 = vmax.f32 %v3038_v33, 0.0  ;;  %v3715_v44 = vmax.f32 %v3127_v15, 0.0 }
 0x3a1   : > { %v3714_v36 = vmax.f32 %v3040_v17, 0.0  ;;  %v3716_v47 = vmax.f32 %v3129_v42, 0.0 }
 0x3a2   : > { %v12617_v34 = vpop.f32.mrf.mxu0  ;;  %v12619_v24 = vpop.f32.mrf.mxu1 }
 0x3a3   : > { %3775 = vmatprep.subr.mxu0 %v3714_v36  ;;  %3864 = vmatprep.subr.mxu1 %v3716_v47  ;;  %v3287_v51 = vadd.f32 %v12619_v24, %v12611_v29 }
 0x3a4   : > { %v12625_v53 = vpop.f32.mrf.mxu0  ;;  %v12627_v54 = vpop.f32.mrf.mxu1  ;;  %3776 = vmatpush1.msra.mxu0 %v3713_v32  ;;  %3865 = vmatpush1.msra.mxu1 %v3715_v44 }
 0x3a5   : > { %3777 = vmatprep.subr.mxu0 %v3698_v2  ;;  %3866 = vmatprep.subr.mxu1 %v3700_v50  ;;  %v3200_v45 = vadd.f32 %v12625_v53, %v12611_v29  ;;  %v3289_v46 = vadd.f32 %v12627_v54, %v12611_v29  ;;  %v12677_v2 = vld [vmem:[#allocation2 + $0x78] sm:$0xff]  ;;  %v3198_v50 = vadd.f32 %v12617_v34, %v12611_v29 }
 0x3a6   : > { %v3203_v60 = vpop.f32.mrf.mxu0  ;;  %v3292_v6 = vpop.f32.mrf.mxu1  ;;  %3778 = vmatpush1.msra.mxu0 %v3697_v25  ;;  %3867 = vmatpush1.msra.mxu1 %v3699_v52 }
 0x3a7   : > { %3779 = vmatprep.subr.mxu0 %v3682_v3  ;;  %3868 = vmatprep.subr.mxu1 %v3684_v55  ;;  %v3204_v35 = vadd.f32 %v3203_v60, %v12607_v63  ;;  %v3293_v21 = vadd.f32 %v3292_v6, %v12607_v63  ;;  %v3670_v34 = vmax.f32 %v3200_v45, 0.0  ;;  %v3672_v55 = vmax.f32 %v3289_v46, 0.0 }
 0x3a8   : > { %v3205_v11 = vpop.f32.mrf.mxu0  ;;  %v3294_v5 = vpop.f32.mrf.mxu1  ;;  %3780 = vmatpush1.msra.mxu0 %v3681_v58  ;;  %3869 = vmatpush1.msra.mxu1 %v3683_v4  ;;  %v3669_v4 = vmax.f32 %v3198_v50, 0.0  ;;  %v3671_v60 = vmax.f32 %v3287_v51, 0.0 }
 0x3a9   : > { %3781 = vmatprep.subr.mxu0 %v3666_v14  ;;  %3870 = vmatprep.subr.mxu1 %v3668_v7  ;;  %v3206_v40 = vadd.f32 %v3205_v11, %v12607_v63  ;;  %v3295_v41 = vadd.f32 %v3294_v5, %v12607_v63  ;;  %v3685_v54 = vmax.f32 %v3204_v35, 0.0  ;;  %v3687_v3 = vmax.f32 %v3293_v21, 0.0 }
 0x3aa   : > { %v3209_v18 = vpop.f32.mrf.mxu0  ;;  %v3298_v57 = vpop.f32.mrf.mxu1  ;;  %3782 = vmatpush1.msra.mxu0 %v3665_v13  ;;  %3871 = vmatpush1.msra.mxu1 %v3667_v48 }
 0x3ab   : > { %10968 = vmatmul.mubr.msk.f32.vlgmr.msra.gmra.mxu0 %vm1304_vm1, %v12629_v56  ;;  %10972 = vmatmul.mubr.msk.f32.vlgmr.msra.gmra.mxu1 %vm1304_vm1, %v12629_v56  ;;  %v3210_v33 = vadd.f32 %v3209_v18, %v12599_v59  ;;  %v3299_v15 = vadd.f32 %v3298_v57, %v12599_v59  ;;  %v3686_v62 = vmax.f32 %v3206_v40, 0.0  ;;  %v3688_v25 = vmax.f32 %v3295_v41, 0.0 }
 0x3ac   : > { %v3211_v12 = vpop.f32.mrf.mxu0  ;;  %v3300_v37 = vpop.f32.mrf.mxu1  ;;  %3821 = vmatprep.mubr.f32.mxu0 %v14471_v0  ;;  %3910 = vmatprep.mubr.f32.mxu1 %v14471_v0 }
 0x3ad   : > { %v3212_v10 = vadd.f32 %v3211_v12, %v12599_v59  ;;  %v3301_v26 = vadd.f32 %v3300_v37, %v12599_v59  ;;  %v3701_v32 = vmax.f32 %v3210_v33, 0.0  ;;  %v3703_v44 = vmax.f32 %v3299_v15, 0.0 }
 0x3af   : > { %10969 = vmatmul.mubr.msk.f32.gmra.mxu0 %vm1304_vm1, %v12637_v61  ;;  %10973 = vmatmul.mubr.msk.f32.gmra.mxu1 %vm1304_vm1, %v12637_v61  ;;  %v3702_v36 = vmax.f32 %v3212_v10, 0.0  ;;  %v3704_v47 = vmax.f32 %v3301_v26, 0.0 }
 0x3b0   : > { %v3215_v23 = vpop.f32.mrf.mxu0  ;;  %v3304_v19 = vpop.f32.mrf.mxu1  ;;  %3827 = vmatprep.mubr.f32.mxu0 %v14471_v0  ;;  %3916 = vmatprep.mubr.f32.mxu1 %v14471_v0 }
 0x3b1   : > { %v3216_v22 = vadd.f32 %v3215_v23, %v12597_v1  ;;  %v3305_v27 = vadd.f32 %v3304_v19, %v12597_v1 }
 0x3b2   : > { %v3217_v8 = vpop.f32.mrf.mxu0  ;;  %v3306_v28 = vpop.f32.mrf.mxu1 }
 0x3b3   : > { %v3218_v31 = vadd.f32 %v3217_v8, %v12597_v1  ;;  %v3307_v30 = vadd.f32 %v3306_v28, %v12597_v1  ;;  %10970 = vmatmul.mubr.msk.f32.gmra.mxu0 %vm1304_vm1, %v12645_v39  ;;  %10974 = vmatmul.mubr.msk.f32.gmra.mxu1 %vm1304_vm1, %v12645_v39  ;;  %v3717_v17 = vmax.f32 %v3216_v22, 0.0  ;;  %v3719_v42 = vmax.f32 %v3305_v27, 0.0 }
 0x3b4   : > { %3833 = vmatprep.mubr.f32.mxu0 %v14471_v0  ;;  %3922 = vmatprep.mubr.f32.mxu1 %v14471_v0 }
 0x3b5   : > { %v3718_v38 = vmax.f32 %v3218_v31, 0.0  ;;  %v3720_v16 = vmax.f32 %v3307_v30, 0.0 }
 0x3b6   : > { %v12663_v43 = vpop.f32.mrf.mxu0  ;;  %v12665_v20 = vpop.f32.mrf.mxu1 }
 0x3b7   : > { %3953 = vmatprep.subr.mxu0 %v3718_v38  ;;  %4042 = vmatprep.subr.mxu1 %v3720_v16 }
 0x3b8   : > { %v12673_v49 = vpop.f32.mrf.mxu0  ;;  %v12675_v9 = vpop.f32.mrf.mxu1  ;;  %3954 = vmatpush1.msra.mxu0 %v3717_v17  ;;  %4043 = vmatpush1.msra.mxu1 %v3719_v42 }
 0x3b9   : > { %3955 = vmatprep.subr.mxu0 %v3702_v36  ;;  %4044 = vmatprep.subr.mxu1 %v3704_v47  ;;  %v3378_v21 = vadd.f32 %v12673_v49, %v12611_v29  ;;  %v3467_v36 = vadd.f32 %v12675_v9, %v12611_v29  ;;  %v3465_v49 = vadd.f32 %v12665_v20, %v12611_v29 }
 0x3ba   : > { %v12683_v52 = vpop.f32.mrf.mxu0  ;;  %v12685_v53 = vpop.f32.mrf.mxu1  ;;  %3956 = vmatpush1.msra.mxu0 %v3701_v32  ;;  %4045 = vmatpush1.msra.mxu1 %v3703_v44  ;;  %v3376_v44 = vadd.f32 %v12663_v43, %v12611_v29 }
 0x3bb   : > { %10971 = vmatmul.mubr.msk.f32.gmra.mxu0 %vm1304_vm1, %v12677_v2  ;;  %10975 = vmatmul.mubr.msk.f32.gmra.mxu1 %vm1304_vm1, %v12677_v2  ;;  %v3382_v42 = vadd.f32 %v12683_v52, %v12607_v63  ;;  %v3471_v35 = vadd.f32 %v12685_v53, %v12607_v63  ;;  %v3674_v43 = vmax.f32 %v3378_v21, 0.0  ;;  %v3676_v53 = vmax.f32 %v3467_v36, 0.0  ;;  %v11361_v21 = vld [vmem:[%s11659_s18 + $0x18] sm:$0xff]  ;;  %v11362_v36 = vld [vmem:[%s11659_s18] sm:$0xff] }
 0x3bc   : > { %v3383_v58 = vpop.f32.mrf.mxu0  ;;  %v3472_v24 = vpop.f32.mrf.mxu1  ;;  %3957 = vmatprep.subr.mxu0 %v3686_v62  ;;  %4046 = vmatprep.subr.mxu1 %v3688_v25 }
 0x3bd   : > { %3958 = vmatpush1.msra.mxu0 %v3685_v54  ;;  %4047 = vmatpush1.msra.mxu1 %v3687_v3  ;;  %v3384_v15 = vadd.f32 %v3383_v58, %v12607_v63  ;;  %v3473_v38 = vadd.f32 %v3472_v24, %v12607_v63  ;;  %v3689_v25 = vmax.f32 %v3382_v42, 0.0  ;;  %v3691_v52 = vmax.f32 %v3471_v35, 0.0 }
 0x3be   : > { %v3387_v6 = vpop.f32.mrf.mxu0  ;;  %v3476_v14 = vpop.f32.mrf.mxu1  ;;  %3959 = vmatprep.subr.mxu0 %v3670_v34  ;;  %4048 = vmatprep.subr.mxu1 %v3672_v55  ;;  %v3673_v3 = vmax.f32 %v3376_v44, 0.0  ;;  %v3675_v34 = vmax.f32 %v3465_v49, 0.0  ;;  %v11369_v44 = vld [vmem:[%s11659_s18 + $0x58] sm:$0xff]  ;;  %v12856_v49 = vld [vmem:[%s14483_s1 + $0x30] sm:$0xff] }
 0x3bf   : > { %3960 = vmatpush1.msra.mxu0 %v3669_v4  ;;  %3993 = vmatprep.mubr.f32.mxu0 %v14471_v0  ;;  %v3388_v8 = vadd.f32 %v3387_v6, %v12599_v59  ;;  %v3477_v28 = vadd.f32 %v3476_v14, %v12599_v59  ;;  %v3690_v50 = vmax.f32 %v3384_v15, 0.0  ;;  %v3692_v9 = vmax.f32 %v3473_v38, 0.0 }
 0x3c0   : > { %v3389_v7 = vpop.f32.mrf.mxu0  ;;  %v3478_v13 = vpop.f32.mrf.mxu1  ;;  %4049 = vmatpush1.msra.mxu1 %v3671_v60  ;;  %4082 = vmatprep.mubr.f32.mxu1 %v14471_v0 }
 0x3c1   : > { %10976 = vmatmul.mubr.msk.f32.vlgmr.msra.gmra.mxu0 %vm1304_vm1, %v12629_v56  ;;  %10980 = vmatmul.mubr.msk.f32.vlgmr.msra.gmra.mxu1 %vm1304_vm1, %v12629_v56  ;;  %v3390_v19 = vadd.f32 %v3389_v7, %v12599_v59  ;;  %v3479_v10 = vadd.f32 %v3478_v13, %v12599_v59  ;;  %v3705_v47 = vmax.f32 %v3388_v8, 0.0  ;;  %v3707_v45 = vmax.f32 %v3477_v28, 0.0 }
 0x3c2   : > { %v3393_v48 = vpop.f32.mrf.mxu0  ;;  %v3482_v11 = vpop.f32.mrf.mxu1  ;;  %3999 = vmatprep.mubr.f32.mxu0 %v14471_v0  ;;  %4088 = vmatprep.mubr.f32.mxu1 %v14471_v0 }
 0x3c3   : > { %v3394_v5 = vadd.f32 %v3393_v48, %v12597_v1  ;;  %v3483_v12 = vadd.f32 %v3482_v11, %v12597_v1  ;;  %v3706_v16 = vmax.f32 %v3390_v19, 0.0  ;;  %v3708_v40 = vmax.f32 %v3479_v10, 0.0 }
 0x3c4   : > { %v3395_v18 = vpop.f32.mrf.mxu0  ;;  %v3484_v57 = vpop.f32.mrf.mxu1 }
 0x3c5   : > { %v3396_v37 = vadd.f32 %v3395_v18, %v12597_v1  ;;  %v3485_v23 = vadd.f32 %v3484_v57, %v12597_v1  ;;  %10977 = vmatmul.mubr.msk.f32.gmra.mxu0 %vm1304_vm1, %v12637_v61  ;;  %10981 = vmatmul.mubr.msk.f32.gmra.mxu1 %vm1304_vm1, %v12637_v61  ;;  %v3721_v30 = vmax.f32 %v3394_v5, 0.0  ;;  %v3723_v33 = vmax.f32 %v3483_v12, 0.0 }
 0x3c6   : > { %4005 = vmatprep.mubr.f32.mxu0 %v14471_v0  ;;  %4094 = vmatprep.mubr.f32.mxu1 %v14471_v0 }
 0x3c7   : > { %v3722_v22 = vmax.f32 %v3396_v37, 0.0  ;;  %v3724_v27 = vmax.f32 %v3485_v23, 0.0 }
 0x3c8   : > { %v12713_v26 = vpop.f32.mrf.mxu0  ;;  %v12715_v31 = vpop.f32.mrf.mxu1 }
 0x3c9   : > { %10978 = vmatmul.mubr.msk.f32.gmra.mxu0 %vm1304_vm1, %v12645_v39  ;;  %10982 = vmatmul.mubr.msk.f32.gmra.mxu1 %vm1304_vm1, %v12645_v39  ;;  %v3554_v38 = vadd.f32 %v12713_v26, %v12611_v29 }
 0x3ca   : > { %v12723_v41 = vpop.f32.mrf.mxu0  ;;  %v12725_v17 = vpop.f32.mrf.mxu1  ;;  %4131 = vmatprep.subr.mxu0 %v3722_v22  ;;  %4220 = vmatprep.subr.mxu1 %v3724_v27 }
 0x3cb   : > { %4132 = vmatpush1.msra.mxu0 %v3721_v30  ;;  %4221 = vmatpush1.msra.mxu1 %v3723_v33  ;;  %v3556_v28 = vadd.f32 %v12723_v41, %v12611_v29  ;;  %v3645_v30 = vadd.f32 %v12725_v17, %v12611_v29  ;;  %v3677_v35 = vmax.f32 %v3554_v38, 0.0 }
 0x3cc   : > { %v12735_v46 = vpop.f32.mrf.mxu0  ;;  %v12737_v32 = vpop.f32.mrf.mxu1  ;;  %4133 = vmatprep.subr.mxu0 %v3706_v16  ;;  %4222 = vmatprep.subr.mxu1 %v3708_v40 }
 0x3cd   : > { %4011 = vmatprep.mubr.f32.mxu0 %v14471_v0  ;;  %4100 = vmatprep.mubr.f32.mxu1 %v14471_v0  ;;  %v3560_v8 = vadd.f32 %v12735_v46, %v12607_v63  ;;  %v3678_v26 = vmax.f32 %v3556_v28, 0.0  ;;  %v3680_v42 = vmax.f32 %v3645_v30, 0.0  ;;  %v11367_v46 = vld [vmem:[%s11659_s18 + $0x30] sm:$0xff] }
 0x3ce   : > { %v3561_v51 = vpop.f32.mrf.mxu0  ;;  %v3650_v62 = vpop.f32.mrf.mxu1  ;;  %4134 = vmatpush1.msra.mxu0 %v3705_v47  ;;  %4223 = vmatpush1.msra.mxu1 %v3707_v45  ;;  %v11363_v47 = vld [vmem:[%s11659_s18 + $0x10] sm:$0xff]  ;;  %v11365_v45 = vld [vmem:[%s11659_s18 + $0x38] sm:$0xff] }
 0x3cf   : > { %10979 = vmatmul.mubr.msk.f32.gmra.mxu0 %vm1304_vm1, %v12677_v2  ;;  %10983 = vmatmul.mubr.msk.f32.gmra.mxu1 %vm1304_vm1, %v12677_v2  ;;  %v3651_v10 = vadd.f32 %v3650_v62, %v12607_v63  ;;  %v3693_v41 = vmax.f32 %v3560_v8, 0.0  ;;  %v11372_v62 = vld [vmem:[%s11659_s18 + $0x68] sm:$0xff] }
 0x3d0   : > { %4135 = vmatprep.subr.mxu0 %v3690_v50  ;;  %4224 = vmatprep.subr.mxu1 %v3692_v9  ;;  %v3565_v54 = vpop.f32.mrf.mxu0  ;;  %v3654_v20 = vpop.f32.mrf.mxu1  ;;  %v10967_v50 = vld [vmem:[%s14483_s1 + $0x38] sm:$0xff]  ;;  %v11370_v9 = vld [vmem:[%s11659_s18 + $0x40] sm:$0xff] }
 0x3d1   : > { %4136 = vmatpush1.msra.mxu0 %v3689_v25  ;;  %4225 = vmatpush1.msra.mxu1 %v3691_v52  ;;  %v3566_v12 = vadd.f32 %v3565_v54, %v12599_v59  ;;  %v3655_v37 = vadd.f32 %v3654_v20, %v12599_v59  ;;  %v3696_v40 = vmax.f32 %v3651_v10, 0.0  ;;  %v11373_v25 = vld [vmem:[%s11659_s18 + $0x78] sm:$0xff]  ;;  %v11374_v52 = vld [vmem:[%s11659_s18 + $0x60] sm:$0xff] }
 0x3d2   : > { %4137 = vmatprep.subr.mxu0 %v3674_v43  ;;  %4226 = vmatprep.subr.mxu1 %v3676_v53  ;;  %v3567_v55 = vpop.f32.mrf.mxu0  ;;  %v3656_v58 = vpop.f32.mrf.mxu1  ;;  %v11375_v43 = vld [vmem:[%s11659_s18 + $0x70] sm:$0xff] }
 0x3d3   : > { %4138 = vmatpush1.msra.mxu0 %v3673_v3  ;;  %4171 = vmatprep.mubr.f32.mxu0 %v14471_v0  ;;  %v3568_v11 = vadd.f32 %v3567_v55, %v12599_v59  ;;  %v3657_v5 = vadd.f32 %v3656_v58, %v12599_v59  ;;  %v3649_v59 = vadd.f32 %v12737_v32, %v12607_v63  ;;  %v3709_v33 = vmax.f32 %v3566_v12, 0.0  ;;  %v11368_v32 = vld [vmem:[%s11659_s18 + $0x48] sm:$0xff] }
 0x3d4   : > { %4227 = vmatpush1.msra.mxu1 %v3675_v34  ;;  %4260 = vmatprep.mubr.f32.mxu1 %v14471_v0  ;;  %v3571_v24 = vpop.f32.mrf.mxu0  ;;  %v3660_v4 = vpop.f32.mrf.mxu1  ;;  %v3711_v15 = vmax.f32 %v3655_v37, 0.0 }
 0x3d5   : > { %10984 = vmatmul.mubr.msk.f32.vlgmr.msra.gmra.mxu0 %vm1304_vm1, %v12629_v56  ;;  %10988 = vmatmul.mubr.msk.f32.vlgmr.msra.gmra.mxu1 %vm1304_vm1, %v12629_v56  ;;  %v3572_v60 = vadd.f32 %v3571_v24, %v12597_v1  ;;  %v3661_v6 = vadd.f32 %v3660_v4, %v12597_v1  ;;  %v3710_v22 = vmax.f32 %v3568_v11, 0.0  ;;  %v3712_v27 = vmax.f32 %v3657_v5, 0.0 }
 0x3d6   : > { %v3573_v14 = vpop.f32.mrf.mxu0  ;;  %v3662_v7 = vpop.f32.mrf.mxu1  ;;  %4177 = vmatprep.mubr.f32.mxu0 %v14471_v0  ;;  %4266 = vmatprep.mubr.f32.mxu1 %v14471_v0  ;;  %v3695_v17 = vmax.f32 %v3649_v59, 0.0 }
 0x3d7   : > { %v3574_v13 = vadd.f32 %v3573_v14, %v12597_v1  ;;  %v3663_v48 = vadd.f32 %v3662_v7, %v12597_v1  ;;  %v3725_v23 = vmax.f32 %v3572_v60, 0.0  ;;  %v3727_v19 = vmax.f32 %v3661_v6, 0.0 }
 0x3d8   : > { %v3562_v1 = vadd.f32 %v3561_v51, %v12607_v63  ;;  %v3643_v63 = vadd.f32 %v12715_v31, %v12611_v29  ;;  %v11360_v31 = vld [vmem:[%s11659_s18 + $0x8] sm:$0xff]  ;;  %v11371_v51 = vld [vmem:[%s11659_s18 + $0x50] sm:$0xff] }
 0x3d9   : > { %v3726_v18 = vmax.f32 %v3574_v13, 0.0  ;;  %v3728_v57 = vmax.f32 %v3663_v48, 0.0  ;;  %10985 = vmatmul.mubr.msk.f32.gmra.mxu0 %vm1304_vm1, %v12637_v61  ;;  %10989 = vmatmul.mubr.msk.f32.gmra.mxu1 %vm1304_vm1, %v12637_v61 }
 0x3da   : > { %4183 = vmatprep.mubr.f32.mxu0 %v14471_v0  ;;  %4272 = vmatprep.mubr.f32.mxu1 %v14471_v0  ;;  %v3694_v16 = vmax.f32 %v3562_v1, 0.0  ;;  %v3679_v29 = vmax.f32 %v3643_v63, 0.0 }
 0x3db   : > { %4309 = vmatprep.subr.mxu0 %v3726_v18  ;;  %4398 = vmatprep.subr.mxu1 %v3728_v57 }
 0x3dc   : > { %4310 = vmatpush1.msra.mxu0 %v3725_v23  ;;  %4399 = vmatpush1.msra.mxu1 %v3727_v19 }
 0x3dd   : > { %10986 = vmatmul.mubr.msk.f32.gmra.mxu0 %vm1304_vm1, %v12645_v39  ;;  %10990 = vmatmul.mubr.msk.f32.gmra.mxu1 %vm1304_vm1, %v12645_v39 }
 0x3de   : > { %4311 = vmatprep.subr.mxu0 %v3710_v22  ;;  %4400 = vmatprep.subr.mxu1 %v3712_v27 }
 0x3df   : > { %4189 = vmatprep.mubr.f32.mxu0 %v14471_v0  ;;  %4278 = vmatprep.mubr.f32.mxu1 %v14471_v0 }
 0x3e0   : > { %4312 = vmatpush1.msra.mxu0 %v3709_v33  ;;  %4401 = vmatpush1.msra.mxu1 %v3711_v15 }
 0x3e1   : > { %10987 = vmatmul.mubr.msk.f32.gmra.mxu0 %vm1304_vm1, %v12677_v2  ;;  %10991 = vmatmul.mubr.msk.f32.gmra.mxu1 %vm1304_vm1, %v12677_v2 }
 0x3e2   : > { %4313 = vmatprep.subr.mxu0 %v3694_v16  ;;  %4402 = vmatprep.subr.mxu1 %v3696_v40 }
 0x3e3   : > { %4314 = vmatpush1.msra.mxu0 %v3693_v41  ;;  %4403 = vmatpush1.msra.mxu1 %v3695_v17 }
 0x3e4   : > { %4315 = vmatprep.subr.mxu0 %v3678_v26  ;;  %4404 = vmatprep.subr.mxu1 %v3680_v42 }
 0x3e5   : > { %4316 = vmatpush1.msra.mxu0 %v3677_v35  ;;  %4349 = vmatprep.mubr.f32.mxu0 %v14471_v0 }
 0x3e6   : > { %4405 = vmatpush1.msra.mxu1 %v3679_v29  ;;  %4438 = vmatprep.mubr.f32.mxu1 %v14471_v0 }
 0x3e7   : > { %10992 = vmatmul.mubr.msk.f32.vlgmr.msra.gmra.mxu0 %vm1304_vm1, %v12629_v56  ;;  %10996 = vmatmul.mubr.msk.f32.vlgmr.msra.gmra.mxu1 %vm1304_vm1, %v12629_v56  ;;  %v11364_v56 = vld [vmem:[%s11659_s18 + $0x28] sm:$0xff] }
 0x3e8   : > { %4355 = vmatprep.mubr.f32.mxu0 %v14471_v0  ;;  %4444 = vmatprep.mubr.f32.mxu1 %v14471_v0 }
 0x3e9   : > { %4505 = vmatprep.subr.mxu0 %v11360_v31  ;;  %4594 = vmatprep.subr.mxu1 %v11361_v21 }
 0x3ea   : > { %4506 = vmatpush1.msra.mxu0 %v11362_v36  ;;  %4595 = vmatpush1.msra.mxu1 %v11363_v47 }
 0x3eb   : > { %10993 = vmatmul.mubr.msk.f32.gmra.mxu0 %vm1304_vm1, %v12637_v61  ;;  %10997 = vmatmul.mubr.msk.f32.gmra.mxu1 %vm1304_vm1, %v12637_v61  ;;  %v12830_v61 = vld [vmem:[%s14483_s1 + $0x20] sm:$0xff] }
 0x3ec   : > { %4361 = vmatprep.mubr.f32.mxu0 %v14471_v0  ;;  %4450 = vmatprep.mubr.f32.mxu1 %v14471_v0 }
 0x3ed   : > { %4683 = vmatprep.subr.mxu0 %v11364_v56  ;;  %4772 = vmatprep.subr.mxu1 %v11365_v45 }
 0x3ef   : > { %10994 = vmatmul.mubr.msk.f32.gmra.mxu0 %vm1304_vm1, %v12645_v39  ;;  %10998 = vmatmul.mubr.msk.f32.gmra.mxu1 %vm1304_vm1, %v12645_v39  ;;  %v12841_v39 = vld [vmem:[%s14483_s1 + $0x28] sm:$0xff]  ;;  %s11424_s1 = scalar_lea.vmem %s11423_s15, 512 }
 0x3f0   : > { %4367 = vmatprep.mubr.f32.mxu0 %v14471_v0  ;;  %4456 = vmatprep.mubr.f32.mxu1 %v14471_v0 }
 0x3f3   : > { %10995 = vmatmul.mubr.msk.f32.gmra.mxu0 %vm1304_vm1, %v12677_v2  ;;  %10999 = vmatmul.mubr.msk.f32.gmra.mxu1 %vm1304_vm1, %v12677_v2  ;;  %v11366_v2 = vld [vmem:[%s11659_s18 + $0x20] sm:$0xff] }
 0x3f4   : > { %4539 = vmatprep.mubr.f32.mxu0 %v14471_v0  ;;  %4628 = vmatprep.mubr.f32.mxu1 %v14471_v0 }
 0x3f7   : > { %11000 = vmatmul.mubr.msk.f32.vlgmr.msra.gmra.mxu0 %vm486_vm0, %v12830_v61  ;;  %11004 = vmatmul.mubr.msk.f32.vlgmr.msra.gmra.mxu1 %vm486_vm0, %v12830_v61 }
 0x3f8   : > { %4545 = vmatprep.mubr.f32.mxu0 %v14471_v0  ;;  %4634 = vmatprep.mubr.f32.mxu1 %v14471_v0 }
 0x3f9   : > { %4684 = vmatpush1.msra.mxu0 %v11366_v2  ;;  %4773 = vmatpush1.msra.mxu1 %v11367_v46 }
 0x3fa   : > { %4861 = vmatprep.subr.mxu0 %v11368_v32  ;;  %4950 = vmatprep.subr.mxu1 %v11369_v44 }
 0x3fb   : > { %11001 = vmatmul.mubr.msk.f32.gmra.mxu0 %vm486_vm0, %v12841_v39  ;;  %11005 = vmatmul.mubr.msk.f32.gmra.mxu1 %vm486_vm0, %v12841_v39 }
 0x3fc   : > { %4551 = vmatprep.mubr.f32.mxu0 %v14471_v0  ;;  %4640 = vmatprep.mubr.f32.mxu1 %v14471_v0 }
 0x3ff   : > { %11002 = vmatmul.mubr.msk.f32.gmra.mxu0 %vm486_vm0, %v12856_v49  ;;  %11006 = vmatmul.mubr.msk.f32.gmra.mxu1 %vm486_vm0, %v12856_v49 }
 0x400   : > { %4557 = vmatprep.mubr.f32.mxu0 %v14471_v0  ;;  %4646 = vmatprep.mubr.f32.mxu1 %v14471_v0 }
 0x403   : > { %11003 = vmatmul.mubr.msk.f32.gmra.mxu0 %vm486_vm0, %v10967_v50  ;;  %11007 = vmatmul.mubr.msk.f32.gmra.mxu1 %vm486_vm0, %v10967_v50 }
 0x404   : > { %4717 = vmatprep.mubr.f32.mxu0 %v14471_v0  ;;  %4806 = vmatprep.mubr.f32.mxu1 %v14471_v0 }
 0x407   : > { %11008 = vmatmul.mubr.msk.f32.vlgmr.msra.gmra.mxu0 %vm486_vm0, %v12830_v61  ;;  %11012 = vmatmul.mubr.msk.f32.vlgmr.msra.gmra.mxu1 %vm486_vm0, %v12830_v61 }
 0x408   : > { %4723 = vmatprep.mubr.f32.mxu0 %v14471_v0  ;;  %4812 = vmatprep.mubr.f32.mxu1 %v14471_v0 }
 0x409   : > { %4862 = vmatpush1.msra.mxu0 %v11370_v9  ;;  %4951 = vmatpush1.msra.mxu1 %v11371_v51 }
 0x40a   : > { %5039 = vmatprep.subr.mxu0 %v11372_v62  ;;  %5128 = vmatprep.subr.mxu1 %v11373_v25 }
 0x40b   : > { %11009 = vmatmul.mubr.msk.f32.gmra.mxu0 %vm486_vm0, %v12841_v39  ;;  %11013 = vmatmul.mubr.msk.f32.gmra.mxu1 %vm486_vm0, %v12841_v39 }
 0x40c   : > { %4729 = vmatprep.mubr.f32.mxu0 %v14471_v0  ;;  %4818 = vmatprep.mubr.f32.mxu1 %v14471_v0 }
 0x40f   : > { %11010 = vmatmul.mubr.msk.f32.gmra.mxu0 %vm486_vm0, %v12856_v49  ;;  %11014 = vmatmul.mubr.msk.f32.gmra.mxu1 %vm486_vm0, %v12856_v49 }
 0x410   : > { %4735 = vmatprep.mubr.f32.mxu0 %v14471_v0  ;;  %4824 = vmatprep.mubr.f32.mxu1 %v14471_v0 }
 0x413   : > { %11011 = vmatmul.mubr.msk.f32.gmra.mxu0 %vm486_vm0, %v10967_v50  ;;  %11015 = vmatmul.mubr.msk.f32.gmra.mxu1 %vm486_vm0, %v10967_v50 }
 0x414   : > { %4895 = vmatprep.mubr.f32.mxu0 %v14471_v0  ;;  %4984 = vmatprep.mubr.f32.mxu1 %v14471_v0 }
 0x417   : > { %11016 = vmatmul.mubr.msk.f32.vlgmr.msra.gmra.mxu0 %vm486_vm0, %v12830_v61  ;;  %11020 = vmatmul.mubr.msk.f32.vlgmr.msra.gmra.mxu1 %vm486_vm0, %v12830_v61 }
 0x418   : > { %4901 = vmatprep.mubr.f32.mxu0 %v14471_v0  ;;  %4990 = vmatprep.mubr.f32.mxu1 %v14471_v0 }
 0x419   : > { %5040 = vmatpush1.msra.mxu0 %v11374_v52  ;;  %5129 = vmatpush1.msra.mxu1 %v11375_v43 }
 0x41b   : > { %11017 = vmatmul.mubr.msk.f32.gmra.mxu0 %vm486_vm0, %v12841_v39  ;;  %11021 = vmatmul.mubr.msk.f32.gmra.mxu1 %vm486_vm0, %v12841_v39 }
 0x41c   : > { %4907 = vmatprep.mubr.f32.mxu0 %v14471_v0  ;;  %4996 = vmatprep.mubr.f32.mxu1 %v14471_v0 }
 0x41f   : > { %11018 = vmatmul.mubr.msk.f32.gmra.mxu0 %vm486_vm0, %v12856_v49  ;;  %11022 = vmatmul.mubr.msk.f32.gmra.mxu1 %vm486_vm0, %v12856_v49 }
 0x420   : > { %4913 = vmatprep.mubr.f32.mxu0 %v14471_v0  ;;  %5002 = vmatprep.mubr.f32.mxu1 %v14471_v0 }
 0x423   : > { %11019 = vmatmul.mubr.msk.f32.gmra.mxu0 %vm486_vm0, %v10967_v50  ;;  %11023 = vmatmul.mubr.msk.f32.gmra.mxu1 %vm486_vm0, %v10967_v50 }
 0x424   : > { %5073 = vmatprep.mubr.f32.mxu0 %v14471_v0  ;;  %5162 = vmatprep.mubr.f32.mxu1 %v14471_v0 }
 0x427   : > { %11024 = vmatmul.mubr.msk.f32.vlgmr.msra.gmra.mxu0 %vm486_vm0, %v12830_v61  ;;  %11028 = vmatmul.mubr.msk.f32.vlgmr.msra.gmra.mxu1 %vm486_vm0, %v12830_v61 }
 0x428   : > { %5079 = vmatprep.mubr.f32.mxu0 %v14471_v0  ;;  %5168 = vmatprep.mubr.f32.mxu1 %v14471_v0 }
 0x42b   : > { %11025 = vmatmul.mubr.msk.f32.gmra.mxu0 %vm486_vm0, %v12841_v39  ;;  %11029 = vmatmul.mubr.msk.f32.gmra.mxu1 %vm486_vm0, %v12841_v39 }
 0x42c   : > { %5085 = vmatprep.mubr.f32.mxu0 %v14471_v0  ;;  %5174 = vmatprep.mubr.f32.mxu1 %v14471_v0 }
 0x42f   : > { %11026 = vmatmul.mubr.msk.f32.gmra.mxu0 %vm486_vm0, %v12856_v49  ;;  %11030 = vmatmul.mubr.msk.f32.gmra.mxu1 %vm486_vm0, %v12856_v49 }
 0x430   : > { %5091 = vmatprep.mubr.f32.mxu0 %v14471_v0  ;;  %5180 = vmatprep.mubr.f32.mxu1 %v14471_v0 }
 0x433   : > { %11027 = vmatmul.mubr.msk.f32.gmra.mxu0 %vm486_vm0, %v10967_v50  ;;  %11031 = vmatmul.mubr.msk.f32.gmra.mxu1 %vm486_vm0, %v10967_v50 }
 0x434   : > { %5446 = vmatprep.mubr.f32.mxu0 %v14471_v0  ;;  %5535 = vmatprep.mubr.f32.mxu1 %v14471_v0 }
 0x46b   : > { %v12943_v53 = vpop.f32.mrf.mxu0  ;;  %v12945_v54 = vpop.f32.mrf.mxu1 }
 0x46d   : > { %v12947_v20 = vpop.f32.mrf.mxu0  ;;  %v12949_v3 = vpop.f32.mrf.mxu1 }
 0x46f   : > { %v12951_v34 = vpop.f32.mrf.mxu0  ;;  %v12953_v55 = vpop.f32.mrf.mxu1 }
 0x471   : > { %v12955_v58 = vpop.f32.mrf.mxu0  ;;  %v12957_v24 = vpop.f32.mrf.mxu1 }
 0x473   : > { %v12959_v4 = vpop.f32.mrf.mxu0  ;;  %v12961_v60 = vpop.f32.mrf.mxu1 }
 0x475   : > { %v12963_v6 = vpop.f32.mrf.mxu0  ;;  %v12965_v14 = vpop.f32.mrf.mxu1 }
 0x47b   : > { %v12967_v7 = vpop.f32.mrf.mxu0  ;;  %v12969_v13 = vpop.f32.mrf.mxu1 }
 0x47d   : > { %v12971_v48 = vpop.f32.mrf.mxu0  ;;  %v12973_v11 = vpop.f32.mrf.mxu1 }
 0x481   : > { %v12975_v5 = vpop.f32.mrf.mxu0  ;;  %v12977_v18 = vpop.f32.mrf.mxu1 }
 0x483   : > { %v12979_v57 = vpop.f32.mrf.mxu0  ;;  %v12981_v12 = vpop.f32.mrf.mxu1 }
 0x485   : > { %v12983_v37 = vpop.f32.mrf.mxu0  ;;  %v12985_v23 = vpop.f32.mrf.mxu1 }
 0x487   : > { %v12987_v19 = vpop.f32.mrf.mxu0  ;;  %v12989_v1 = vpop.f32.mrf.mxu1 }
 0x489   : > { %v12991_v10 = vpop.f32.mrf.mxu0  ;;  %v12993_v22 = vpop.f32.mrf.mxu1 }
 0x48b   : > { %v12995_v27 = vpop.f32.mrf.mxu0  ;;  %v12997_v8 = vpop.f32.mrf.mxu1 }
 0x48f   : > { %v12999_v59 = vpop.f32.mrf.mxu0  ;;  %v13001_v28 = vpop.f32.mrf.mxu1 }
 0x491   : > { %v13003_v30 = vpop.f32.mrf.mxu0  ;;  %v13005_v33 = vpop.f32.mrf.mxu1 }
 0x495   : > { %v13007_v15 = vpop.f32.mrf.mxu0  ;;  %v13009_v38 = vpop.f32.mrf.mxu1 }
 0x496   : > { %14485 = vst [vmem:[#allocation11_spill] sm:$0xff] %v13007_v15  ;;  %14486 = vst [vmem:[#allocation12_spill] sm:$0xff] %v13009_v38  ;;  %v13071_v15 = vpop.permute.xlu0 %5209 }
 0x497   : > { %v13011_v63 = vpop.f32.mrf.mxu0  ;;  %v13013_v16 = vpop.f32.mrf.mxu1 }
 0x498   : > { %14487 = vst [vmem:[#allocation13_spill] sm:$0xff] %v13011_v63  ;;  %14488 = vst [vmem:[#allocation14_spill] sm:$0xff] %v13013_v16 }
 0x499   : > { %v13015_v40 = vpop.f32.mrf.mxu0  ;;  %v13017_v41 = vpop.f32.mrf.mxu1 }
 0x49a   : > { %14489 = vst [vmem:[#allocation15_spill] sm:$0xff] %v13015_v40  ;;  %14490 = vst [vmem:[#allocation16_spill] sm:$0xff] %v13017_v41 }
 0x49b   : > { %v13019_v17 = vpop.f32.mrf.mxu0  ;;  %v13021_v26 = vpop.f32.mrf.mxu1 }
 0x49c   : > { %14491 = vst [vmem:[#allocation17_spill] sm:$0xff] %v13019_v17  ;;  %14492 = vst [vmem:[#allocation18_spill] sm:$0xff] %v13021_v26  ;;  %v13077_v26 = vpop.permute.xlu1 %5204 }
 0x49d   : > { %v13023_v42 = vpop.f32.mrf.mxu0  ;;  %v13025_v35 = vpop.f32.mrf.mxu1 }
 0x49e   : > { %14493 = vst [vmem:[#allocation19_spill] sm:$0xff] %v13023_v42  ;;  %14494 = vst [vmem:[#allocation20_spill] sm:$0xff] %v13025_v35 }
 0x49f   : > { %v13027_v29 = vpop.f32.mrf.mxu0  ;;  %v13029_v31 = vpop.f32.mrf.mxu1 }
 0x4a1   : > { %v13031_v21 = vpop.f32.mrf.mxu0  ;;  %v13033_v36 = vpop.f32.mrf.mxu1 }
 0x4a3   : > { %v13035_v47 = vpop.f32.mrf.mxu0  ;;  %v13037_v56 = vpop.f32.mrf.mxu1 }
 0x4a7   : > { %v13039_v45 = vpop.f32.mrf.mxu0  ;;  %v13041_v61 = vpop.f32.mrf.mxu1 }
 0x4a8   : > { %14495 = vst [vmem:[#allocation21_spill] sm:$0xff] %v13039_v45  ;;  %14496 = vst [vmem:[#allocation22_spill] sm:$0xff] %v13041_v61 }
 0x4a9   : > { %v13043_v39 = vpop.f32.mrf.mxu0  ;;  %v13045_v2 = vpop.f32.mrf.mxu1 }
 0x4aa   : > { %14497 = vst [vmem:[#allocation23_spill] sm:$0xff] %v13043_v39  ;;  %14498 = vst [vmem:[#allocation24_spill] sm:$0xff] %v13045_v2 }
 0x4ab   : > { %v13047_v46 = vpop.f32.mrf.mxu0  ;;  %v13049_v32 = vpop.f32.mrf.mxu1 }
 0x4ac   : > { %14499 = vst [vmem:[#allocation25_spill] sm:$0xff] %v13047_v46  ;;  %14500 = vst [vmem:[#allocation26_spill] sm:$0xff] %v13049_v32 }
 0x4ad   : > { %v13051_v44 = vpop.f32.mrf.mxu0  ;;  %v13053_v49 = vpop.f32.mrf.mxu1 }
 0x4ae   : > { %14501 = vst [vmem:[#allocation27_spill] sm:$0xff] %v13051_v44  ;;  %14502 = vst [vmem:[#allocation28_spill] sm:$0xff] %v13053_v49 }
 0x4af   : > { %v13055_v50 = vpop.f32.mrf.mxu0  ;;  %v13057_v9 = vpop.f32.mrf.mxu1 }
 0x4b0   : > { %14503 = vst [vmem:[#allocation29_spill] sm:$0xff] %v13055_v50  ;;  %14504 = vst [vmem:[#allocation30_spill] sm:$0xff] %v13057_v9 }
 0x4b1   : > { %v13059_v51 = vpop.f32.mrf.mxu0  ;;  %v13061_v62 = vpop.f32.mrf.mxu1 }
 0x4b2   : > { %14505 = vst [vmem:[#allocation31_spill] sm:$0xff] %v13059_v51  ;;  %14506 = vst [vmem:[#allocation32_spill] sm:$0xff] %v13061_v62 }
 0x4b3   : > { %v13063_v25 = vpop.f32.mrf.mxu0  ;;  %v13065_v52 = vpop.f32.mrf.mxu1 }
 0x4b4   : > { %14507 = vst [vmem:[#allocation33_spill] sm:$0xff] %v13063_v25  ;;  %14508 = vst [vmem:[#allocation34_spill] sm:$0xff] %v13065_v52 }
 0x4b5   : > { %v13067_v43 = vpop.f32.mrf.mxu0  ;;  %v13069_v0 = vpop.f32.mrf.mxu1 }
 0x4b6   : > { %14509 = vst [vmem:[#allocation35_spill] sm:$0xff] %v13067_v43  ;;  %14510 = vst [vmem:[#allocation36_spill] sm:$0xff] %v13069_v0 }
 0x4b7   : > { %v4541_v2 = vpop.f32.mrf.mxu0  ;;  %v4630_v39 = vpop.f32.mrf.mxu1 }
 0x4b8   : > { %v4542_v42 = vadd.f32 %v4541_v2, %v12943_v53  ;;  %v13102_v2 = vpop.permute.xlu0 %5199 }
 0x4b9   : > { %v4543_v61 = vpop.f32.mrf.mxu0  ;;  %v4632_v45 = vpop.f32.mrf.mxu1 }
 0x4bb   : > { %v4547_v49 = vpop.f32.mrf.mxu0  ;;  %v4636_v44 = vpop.f32.mrf.mxu1 }
 0x4bc   : > { %v4548_v53 = vadd.f32 %v4547_v49, %v12951_v34 }
 0x4bd   : > { %v4549_v32 = vpop.f32.mrf.mxu0  ;;  %v4638_v46 = vpop.f32.mrf.mxu1 }
 0x4bf   : > { %v4553_v9 = vpop.f32.mrf.mxu0  ;;  %v4642_v51 = vpop.f32.mrf.mxu1 }
 0x4c0   : > { %v4554_v63 = vadd.f32 %v4553_v9, %v12959_v4  ;;  %v13114_v9 = vpop.permute.xlu1 %5194 }
 0x4c1   : > { %v4555_v50 = vpop.f32.mrf.mxu0  ;;  %v4644_v62 = vpop.f32.mrf.mxu1 }
 0x4c2   : > { %v4556_v43 = vadd.f32 %v4555_v50, %v12963_v6  ;;  %v4645_v0 = vadd.f32 %v4644_v62, %v12965_v14  ;;  %v4550_v6 = vadd.f32 %v4549_v32, %v12955_v58  ;;  %v4639_v14 = vadd.f32 %v4638_v46, %v12957_v24 }
 0x4c3   : > { %v4559_v38 = vpop.f32.mrf.mxu0  ;;  %v4648_v25 = vpop.f32.mrf.mxu1  ;;  %v4637_v58 = vadd.f32 %v4636_v44, %v12953_v55  ;;  %v5244_v34 = vadd.f32 %v13077_v26, %v4554_v63 }
 0x4c4   : > { %v4560_v52 = vadd.f32 %v4559_v38, %v12967_v7  ;;  %v4649_v41 = vadd.f32 %v4648_v25, %v12969_v13  ;;  %v4643_v7 = vadd.f32 %v4642_v51, %v12961_v60  ;;  %v5245_v24 = vadd.f32 %v13077_v26, %v4556_v43 }
 0x4c5   : > { %v4561_v40 = vpop.f32.mrf.mxu0  ;;  %v4650_v16 = vpop.f32.mrf.mxu1  ;;  %v5247_v60 = vadd.f32 %v13077_v26, %v4645_v0  ;;  %v5229_v55 = vadd.f32 %v13102_v2, %v4550_v6  ;;  %v5230_v63 = vadd.f32 %v13102_v2, %v4637_v58  ;;  %v5308_v43 = vmax.f32 %v5244_v34, 0.0 }
 0x4c6   : > { %v4562_v17 = vadd.f32 %v4561_v40, %v12971_v48  ;;  %v4651_v35 = vadd.f32 %v4650_v16, %v12973_v11  ;;  %v5260_v50 = vadd.f32 %v13071_v15, %v4560_v52  ;;  %v5262_v4 = vadd.f32 %v13071_v15, %v4649_v41 }
 0x4c7   : > { %v13086_v38 = vpop.f32.mrf.mxu0  ;;  %v13088_v13 = vpop.f32.mrf.mxu1  ;;  %v4631_v41 = vadd.f32 %v4630_v39, %v12945_v54  ;;  %v5246_v46 = vadd.f32 %v13077_v26, %v4643_v7  ;;  %v5231_v54 = vadd.f32 %v13102_v2, %v4639_v14  ;;  %v5309_v51 = vmax.f32 %v5245_v24, 0.0 }
 0x4c8   : > { %v5261_v48 = vadd.f32 %v13071_v15, %v4562_v17  ;;  %v5263_v11 = vadd.f32 %v13071_v15, %v4651_v35  ;;  %v4544_v17 = vadd.f32 %v4543_v61, %v12947_v20  ;;  %v4633_v35 = vadd.f32 %v4632_v45, %v12949_v3 }
 0x4c9   : > { %v13098_v16 = vpop.f32.mrf.mxu0  ;;  %v13100_v40 = vpop.f32.mrf.mxu1  ;;  %v5324_v39 = vmax.f32 %v5260_v50, 0.0  ;;  %v5326_v20 = vmax.f32 %v5262_v4, 0.0  ;;  %v5228_v3 = vadd.f32 %v13102_v2, %v4548_v53  ;;  %v5311_v62 = vmax.f32 %v5247_v60, 0.0 }
 0x4ca   : > { %v5325_v44 = vmax.f32 %v5261_v48, 0.0  ;;  %v5327_v49 = vmax.f32 %v5263_v11, 0.0  ;;  %v5213_v25 = vadd.f32 %v13114_v9, %v4544_v17  ;;  %v5215_v52 = vadd.f32 %v13114_v9, %v4633_v35 }
 0x4cb   : > { %v13110_v32 = vpop.f32.mrf.mxu0  ;;  %v13112_v0 = vpop.f32.mrf.mxu1  ;;  %v5212_v6 = vadd.f32 %v13114_v9, %v4542_v42  ;;  %v5214_v14 = vadd.f32 %v13114_v9, %v4631_v41  ;;  %v5310_v7 = vmax.f32 %v5246_v46, 0.0  ;;  %v5293_v48 = vmax.f32 %v5229_v55, 0.0 }
 0x4cc   : > { %5406 = vmatprep.subr.mxu0 %v5325_v44  ;;  %5495 = vmatprep.subr.mxu1 %v5327_v49  ;;  %v5295_v11 = vmax.f32 %v5231_v54, 0.0  ;;  %v5292_v53 = vmax.f32 %v5228_v3, 0.0  ;;  %v5294_v58 = vmax.f32 %v5230_v63, 0.0  ;;  %v5277_v17 = vmax.f32 %v5213_v25, 0.0  ;;  %v13125_v44 = vld [vmem:[#allocation2 + $0x80] sm:$0xff] }
 0x4cd   : > { %v4727_v45 = vpop.f32.mrf.mxu0  ;;  %v13119_v61 = vpop.f32.mrf.mxu1  ;;  %5407 = vmatpush1.msra.mxu0 %v5324_v39  ;;  %5496 = vmatpush1.msra.mxu1 %v5326_v20  ;;  %v5279_v35 = vmax.f32 %v5215_v52, 0.0  ;;  %v5276_v42 = vmax.f32 %v5212_v6, 0.0  ;;  %v5278_v34 = vmax.f32 %v5214_v14, 0.0  ;;  %v14511_v25 = vmov 0.0  }
 0x4ce   : > { %5408 = vmatprep.subr.mxu0 %v5309_v51  ;;  %5497 = vmatprep.subr.mxu1 %v5311_v62 }
 0x4cf   : > { %v4731_v50 = vpop.f32.mrf.mxu0  ;;  %v4820_v4 = vpop.f32.mrf.mxu1  ;;  %5409 = vmatpush1.msra.mxu0 %v5308_v43  ;;  %5498 = vmatpush1.msra.mxu1 %v5310_v7  ;;  %v4728_v43 = vadd.f32 %v4727_v45, %v12987_v19  ;;  %v4815_v19 = vadd.f32 %v13112_v0, %v12985_v23  ;;  %v4811_v23 = vadd.f32 %v13100_v40, %v12981_v12 }
 0x4d0   : > { %5410 = vmatprep.subr.mxu0 %v5293_v48  ;;  %5499 = vmatprep.subr.mxu1 %v5295_v11  ;;  %v4821_v52 = vadd.f32 %v4820_v4, %v12993_v22  ;;  %v4726_v22 = vadd.f32 %v13110_v32, %v12983_v37  ;;  %v4817_v4 = vadd.f32 %v13119_v61, %v12989_v1  ;;  %v13177_v1 = vld [vmem:[#allocation2 + $0x90] sm:$0xff] }
 0x4d1   : > { %v4733_v24 = vpop.f32.mrf.mxu0  ;;  %v4822_v60 = vpop.f32.mrf.mxu1  ;;  %5411 = vmatpush1.msra.mxu0 %v5292_v53  ;;  %5500 = vmatpush1.msra.mxu1 %v5294_v58  ;;  %v4720_v61 = vadd.f32 %v13086_v38, %v12975_v5  ;;  %v4809_v53 = vadd.f32 %v13088_v13, %v12977_v18  ;;  %v5233_v58 = vadd.f32 %v13102_v2, %v4728_v43 }
 0x4d2   : > { %5412 = vmatprep.subr.mxu0 %v5277_v17  ;;  %5501 = vmatprep.subr.mxu1 %v5279_v35  ;;  %v4734_v55 = vadd.f32 %v4733_v24, %v12995_v27  ;;  %v4823_v3 = vadd.f32 %v4822_v60, %v12997_v8  ;;  %v13145_v8 = vld [vmem:[#allocation2 + $0x88] sm:$0xff]  ;;  %v5250_v0 = vadd.f32 %v13077_v26, %v4821_v52 }
 0x4d3   : > { %v4737_v41 = vpop.f32.mrf.mxu0  ;;  %v4826_v46 = vpop.f32.mrf.mxu1  ;;  %5413 = vmatpush1.msra.mxu0 %v5276_v42  ;;  %5502 = vmatpush1.msra.mxu1 %v5278_v34  ;;  %v5232_v5 = vadd.f32 %v13102_v2, %v4726_v22  ;;  %v5235_v12 = vadd.f32 %v13102_v2, %v4817_v4  ;;  %v5234_v13 = vadd.f32 %v13102_v2, %v4815_v19 }
 0x4d4   : > { %v4738_v49 = vadd.f32 %v4737_v41, %v12999_v59  ;;  %v4827_v54 = vadd.f32 %v4826_v46, %v13001_v28  ;;  %11040 = vmatmul.mubr.msk.f32.vlgmr.msra.gmra.mxu0 %vm1304_vm1, %v13125_v44  ;;  %11044 = vmatmul.mubr.msk.f32.vlgmr.msra.gmra.mxu1 %vm1304_vm1, %v13125_v44  ;;  %v4732_v59 = vadd.f32 %v4731_v50, %v12991_v10  ;;  %v13199_v41 = vld [vmem:[#allocation2 + $0x98] sm:$0xff] }
 0x4d5   : > { %v4739_v39 = vpop.f32.mrf.mxu0  ;;  %v4828_v20 = vpop.f32.mrf.mxu1  ;;  %5452 = vmatprep.mubr.f32.mxu0 %v14511_v25  ;;  %5541 = vmatprep.mubr.f32.mxu1 %v14511_v25  ;;  %v4722_v10 = vadd.f32 %v13098_v16, %v12979_v57  ;;  %v5249_v6 = vadd.f32 %v13077_v26, %v4734_v55  ;;  %v5251_v48 = vadd.f32 %v13077_v26, %v4823_v3 }
 0x4d6   : > { %v4740_v63 = vadd.f32 %v4739_v39, %v13003_v30  ;;  %v4829_v27 = vadd.f32 %v4828_v20, %v13005_v33  ;;  %v5264_v28 = vadd.f32 %v13071_v15, %v4738_v49  ;;  %v5266_v14 = vadd.f32 %v13071_v15, %v4827_v54 }
 0x4d7   : > { %v13139_v51 = vpop.f32.mrf.mxu0  ;;  %v13141_v62 = vpop.f32.mrf.mxu1  ;;  %v5248_v16 = vadd.f32 %v13077_v26, %v4732_v59  ;;  %v5313_v35 = vmax.f32 %v5249_v6, 0.0  ;;  %v5315_v18 = vmax.f32 %v5251_v48, 0.0  ;;  %v5217_v38 = vadd.f32 %v13114_v9, %v4722_v10 }
 0x4d8   : > { %v5265_v30 = vadd.f32 %v13071_v15, %v4740_v63  ;;  %v5267_v33 = vadd.f32 %v13071_v15, %v4829_v27  ;;  %11041 = vmatmul.mubr.msk.f32.gmra.mxu0 %vm1304_vm1, %v13145_v8  ;;  %11045 = vmatmul.mubr.msk.f32.gmra.mxu1 %vm1304_vm1, %v13145_v8  ;;  %v5328_v45 = vmax.f32 %v5264_v28, 0.0  ;;  %v5330_v24 = vmax.f32 %v5266_v14, 0.0 }
 0x4d9   : > { %v13155_v7 = vpop.f32.mrf.mxu0  ;;  %v13157_v50 = vpop.f32.mrf.mxu1  ;;  %5458 = vmatprep.mubr.f32.mxu0 %v14511_v25  ;;  %5547 = vmatprep.mubr.f32.mxu1 %v14511_v25  ;;  %v5312_v40 = vmax.f32 %v5248_v16, 0.0  ;;  %v5216_v46 = vadd.f32 %v13114_v9, %v4720_v61  ;;  %v5219_v55 = vadd.f32 %v13114_v9, %v4811_v23  ;;  %v5314_v49 = vmax.f32 %v5250_v0, 0.0 }
 0x4da   : > { %v5329_v57 = vmax.f32 %v5265_v30, 0.0  ;;  %v5331_v32 = vmax.f32 %v5267_v33, 0.0  ;;  %v5218_v54 = vadd.f32 %v13114_v9, %v4809_v53  ;;  %v5297_v39 = vmax.f32 %v5233_v58, 0.0  ;;  %v14514_v58 = vld [vmem:[#allocation17_spill] sm:$0xff] }
 0x4db   : > { %v13171_v11 = vpop.f32.mrf.mxu0  ;;  %v13173_v37 = vpop.f32.mrf.mxu1  ;;  %v5296_v63 = vmax.f32 %v5232_v5, 0.0  ;;  %v5299_v27 = vmax.f32 %v5235_v12, 0.0  ;;  %v5298_v59 = vmax.f32 %v5234_v13, 0.0  ;;  %v5281_v28 = vmax.f32 %v5217_v38, 0.0  ;;  %v14515_v12 = vld [vmem:[#allocation13_spill] sm:$0xff]  ;;  %v14516_v38 = vld [vmem:[#allocation18_spill] sm:$0xff] }
 0x4dc   : > { %5584 = vmatprep.subr.mxu0 %v5329_v57  ;;  %5673 = vmatprep.subr.mxu1 %v5331_v32  ;;  %v5280_v33 = vmax.f32 %v5216_v46, 0.0  ;;  %v5283_v10 = vmax.f32 %v5219_v55, 0.0  ;;  %v5282_v43 = vmax.f32 %v5218_v54, 0.0  ;;  %v14517_v55 = vld [vmem:[#allocation14_spill] sm:$0xff] }
 0x4dd   : > { %v13187_v60 = vpop.f32.mrf.mxu0  ;;  %v13189_v17 = vpop.f32.mrf.mxu1  ;;  %5585 = vmatpush1.msra.mxu0 %v5328_v45  ;;  %11046 = vmatmul.mubr.msk.f32.gmra.mxu1 %vm1304_vm1, %v13177_v1 }
 0x4de   : > { %11042 = vmatmul.mubr.msk.f32.gmra.mxu0 %vm1304_vm1, %v13177_v1  ;;  %5674 = vmatpush1.msra.mxu1 %v5330_v24  ;;  %v4906_v24 = vadd.f32 %v13187_v60, %v14514_v58  ;;  %v4995_v13 = vadd.f32 %v13189_v17, %v14516_v38  ;;  %v4989_v60 = vadd.f32 %v13157_v50, %v14517_v55  ;;  %v14522_v58 = vld [vmem:[#allocation33_spill] sm:$0xff] }
 0x4df   : > { %5586 = vmatprep.subr.mxu0 %v5313_v35  ;;  %v4909_v42 = vpop.f32.mrf.mxu0  ;;  %v4998_v34 = vpop.f32.mrf.mxu1  ;;  %5675 = vmatprep.subr.mxu1 %v5315_v18  ;;  %v4900_v18 = vadd.f32 %v13155_v7, %v14515_v12  ;;  %v14524_v12 = vld [vmem:[#allocation31_spill] sm:$0xff] }
 0x4e0   : > { %5464 = vmatprep.mubr.f32.mxu0 %v14511_v25  ;;  %5553 = vmatprep.mubr.f32.mxu1 %v14511_v25 }
 0x4e1   : > { %5587 = vmatpush1.msra.mxu0 %v5312_v40  ;;  %v4911_v20 = vpop.f32.mrf.mxu0  ;;  %v5000_v3 = vpop.f32.mrf.mxu1  ;;  %5676 = vmatpush1.msra.mxu1 %v5314_v49  ;;  %v14518_v49 = vld [vmem:[#allocation15_spill] sm:$0xff] }
 0x4e2   : > { %11043 = vmatmul.mubr.msk.f32.gmra.mxu0 %vm1304_vm1, %v13199_v41  ;;  %11047 = vmatmul.mubr.msk.f32.gmra.mxu1 %vm1304_vm1, %v13199_v41  ;;  %v4912_v48 = vadd.f32 %v4911_v20, %v13027_v29  ;;  %v5001_v16 = vadd.f32 %v5000_v3, %v13029_v31  ;;  %v4904_v54 = vadd.f32 %v13171_v11, %v14518_v49  ;;  %v14526_v49 = vld [vmem:[#allocation32_spill] sm:$0xff] }
 0x4e3   : > { %5588 = vmatprep.subr.mxu0 %v5297_v39  ;;  %v4915_v52 = vpop.f32.mrf.mxu0  ;;  %v5004_v30 = vpop.f32.mrf.mxu1  ;;  %5677 = vmatprep.subr.mxu1 %v5299_v27  ;;  %v14519_v39 = vld [vmem:[#allocation16_spill] sm:$0xff] }
 0x4e4   : > { %5589 = vmatpush1.msra.mxu0 %v5296_v63  ;;  %5678 = vmatpush1.msra.mxu1 %v5298_v59  ;;  %v4916_v6 = vadd.f32 %v4915_v52, %v13031_v21  ;;  %v5005_v14 = vadd.f32 %v5004_v30, %v13033_v36  ;;  %v14512_v36 = vld [vmem:[#allocation19_spill] sm:$0xff]  ;;  %v5253_v35 = vadd.f32 %v13077_v26, %v4912_v48  ;;  %v14521_v52 = vld [vmem:[#allocation12_spill] sm:$0xff] }
 0x4e5   : > { %5590 = vmatprep.subr.mxu0 %v5281_v28  ;;  %v4917_v22 = vpop.f32.mrf.mxu0  ;;  %v5006_v4 = vpop.f32.mrf.mxu1  ;;  %5679 = vmatprep.subr.mxu1 %v5283_v10  ;;  %v4910_v32 = vadd.f32 %v4909_v42, %v14512_v36  ;;  %v5255_v40 = vadd.f32 %v13077_v26, %v5001_v16  ;;  %v4993_v20 = vadd.f32 %v13173_v37, %v14519_v39  ;;  %v14520_v37 = vld [vmem:[#allocation11_spill] sm:$0xff] }
 0x4e6   : > { %5591 = vmatpush1.msra.mxu0 %v5280_v33  ;;  %v4918_v57 = vadd.f32 %v4917_v22, %v13035_v47  ;;  %v5007_v19 = vadd.f32 %v5006_v4, %v13037_v56  ;;  %5624 = vmatprep.mubr.f32.mxu0 %v14511_v25  ;;  %v14513_v56 = vld [vmem:[#allocation20_spill] sm:$0xff]  ;;  %v5268_v61 = vadd.f32 %v13071_v15, %v4916_v6  ;;  %v5317_v28 = vmax.f32 %v5253_v35, 0.0  ;;  %v14523_v35 = vld [vmem:[#allocation29_spill] sm:$0xff]  ;;  %v14527_v39 = vld [vmem:[#allocation35_spill] sm:$0xff] }
 0x4e7   : > { %5680 = vmatpush1.msra.mxu1 %v5282_v43  ;;  %v13217_v45 = vpop.f32.mrf.mxu0  ;;  %v13219_v21 = vpop.f32.mrf.mxu1  ;;  %5713 = vmatprep.mubr.f32.mxu1 %v14511_v25  ;;  %v4999_v31 = vadd.f32 %v4998_v34, %v14513_v56  ;;  %v5270_v23 = vadd.f32 %v13071_v15, %v5005_v14  ;;  %v5252_v7 = vadd.f32 %v13077_v26, %v4910_v32  ;;  %v5319_v10 = vmax.f32 %v5255_v40, 0.0 }
 0x4e8   : > { %11048 = vmatmul.mubr.msk.f32.vlgmr.msra.gmra.mxu0 %vm1304_vm1, %v13125_v44  ;;  %v5269_v29 = vadd.f32 %v13071_v15, %v4918_v57  ;;  %v5271_v47 = vadd.f32 %v13071_v15, %v5007_v19  ;;  %11052 = vmatmul.mubr.msk.f32.vlgmr.msra.gmra.mxu1 %vm1304_vm1, %v13125_v44  ;;  %v5332_v3 = vmax.f32 %v5268_v61, 0.0  ;;  %v4898_v27 = vadd.f32 %v13139_v51, %v14520_v37 }
 0x4e9   : > { %5630 = vmatprep.mubr.f32.mxu0 %v14511_v25  ;;  %v13233_v0 = vpop.f32.mrf.mxu0  ;;  %v13235_v53 = vpop.f32.mrf.mxu1  ;;  %5719 = vmatprep.mubr.f32.mxu1 %v14511_v25  ;;  %v5254_v17 = vadd.f32 %v13077_v26, %v4999_v31  ;;  %v5334_v63 = vmax.f32 %v5270_v23, 0.0  ;;  %v5237_v59 = vadd.f32 %v13102_v2, %v4906_v24  ;;  %v4987_v30 = vadd.f32 %v13141_v62, %v14521_v52 }
 0x4ea   : > { %v5333_v5 = vmax.f32 %v5269_v29, 0.0  ;;  %v5335_v46 = vmax.f32 %v5271_v47, 0.0  ;;  %v5239_v33 = vadd.f32 %v13102_v2, %v4995_v13  ;;  %v5221_v14 = vadd.f32 %v13114_v9, %v4900_v18  ;;  %v14525_v13 = vld [vmem:[#allocation34_spill] sm:$0xff] }
 0x4eb   : > { %v13246_v42 = vpop.f32.mrf.mxu0  ;;  %v13248_v34 = vpop.f32.mrf.mxu1  ;;  %v5236_v51 = vadd.f32 %v13102_v2, %v4904_v54  ;;  %v5238_v22 = vadd.f32 %v13102_v2, %v4993_v20  ;;  %v5223_v4 = vadd.f32 %v13114_v9, %v4989_v60  ;;  %v5316_v62 = vmax.f32 %v5252_v7, 0.0  ;;  %v14528_v7 = vld [vmem:[#allocation36_spill] sm:$0xff] }
 0x4ec   : > { %11049 = vmatmul.mubr.msk.f32.gmra.mxu0 %vm1304_vm1, %v13145_v8  ;;  %5762 = vmatprep.subr.mxu0 %v5333_v5  ;;  %v5318_v48 = vmax.f32 %v5254_v17, 0.0  ;;  %v5220_v16 = vadd.f32 %v13114_v9, %v4898_v27  ;;  %v5301_v36 = vmax.f32 %v5237_v59, 0.0  ;;  %v5222_v32 = vadd.f32 %v13114_v9, %v4987_v30 }
 0x4ed   : > { %11053 = vmatmul.mubr.msk.f32.gmra.mxu1 %vm1304_vm1, %v13145_v8  ;;  %5636 = vmatprep.mubr.f32.mxu0 %v14511_v25  ;;  %v13263_v50 = vpop.f32.mrf.mxu0  ;;  %v13265_v11 = vpop.f32.mrf.mxu1  ;;  %v5303_v29 = vmax.f32 %v5239_v33, 0.0  ;;  %v5300_v31 = vmax.f32 %v5236_v51, 0.0  ;;  %v5302_v61 = vmax.f32 %v5238_v22, 0.0  ;;  %v5285_v23 = vmax.f32 %v5221_v14, 0.0  ;;  %v14533_v51 = vld [vmem:[#allocation28_spill] sm:$0xff] }
 0x4ee   : > { %5725 = vmatprep.mubr.f32.mxu1 %v14511_v25  ;;  %5851 = vmatprep.subr.mxu1 %v5335_v46  ;;  %v5287_v38 = vmax.f32 %v5223_v4, 0.0  ;;  %v5284_v60 = vmax.f32 %v5220_v16, 0.0  ;;  %v5173_v22 = vadd.f32 %v13265_v11, %v14533_v51  ;;  %v14535_v16 = vld [vmem:[#allocation22_spill] sm:$0xff] }
 0x4ef   : > { %5763 = vmatpush1.msra.mxu0 %v5332_v3  ;;  %5852 = vmatpush1.msra.mxu1 %v5334_v63  ;;  %v5087_v43 = vpop.f32.mrf.mxu0  ;;  %v5176_v6 = vpop.f32.mrf.mxu1  ;;  %v5286_v3 = vmax.f32 %v5222_v32, 0.0  ;;  %v14529_v63 = vld [vmem:[#allocation30_spill] sm:$0xff]  ;;  %v14536_v32 = vld [vmem:[#allocation23_spill] sm:$0xff] }
 0x4f0   : > { %11050 = vmatmul.mubr.msk.f32.gmra.mxu0 %vm1304_vm1, %v13177_v1  ;;  %5764 = vmatprep.subr.mxu0 %v5317_v28  ;;  %v5088_v5 = vadd.f32 %v5087_v43, %v14523_v35  ;;  %v5177_v37 = vadd.f32 %v5176_v6, %v14529_v63  ;;  %v14530_v28 = vld [vmem:[#allocation25_spill] sm:$0xff]  ;;  %v14532_v6 = vld [vmem:[#allocation27_spill] sm:$0xff] }
 0x4f1   : > { %11054 = vmatmul.mubr.msk.f32.gmra.mxu1 %vm1304_vm1, %v13177_v1  ;;  %5853 = vmatprep.subr.mxu1 %v5319_v10  ;;  %v5089_v57 = vpop.f32.mrf.mxu0  ;;  %v5178_v19 = vpop.f32.mrf.mxu1  ;;  %v5082_v52 = vadd.f32 %v13246_v42, %v14530_v28  ;;  %v14531_v10 = vld [vmem:[#allocation26_spill] sm:$0xff]  ;;  %v5084_v14 = vadd.f32 %v13263_v50, %v14532_v6 }
 0x4f2   : > { %5642 = vmatprep.mubr.f32.mxu0 %v14511_v25  ;;  %5731 = vmatprep.mubr.f32.mxu1 %v14511_v25  ;;  %v5090_v18 = vadd.f32 %v5089_v57, %v14524_v12  ;;  %v5179_v54 = vadd.f32 %v5178_v19, %v14526_v49  ;;  %v5171_v43 = vadd.f32 %v13248_v34, %v14531_v10  ;;  %v14534_v57 = vld [vmem:[#allocation21_spill] sm:$0xff] }
 0x4f3   : > { %5765 = vmatpush1.msra.mxu0 %v5316_v62  ;;  %5854 = vmatpush1.msra.mxu1 %v5318_v48  ;;  %v5093_v47 = vpop.f32.mrf.mxu0  ;;  %v5182_v56 = vpop.f32.mrf.mxu1  ;;  %v5256_v50 = vadd.f32 %v13077_v26, %v5088_v5  ;;  %v5258_v62 = vadd.f32 %v13077_v26, %v5177_v37  ;;  %v5076_v19 = vadd.f32 %v13217_v45, %v14534_v57 }
 0x4f4   : > { %11051 = vmatmul.mubr.msk.f32.gmra.mxu0 %vm1304_vm1, %v13199_v41  ;;  %5766 = vmatprep.subr.mxu0 %v5301_v36  ;;  %v5094_v24 = vadd.f32 %v5093_v47, %v14522_v58  ;;  %v5183_v40 = vadd.f32 %v5182_v56, %v14525_v13  ;;  %v5257_v42 = vadd.f32 %v13077_v26, %v5090_v18  ;;  %v14537_v47 = vld [vmem:[#allocation24_spill] sm:$0xff]  ;;  %v13382_v37 = vpop.permute.xlu1 %5362 }
 0x4f5   : > { %11055 = vmatmul.mubr.msk.f32.gmra.mxu1 %vm1304_vm1, %v13199_v41  ;;  %5855 = vmatprep.subr.mxu1 %v5303_v29  ;;  %v5095_v46 = vpop.f32.mrf.mxu0  ;;  %v5184_v55 = vpop.f32.mrf.mxu1  ;;  %v5259_v4 = vadd.f32 %v13077_v26, %v5179_v54  ;;  %v5165_v36 = vadd.f32 %v13219_v21, %v14535_v16  ;;  %v5078_v29 = vadd.f32 %v13233_v0, %v14536_v32 }
 0x4f6   : > { %5767 = vmatpush1.msra.mxu0 %v5300_v31  ;;  %5856 = vmatpush1.msra.mxu1 %v5302_v61  ;;  %v5096_v20 = vadd.f32 %v5095_v46, %v14527_v39  ;;  %v5185_v17 = vadd.f32 %v5184_v55, %v14528_v7  ;;  %v5272_v27 = vadd.f32 %v13071_v15, %v5094_v24  ;;  %v5321_v45 = vmax.f32 %v5257_v42, 0.0 }
 0x4f7   : > { %5768 = vmatprep.subr.mxu0 %v5285_v23  ;;  %5857 = vmatprep.subr.mxu1 %v5287_v38  ;;  %v5274_v59 = vadd.f32 %v13071_v15, %v5183_v40  ;;  %v5167_v26 = vadd.f32 %v13235_v53, %v14537_v47  ;;  %v5241_v56 = vadd.f32 %v13102_v2, %v5084_v14  ;;  %v5323_v21 = vmax.f32 %v5259_v4, 0.0 }
 0x4f8   : > { %5769 = vmatpush1.msra.mxu0 %v5284_v60  ;;  %5802 = vmatprep.mubr.f32.mxu0 %v14511_v25  ;;  %v5273_v30 = vadd.f32 %v13071_v15, %v5096_v20  ;;  %v5275_v33 = vadd.f32 %v13071_v15, %v5185_v17  ;;  %v5336_v11 = vmax.f32 %v5272_v27, 0.0  ;;  %v5243_v31 = vadd.f32 %v13102_v2, %v5173_v22  ;;  %v13380_v17 = vpop.permute.xlu0 %5367 }
 0x4f9   : > { %5858 = vmatpush1.msra.mxu1 %v5286_v3  ;;  %5891 = vmatprep.mubr.f32.mxu1 %v14511_v25  ;;  %v5338_v48 = vmax.f32 %v5274_v59, 0.0  ;;  %v5240_v61 = vadd.f32 %v13102_v2, %v5082_v52  ;;  %v5242_v0 = vadd.f32 %v13102_v2, %v5171_v43  ;;  %v5320_v23 = vmax.f32 %v5256_v50, 0.0 }
 0x4fa   : > { %11056 = vmatmul.mubr.msk.f32.vlgmr.msra.gmra.mxu0 %vm1304_vm1, %v13125_v44  ;;  %11060 = vmatmul.mubr.msk.f32.vlgmr.msra.gmra.mxu1 %vm1304_vm1, %v13125_v44  ;;  %v5337_v15 = vmax.f32 %v5273_v30, 0.0  ;;  %v5339_v34 = vmax.f32 %v5275_v33, 0.0  ;;  %v5322_v53 = vmax.f32 %v5258_v62, 0.0  ;;  %v5225_v58 = vadd.f32 %v13114_v9, %v5078_v29 }
 0x4fb   : > { %5808 = vmatprep.mubr.f32.mxu0 %v14511_v25  ;;  %5897 = vmatprep.mubr.f32.mxu1 %v14511_v25  ;;  %v5227_v24 = vadd.f32 %v13114_v9, %v5167_v26  ;;  %v5224_v35 = vadd.f32 %v13114_v9, %v5076_v19  ;;  %v5305_v2 = vmax.f32 %v5241_v56, 0.0  ;;  %v5307_v5 = vmax.f32 %v5243_v31, 0.0 }
 0x4fc   : > { %5940 = vmatprep.subr.mxu0 %v5337_v15  ;;  %6029 = vmatprep.subr.mxu1 %v5339_v34  ;;  %v5226_v12 = vadd.f32 %v13114_v9, %v5165_v36  ;;  %v5304_v18 = vmax.f32 %v5240_v61, 0.0  ;;  %v5306_v38 = vmax.f32 %v5242_v0, 0.0  ;;  %v5289_v13 = vmax.f32 %v5225_v58, 0.0  ;;  %v13388_v43 = vpop.permute.xlu0 %5357  ;;  %v13395_v15 = vpop.permute.xlu1 %5352 }
 0x4fd   : > { %5941 = vmatpush1.msra.mxu0 %v5336_v11  ;;  %6030 = vmatpush1.msra.mxu1 %v5338_v48  ;;  %v5291_v40 = vmax.f32 %v5227_v24, 0.0  ;;  %v5288_v46 = vmax.f32 %v5224_v35, 0.0 }
 0x4fe   : > { %11057 = vmatmul.mubr.msk.f32.gmra.mxu0 %vm1304_vm1, %v13145_v8  ;;  %11061 = vmatmul.mubr.msk.f32.gmra.mxu1 %vm1304_vm1, %v13145_v8  ;;  %v5290_v9 = vmax.f32 %v5226_v12, 0.0 }
 0x4ff   : > { %5814 = vmatprep.mubr.f32.mxu0 %v14511_v25  ;;  %5903 = vmatprep.mubr.f32.mxu1 %v14511_v25 }
 0x500   : > { %5942 = vmatprep.subr.mxu0 %v5321_v45  ;;  %6031 = vmatprep.subr.mxu1 %v5323_v21 }
 0x501   : > { %5943 = vmatpush1.msra.mxu0 %v5320_v23  ;;  %6032 = vmatpush1.msra.mxu1 %v5322_v53 }
 0x502   : > { %11058 = vmatmul.mubr.msk.f32.gmra.mxu0 %vm1304_vm1, %v13177_v1  ;;  %11062 = vmatmul.mubr.msk.f32.gmra.mxu1 %vm1304_vm1, %v13177_v1 }
 0x503   : > { %5820 = vmatprep.mubr.f32.mxu0 %v14511_v25  ;;  %5909 = vmatprep.mubr.f32.mxu1 %v14511_v25 }
 0x504   : > { %5944 = vmatprep.subr.mxu0 %v5305_v2  ;;  %6033 = vmatprep.subr.mxu1 %v5307_v5 }
 0x505   : > { %5945 = vmatpush1.msra.mxu0 %v5304_v18  ;;  %6034 = vmatpush1.msra.mxu1 %v5306_v38  ;;  %v13412_v38 = vld [vmem:[#allocation2 + $0xa0] sm:$0xff] }
 0x506   : > { %11059 = vmatmul.mubr.msk.f32.gmra.mxu0 %vm1304_vm1, %v13199_v41  ;;  %11063 = vmatmul.mubr.msk.f32.gmra.mxu1 %vm1304_vm1, %v13199_v41 }
 0x507   : > { %5946 = vmatprep.subr.mxu0 %v5289_v13  ;;  %6035 = vmatprep.subr.mxu1 %v5291_v40 }
 0x508   : > { %5947 = vmatpush1.msra.mxu0 %v5288_v46  ;;  %5980 = vmatprep.mubr.f32.mxu0 %v14511_v25 }
 0x509   : > { %6036 = vmatpush1.msra.mxu1 %v5290_v9  ;;  %6069 = vmatprep.mubr.f32.mxu1 %v14511_v25 }
 0x50a   : > { %11064 = vmatmul.mubr.msk.f32.vlgmr.msra.gmra.mxu0 %vm1304_vm1, %v13125_v44  ;;  %11068 = vmatmul.mubr.msk.f32.vlgmr.msra.gmra.mxu1 %vm1304_vm1, %v13125_v44 }
 0x50b   : > { %5986 = vmatprep.mubr.f32.mxu0 %v14511_v25  ;;  %6075 = vmatprep.mubr.f32.mxu1 %v14511_v25 }
 0x50e   : > { %11065 = vmatmul.mubr.msk.f32.gmra.mxu0 %vm1304_vm1, %v13145_v8  ;;  %11069 = vmatmul.mubr.msk.f32.gmra.mxu1 %vm1304_vm1, %v13145_v8 }
 0x50f   : > { %5992 = vmatprep.mubr.f32.mxu0 %v14511_v25  ;;  %6081 = vmatprep.mubr.f32.mxu1 %v14511_v25 }
 0x512   : > { %11066 = vmatmul.mubr.msk.f32.gmra.mxu0 %vm1304_vm1, %v13177_v1  ;;  %11070 = vmatmul.mubr.msk.f32.gmra.mxu1 %vm1304_vm1, %v13177_v1 }
 0x513   : > { %5998 = vmatprep.mubr.f32.mxu0 %v14511_v25  ;;  %6087 = vmatprep.mubr.f32.mxu1 %v14511_v25 }
 0x516   : > { %11067 = vmatmul.mubr.msk.f32.gmra.mxu0 %vm1304_vm1, %v13199_v41  ;;  %11071 = vmatmul.mubr.msk.f32.gmra.mxu1 %vm1304_vm1, %v13199_v41 }
 0x517   : > { %6264 = vmatprep.mubr.f32.mxu0 %v14511_v25  ;;  %6353 = vmatprep.mubr.f32.mxu1 %v14511_v25 }
 0x594   : > { %v5448_v44 = vpop.f32.mrf.mxu0  ;;  %v5537_v8 = vpop.f32.mrf.mxu1 }
 0x595   : > { %v5449_v29 = vadd.f32 %v5448_v44, %v13395_v15  ;;  %v5538_v45 = vadd.f32 %v5537_v8, %v13395_v15  ;;  %v13419_v8 = vld [vmem:[#allocation2 + $0xa8] sm:$0xff] }
 0x596   : > { %v5450_v55 = vpop.f32.mrf.mxu0  ;;  %v5539_v60 = vpop.f32.mrf.mxu1 }
 0x597   : > { %v5451_v57 = vadd.f32 %v5450_v55, %v13395_v15  ;;  %v5540_v47 = vadd.f32 %v5539_v60, %v13395_v15  ;;  %v6094_v5 = vmax.f32 %v5449_v29, 0.0  ;;  %v6096_v13 = vmax.f32 %v5538_v45, 0.0 }
 0x598   : > { %v5454_v49 = vpop.f32.mrf.mxu0  ;;  %v5543_v1 = vpop.f32.mrf.mxu1 }
 0x599   : > { %v5455_v34 = vadd.f32 %v5454_v49, %v13388_v43  ;;  %v5544_v19 = vadd.f32 %v5543_v1, %v13388_v43  ;;  %v6095_v24 = vmax.f32 %v5451_v57, 0.0  ;;  %v6097_v12 = vmax.f32 %v5540_v47, 0.0 }
 0x59a   : > { %v5456_v54 = vpop.f32.mrf.mxu0  ;;  %v5545_v39 = vpop.f32.mrf.mxu1 }
 0x59b   : > { %v5457_v22 = vadd.f32 %v5456_v54, %v13388_v43  ;;  %v5546_v50 = vadd.f32 %v5545_v39, %v13388_v43  ;;  %v6110_v23 = vmax.f32 %v5455_v34, 0.0  ;;  %v6112_v35 = vmax.f32 %v5544_v19, 0.0  ;;  %v13428_v39 = vld [vmem:[#allocation2 + $0xb0] sm:$0xff] }
 0x59d   : > { %v5549_v7 = vpop.f32.mrf.mxu1  ;;  %v6111_v21 = vmax.f32 %v5457_v22, 0.0  ;;  %v6113_v53 = vmax.f32 %v5546_v50, 0.0 }
 0x59e   : > { %v5460_v20 = vpop.f32.mrf.mxu0  ;;  %v5550_v42 = vadd.f32 %v5549_v7, %v13382_v37 }
 0x59f   : > { %v5551_v63 = vpop.f32.mrf.mxu1  ;;  %v5461_v6 = vadd.f32 %v5460_v20, %v13382_v37 }
 0x5a0   : > { %v5462_v3 = vpop.f32.mrf.mxu0  ;;  %v5552_v14 = vadd.f32 %v5551_v63, %v13382_v37  ;;  %v6128_v61 = vmax.f32 %v5550_v42, 0.0 }
 0x5a1   : > { %v5463_v52 = vadd.f32 %v5462_v3, %v13382_v37  ;;  %v6126_v26 = vmax.f32 %v5461_v6, 0.0 }
 0x5a2   : > { %v5466_v41 = vpop.f32.mrf.mxu0  ;;  %v5555_v27 = vpop.f32.mrf.mxu1  ;;  %v6129_v56 = vmax.f32 %v5552_v14, 0.0 }
 0x5a3   : > { %v5467_v59 = vadd.f32 %v5466_v41, %v13380_v17  ;;  %v5556_v30 = vadd.f32 %v5555_v27, %v13380_v17  ;;  %v6127_v16 = vmax.f32 %v5463_v52, 0.0 }
 0x5a4   : > { %v5468_v28 = vpop.f32.mrf.mxu0  ;;  %v5557_v10 = vpop.f32.mrf.mxu1 }
 0x5a5   : > { %v5469_v33 = vadd.f32 %v5468_v28, %v13380_v17  ;;  %v5558_v51 = vadd.f32 %v5557_v10, %v13380_v17  ;;  %v6142_v62 = vmax.f32 %v5467_v59, 0.0  ;;  %v6144_v36 = vmax.f32 %v5556_v30, 0.0 }
 0x5a7   : > { %v6143_v4 = vmax.f32 %v5469_v33, 0.0  ;;  %v6145_v11 = vmax.f32 %v5558_v51, 0.0 }
 0x5a8   : > { %v13399_v48 = vpop.f32.mrf.mxu0  ;;  %v13403_v32 = vpop.f32.mrf.mxu1 }
 0x5a9   : > { %6224 = vmatprep.subr.mxu0 %v6143_v4  ;;  %6313 = vmatprep.subr.mxu1 %v6145_v11 }
 0x5aa   : > { %v13407_v31 = vpop.f32.mrf.mxu0  ;;  %6225 = vmatpush1.msra.mxu0 %v6142_v62  ;;  %v13410_v0 = vpop.f32.mrf.mxu1  ;;  %6314 = vmatpush1.msra.mxu1 %v6144_v36  ;;  %v5627_v36 = vadd.f32 %v13399_v48, %v13395_v15 }
 0x5ab   : > { %6226 = vmatprep.subr.mxu0 %v6127_v16  ;;  %6315 = vmatprep.subr.mxu1 %v6129_v56  ;;  %v5629_v34 = vadd.f32 %v13407_v31, %v13395_v15  ;;  %v13458_v16 = vld [vmem:[#allocation2 + $0xb8] sm:$0xff]  ;;  %v5718_v29 = vadd.f32 %v13410_v0, %v13395_v15 }
 0x5ac   : > { %v5632_v58 = vpop.f32.mrf.mxu0  ;;  %6227 = vmatpush1.msra.mxu0 %v6126_v26  ;;  %6316 = vmatpush1.msra.mxu1 %v6128_v61  ;;  %v5716_v26 = vadd.f32 %v13403_v32, %v13395_v15  ;;  %v6098_v32 = vmax.f32 %v5627_v36, 0.0 }
 0x5ad   : > { %v5721_v2 = vpop.f32.mrf.mxu1  ;;  %6228 = vmatprep.subr.mxu0 %v6111_v21  ;;  %6317 = vmatprep.subr.mxu1 %v6113_v53  ;;  %v5633_v51 = vadd.f32 %v5632_v58, %v13388_v43  ;;  %v6099_v48 = vmax.f32 %v5629_v34, 0.0  ;;  %v6101_v58 = vmax.f32 %v5718_v29, 0.0 }
 0x5ae   : > { %v5634_v18 = vpop.f32.mrf.mxu0  ;;  %6229 = vmatpush1.msra.mxu0 %v6110_v23  ;;  %6318 = vmatpush1.msra.mxu1 %v6112_v35  ;;  %v5722_v50 = vadd.f32 %v5721_v2, %v13388_v43 }
 0x5af   : > { %v5723_v40 = vpop.f32.mrf.mxu1  ;;  %6230 = vmatprep.subr.mxu0 %v6095_v24  ;;  %6319 = vmatprep.subr.mxu1 %v6097_v12  ;;  %v5635_v30 = vadd.f32 %v5634_v18, %v13388_v43  ;;  %v6114_v21 = vmax.f32 %v5633_v51, 0.0  ;;  %v6100_v24 = vmax.f32 %v5716_v26, 0.0 }
 0x5b0   : > { %v5638_v46 = vpop.f32.mrf.mxu0  ;;  %6231 = vmatpush1.msra.mxu0 %v6094_v5  ;;  %6320 = vmatpush1.msra.mxu1 %v6096_v13  ;;  %v5724_v22 = vadd.f32 %v5723_v40, %v13388_v43  ;;  %v6116_v0 = vmax.f32 %v5722_v50, 0.0 }
 0x5b1   : > { %v5727_v9 = vpop.f32.mrf.mxu1  ;;  %11076 = vmatmul.mubr.msk.f32.vlgmr.msra.gmra.mxu0 %vm1304_vm1, %v13412_v38  ;;  %11080 = vmatmul.mubr.msk.f32.vlgmr.msra.gmra.mxu1 %vm1304_vm1, %v13412_v38  ;;  %v5639_v41 = vadd.f32 %v5638_v46, %v13382_v37  ;;  %v6115_v56 = vmax.f32 %v5635_v30, 0.0 }
 0x5b2   : > { %v5640_v44 = vpop.f32.mrf.mxu0  ;;  %6270 = vmatprep.mubr.f32.mxu0 %v14511_v25  ;;  %6359 = vmatprep.mubr.f32.mxu1 %v14511_v25  ;;  %v5728_v28 = vadd.f32 %v5727_v9, %v13382_v37  ;;  %v6117_v61 = vmax.f32 %v5724_v22, 0.0 }
 0x5b3   : > { %v5729_v55 = vpop.f32.mrf.mxu1  ;;  %v5641_v20 = vadd.f32 %v5640_v44, %v13382_v37  ;;  %v6130_v62 = vmax.f32 %v5639_v41, 0.0 }
 0x5b4   : > { %v5644_v60 = vpop.f32.mrf.mxu0  ;;  %v5730_v27 = vadd.f32 %v5729_v55, %v13382_v37  ;;  %v6132_v47 = vmax.f32 %v5728_v28, 0.0 }
 0x5b5   : > { %v5733_v49 = vpop.f32.mrf.mxu1  ;;  %11077 = vmatmul.mubr.msk.f32.gmra.mxu0 %vm1304_vm1, %v13419_v8  ;;  %v5645_v1 = vadd.f32 %v5644_v60, %v13380_v17  ;;  %11081 = vmatmul.mubr.msk.f32.gmra.mxu1 %vm1304_vm1, %v13419_v8  ;;  %v6131_v42 = vmax.f32 %v5641_v20, 0.0 }
 0x5b6   : > { %v5646_v54 = vpop.f32.mrf.mxu0  ;;  %6276 = vmatprep.mubr.f32.mxu0 %v14511_v25  ;;  %v5734_v7 = vadd.f32 %v5733_v49, %v13380_v17  ;;  %6365 = vmatprep.mubr.f32.mxu1 %v14511_v25  ;;  %v6133_v11 = vmax.f32 %v5730_v27, 0.0 }
 0x5b7   : > { %v5647_v3 = vadd.f32 %v5646_v54, %v13380_v17  ;;  %v5735_v63 = vpop.f32.mrf.mxu1  ;;  %v6146_v33 = vmax.f32 %v5645_v1, 0.0 }
 0x5b8   : > { %v5736_v59 = vadd.f32 %v5735_v63, %v13380_v17  ;;  %v6148_v4 = vmax.f32 %v5734_v7, 0.0 }
 0x5b9   : > { %v6147_v52 = vmax.f32 %v5647_v3, 0.0  ;;  %11078 = vmatmul.mubr.msk.f32.gmra.mxu0 %vm1304_vm1, %v13428_v39  ;;  %11082 = vmatmul.mubr.msk.f32.gmra.mxu1 %vm1304_vm1, %v13428_v39 }
 0x5ba   : > { %v6149_v10 = vmax.f32 %v5736_v59, 0.0  ;;  %v13441_v6 = vpop.f32.mrf.mxu0  ;;  %v13443_v14 = vpop.f32.mrf.mxu1  ;;  %6282 = vmatprep.mubr.f32.mxu0 %v14511_v25  ;;  %6371 = vmatprep.mubr.f32.mxu1 %v14511_v25 }
 0x5bb   : > { %6402 = vmatprep.subr.mxu0 %v6147_v52  ;;  %v5805_v26 = vadd.f32 %v13441_v6, %v13395_v15 }
 0x5bc   : > { %v13454_v57 = vpop.f32.mrf.mxu0  ;;  %v13456_v19 = vpop.f32.mrf.mxu1  ;;  %6491 = vmatprep.subr.mxu1 %v6149_v10  ;;  %6403 = vmatpush1.msra.mxu0 %v6146_v33 }
 0x5bd   : > { %6492 = vmatpush1.msra.mxu1 %v6148_v4  ;;  %6404 = vmatprep.subr.mxu0 %v6131_v42  ;;  %v5807_v50 = vadd.f32 %v13454_v57, %v13395_v15 }
 0x5be   : > { %v13466_v31 = vpop.f32.mrf.mxu0  ;;  %v13468_v45 = vpop.f32.mrf.mxu1  ;;  %6493 = vmatprep.subr.mxu1 %v6133_v11  ;;  %6405 = vmatpush1.msra.mxu0 %v6130_v62  ;;  %v5896_v62 = vadd.f32 %v13456_v19, %v13395_v15 }
 0x5bf   : > { %6494 = vmatpush1.msra.mxu1 %v6132_v47  ;;  %11079 = vmatmul.mubr.msk.f32.gmra.mxu0 %vm1304_vm1, %v13458_v16  ;;  %v5811_v4 = vadd.f32 %v13466_v31, %v13388_v43  ;;  %v5900_v34 = vadd.f32 %v13468_v45, %v13388_v43  ;;  %v6103_v6 = vmax.f32 %v5807_v50, 0.0 }
 0x5c0   : > { %v5812_v23 = vpop.f32.mrf.mxu0  ;;  %v5901_v53 = vpop.f32.mrf.mxu1  ;;  %11083 = vmatmul.mubr.msk.f32.gmra.mxu1 %vm1304_vm1, %v13458_v16  ;;  %6406 = vmatprep.subr.mxu0 %v6115_v56  ;;  %v5894_v56 = vadd.f32 %v13443_v14, %v13395_v15 }
 0x5c1   : > { %6495 = vmatprep.subr.mxu1 %v6117_v61  ;;  %6407 = vmatpush1.msra.mxu0 %v6114_v21  ;;  %v5813_v30 = vadd.f32 %v5812_v23, %v13388_v43  ;;  %v5902_v33 = vadd.f32 %v5901_v53, %v13388_v43  ;;  %v6118_v21 = vmax.f32 %v5811_v4, 0.0  ;;  %v6120_v61 = vmax.f32 %v5900_v34, 0.0 }
 0x5c2   : > { %v5816_v35 = vpop.f32.mrf.mxu0  ;;  %v5905_v2 = vpop.f32.mrf.mxu1  ;;  %6496 = vmatpush1.msra.mxu1 %v6116_v0  ;;  %6408 = vmatprep.subr.mxu0 %v6099_v48  ;;  %v6105_v48 = vmax.f32 %v5896_v62, 0.0  ;;  %v6102_v23 = vmax.f32 %v5805_v26, 0.0  ;;  %v6104_v53 = vmax.f32 %v5894_v56, 0.0 }
 0x5c3   : > { %6497 = vmatprep.subr.mxu1 %v6101_v58  ;;  %6409 = vmatpush1.msra.mxu0 %v6098_v32  ;;  %v5817_v63 = vadd.f32 %v5816_v35, %v13382_v37  ;;  %v5906_v41 = vadd.f32 %v5905_v2, %v13382_v37  ;;  %v6119_v57 = vmax.f32 %v5813_v30, 0.0  ;;  %v6121_v31 = vmax.f32 %v5902_v33, 0.0  ;;  %v13604_v26 = vpop.permute.xlu0 %6185  ;;  %v13606_v56 = vpop.permute.xlu1 %6180 }
 0x5c4   : > { %v5818_v5 = vpop.f32.mrf.mxu0  ;;  %v5907_v12 = vpop.f32.mrf.mxu1  ;;  %6442 = vmatprep.mubr.f32.mxu0 %v14511_v25  ;;  %6498 = vmatpush1.msra.mxu1 %v6100_v24 }
 0x5c5   : > { %6531 = vmatprep.mubr.f32.mxu1 %v14511_v25  ;;  %11084 = vmatmul.mubr.msk.f32.vlgmr.msra.gmra.mxu0 %vm1304_vm1, %v13412_v38  ;;  %v5819_v49 = vadd.f32 %v5818_v5, %v13382_v37  ;;  %v5908_v1 = vadd.f32 %v5907_v12, %v13382_v37  ;;  %v6134_v11 = vmax.f32 %v5817_v63, 0.0  ;;  %v6136_v36 = vmax.f32 %v5906_v41, 0.0 }
 0x5c6   : > { %11088 = vmatmul.mubr.msk.f32.vlgmr.msra.gmra.mxu1 %vm1304_vm1, %v13412_v38  ;;  %v5822_v18 = vpop.f32.mrf.mxu0  ;;  %v5911_v13 = vpop.f32.mrf.mxu1  ;;  %6448 = vmatprep.mubr.f32.mxu0 %v14511_v25 }
 0x5c7   : > { %6537 = vmatprep.mubr.f32.mxu1 %v14511_v25  ;;  %v5823_v9 = vadd.f32 %v5822_v18, %v13380_v17  ;;  %v5912_v44 = vadd.f32 %v5911_v13, %v13380_v17  ;;  %v6135_v10 = vmax.f32 %v5819_v49, 0.0  ;;  %v6137_v51 = vmax.f32 %v5908_v1, 0.0 }
 0x5c8   : > { %v5824_v40 = vpop.f32.mrf.mxu0  ;;  %v5913_v46 = vpop.f32.mrf.mxu1 }
 0x5c9   : > { %v5825_v55 = vadd.f32 %v5824_v40, %v13380_v17  ;;  %v5914_v60 = vadd.f32 %v5913_v46, %v13380_v17  ;;  %11085 = vmatmul.mubr.msk.f32.gmra.mxu0 %vm1304_vm1, %v13419_v8  ;;  %v6150_v28 = vmax.f32 %v5823_v9, 0.0  ;;  %v6152_v52 = vmax.f32 %v5912_v44, 0.0 }
 0x5ca   : > { %11089 = vmatmul.mubr.msk.f32.gmra.mxu1 %vm1304_vm1, %v13419_v8  ;;  %v13492_v54 = vpop.f32.mrf.mxu0  ;;  %v13494_v20 = vpop.f32.mrf.mxu1  ;;  %6454 = vmatprep.mubr.f32.mxu0 %v14511_v25 }
 0x5cb   : > { %v6151_v7 = vmax.f32 %v5825_v55, 0.0  ;;  %v6153_v3 = vmax.f32 %v5914_v60, 0.0  ;;  %6543 = vmatprep.mubr.f32.mxu1 %v14511_v25  ;;  %v5983_v33 = vadd.f32 %v13492_v54, %v13395_v15 }
 0x5cc   : > { %v13500_v27 = vpop.f32.mrf.mxu0  ;;  %v13502_v59 = vpop.f32.mrf.mxu1 }
 0x5cd   : > { %11086 = vmatmul.mubr.msk.f32.gmra.mxu0 %vm1304_vm1, %v13428_v39  ;;  %6580 = vmatprep.subr.mxu0 %v6151_v7  ;;  %v5985_v41 = vadd.f32 %v13500_v27, %v13395_v15 }
 0x5ce   : > { %11090 = vmatmul.mubr.msk.f32.gmra.mxu1 %vm1304_vm1, %v13428_v39  ;;  %6669 = vmatprep.subr.mxu1 %v6153_v3  ;;  %v13510_v22 = vpop.f32.mrf.mxu0  ;;  %v13512_v42 = vpop.f32.mrf.mxu1 }
 0x5cf   : > { %6581 = vmatpush1.msra.mxu0 %v6150_v28  ;;  %6670 = vmatpush1.msra.mxu1 %v6152_v52  ;;  %v5989_v63 = vadd.f32 %v13510_v22, %v13388_v43  ;;  %v6074_v28 = vadd.f32 %v13502_v59, %v13395_v15  ;;  %v6107_v54 = vmax.f32 %v5985_v41, 0.0 }
 0x5d0   : > { %6582 = vmatprep.subr.mxu0 %v6135_v10  ;;  %6671 = vmatprep.subr.mxu1 %v6137_v51  ;;  %v5990_v29 = vpop.f32.mrf.mxu0  ;;  %v6079_v47 = vpop.f32.mrf.mxu1 }
 0x5d1   : > { %6460 = vmatprep.mubr.f32.mxu0 %v14511_v25  ;;  %6549 = vmatprep.mubr.f32.mxu1 %v14511_v25  ;;  %v5991_v49 = vadd.f32 %v5990_v29, %v13388_v43  ;;  %v6080_v1 = vadd.f32 %v6079_v47, %v13388_v43  ;;  %v6122_v27 = vmax.f32 %v5989_v63, 0.0  ;;  %v6109_v22 = vmax.f32 %v6074_v28, 0.0 }
 0x5d2   : > { %6583 = vmatpush1.msra.mxu0 %v6134_v11  ;;  %6672 = vmatpush1.msra.mxu1 %v6136_v36  ;;  %v5994_v19 = vpop.f32.mrf.mxu0  ;;  %v6083_v45 = vpop.f32.mrf.mxu1 }
 0x5d3   : > { %11087 = vmatmul.mubr.msk.f32.gmra.mxu0 %vm1304_vm1, %v13458_v16  ;;  %11091 = vmatmul.mubr.msk.f32.gmra.mxu1 %vm1304_vm1, %v13458_v16  ;;  %v5995_v44 = vadd.f32 %v5994_v19, %v13382_v37  ;;  %v6123_v10 = vmax.f32 %v5991_v49, 0.0  ;;  %v6125_v51 = vmax.f32 %v6080_v1, 0.0 }
 0x5d4   : > { %6584 = vmatprep.subr.mxu0 %v6119_v57  ;;  %6673 = vmatprep.subr.mxu1 %v6121_v31  ;;  %v5996_v0 = vpop.f32.mrf.mxu0  ;;  %v6085_v14 = vpop.f32.mrf.mxu1 }
 0x5d5   : > { %6585 = vmatpush1.msra.mxu0 %v6118_v21  ;;  %6674 = vmatpush1.msra.mxu1 %v6120_v61  ;;  %v5997_v46 = vadd.f32 %v5996_v0, %v13382_v37  ;;  %v6086_v9 = vadd.f32 %v6085_v14, %v13382_v37  ;;  %v6138_v52 = vmax.f32 %v5995_v44, 0.0 }
 0x5d6   : > { %6586 = vmatprep.subr.mxu0 %v6103_v6  ;;  %6675 = vmatprep.subr.mxu1 %v6105_v48  ;;  %v6000_v32 = vpop.f32.mrf.mxu0  ;;  %v6089_v58 = vpop.f32.mrf.mxu1 }
 0x5d7   : > { %6587 = vmatpush1.msra.mxu0 %v6102_v23  ;;  %6620 = vmatprep.mubr.f32.mxu0 %v14511_v25  ;;  %v6001_v12 = vadd.f32 %v6000_v32, %v13380_v17  ;;  %v6090_v18 = vadd.f32 %v6089_v58, %v13380_v17  ;;  %v6139_v7 = vmax.f32 %v5997_v46, 0.0  ;;  %v6141_v3 = vmax.f32 %v6086_v9, 0.0  ;;  %v13612_v48 = vpop.permute.xlu0 %6175 }
 0x5d8   : > { %6676 = vmatpush1.msra.mxu1 %v6104_v53  ;;  %6709 = vmatprep.mubr.f32.mxu1 %v14511_v25  ;;  %v6002_v24 = vpop.f32.mrf.mxu0  ;;  %v6091_v35 = vpop.f32.mrf.mxu1 }
 0x5d9   : > { %11092 = vmatmul.mubr.msk.f32.vlgmr.msra.gmra.mxu0 %vm1304_vm1, %v13412_v38  ;;  %11096 = vmatmul.mubr.msk.f32.vlgmr.msra.gmra.mxu1 %vm1304_vm1, %v13412_v38  ;;  %v6003_v2 = vadd.f32 %v6002_v24, %v13380_v17  ;;  %v6092_v5 = vadd.f32 %v6091_v35, %v13380_v17  ;;  %v6084_v17 = vadd.f32 %v6083_v45, %v13382_v37  ;;  %v6154_v55 = vmax.f32 %v6001_v12, 0.0  ;;  %v13619_v24 = vpop.permute.xlu1 %6170 }
 0x5da   : > { %6626 = vmatprep.mubr.f32.mxu0 %v14511_v25  ;;  %6715 = vmatprep.mubr.f32.mxu1 %v14511_v25  ;;  %v6156_v60 = vmax.f32 %v6090_v18, 0.0  ;;  %v6078_v37 = vadd.f32 %v13512_v42, %v13388_v43  ;;  %v6072_v43 = vadd.f32 %v13494_v20, %v13395_v15  ;;  %v6106_v42 = vmax.f32 %v5983_v33, 0.0 }
 0x5db   : > { %v6155_v13 = vmax.f32 %v6003_v2, 0.0  ;;  %v6157_v40 = vmax.f32 %v6092_v5, 0.0  ;;  %v6140_v30 = vmax.f32 %v6084_v17, 0.0 }
 0x5dc   : > { %v6124_v59 = vmax.f32 %v6078_v37, 0.0  ;;  %v6108_v15 = vmax.f32 %v6072_v43, 0.0 }
 0x5dd   : > { %11093 = vmatmul.mubr.msk.f32.gmra.mxu0 %vm1304_vm1, %v13419_v8  ;;  %11097 = vmatmul.mubr.msk.f32.gmra.mxu1 %vm1304_vm1, %v13419_v8 }
 0x5de   : > { %6632 = vmatprep.mubr.f32.mxu0 %v14511_v25  ;;  %6721 = vmatprep.mubr.f32.mxu1 %v14511_v25 }
 0x5df   : > { %6758 = vmatprep.subr.mxu0 %v6155_v13  ;;  %6847 = vmatprep.subr.mxu1 %v6157_v40 }
 0x5e0   : > { %6759 = vmatpush1.msra.mxu0 %v6154_v55  ;;  %6848 = vmatpush1.msra.mxu1 %v6156_v60 }
 0x5e1   : > { %11094 = vmatmul.mubr.msk.f32.gmra.mxu0 %vm1304_vm1, %v13428_v39  ;;  %11098 = vmatmul.mubr.msk.f32.gmra.mxu1 %vm1304_vm1, %v13428_v39 }
 0x5e2   : > { %6760 = vmatprep.subr.mxu0 %v6139_v7  ;;  %6849 = vmatprep.subr.mxu1 %v6141_v3 }
 0x5e3   : > { %6638 = vmatprep.mubr.f32.mxu0 %v14511_v25  ;;  %6727 = vmatprep.mubr.f32.mxu1 %v14511_v25 }
 0x5e4   : > { %6761 = vmatpush1.msra.mxu0 %v6138_v52  ;;  %6850 = vmatpush1.msra.mxu1 %v6140_v30 }
 0x5e5   : > { %11095 = vmatmul.mubr.msk.f32.gmra.mxu0 %vm1304_vm1, %v13458_v16  ;;  %11099 = vmatmul.mubr.msk.f32.gmra.mxu1 %vm1304_vm1, %v13458_v16 }
 0x5e6   : > { %6762 = vmatprep.subr.mxu0 %v6123_v10  ;;  %6851 = vmatprep.subr.mxu1 %v6125_v51 }
 0x5e7   : > { %6763 = vmatpush1.msra.mxu0 %v6122_v27  ;;  %6852 = vmatpush1.msra.mxu1 %v6124_v59  ;;  %v13636_v59 = vld [vmem:[#allocation2 + $0xc0] sm:$0xff] }
 0x5e8   : > { %6764 = vmatprep.subr.mxu0 %v6107_v54  ;;  %6853 = vmatprep.subr.mxu1 %v6109_v22 }
 0x5e9   : > { %6765 = vmatpush1.msra.mxu0 %v6106_v42  ;;  %6798 = vmatprep.mubr.f32.mxu0 %v14511_v25 }
 0x5ea   : > { %6854 = vmatpush1.msra.mxu1 %v6108_v15  ;;  %6887 = vmatprep.mubr.f32.mxu1 %v14511_v25 }
 0x5eb   : > { %11100 = vmatmul.mubr.msk.f32.vlgmr.msra.gmra.mxu0 %vm1304_vm1, %v13412_v38  ;;  %11104 = vmatmul.mubr.msk.f32.vlgmr.msra.gmra.mxu1 %vm1304_vm1, %v13412_v38 }
 0x5ec   : > { %6804 = vmatprep.mubr.f32.mxu0 %v14511_v25  ;;  %6893 = vmatprep.mubr.f32.mxu1 %v14511_v25 }
 0x5ef   : > { %11101 = vmatmul.mubr.msk.f32.gmra.mxu0 %vm1304_vm1, %v13419_v8  ;;  %11105 = vmatmul.mubr.msk.f32.gmra.mxu1 %vm1304_vm1, %v13419_v8 }
 0x5f0   : > { %6810 = vmatprep.mubr.f32.mxu0 %v14511_v25  ;;  %6899 = vmatprep.mubr.f32.mxu1 %v14511_v25 }
 0x5f3   : > { %11102 = vmatmul.mubr.msk.f32.gmra.mxu0 %vm1304_vm1, %v13428_v39  ;;  %11106 = vmatmul.mubr.msk.f32.gmra.mxu1 %vm1304_vm1, %v13428_v39 }
 0x5f4   : > { %6816 = vmatprep.mubr.f32.mxu0 %v14511_v25  ;;  %6905 = vmatprep.mubr.f32.mxu1 %v14511_v25 }
 0x5f7   : > { %11103 = vmatmul.mubr.msk.f32.gmra.mxu0 %vm1304_vm1, %v13458_v16  ;;  %11107 = vmatmul.mubr.msk.f32.gmra.mxu1 %vm1304_vm1, %v13458_v16 }
 0x5f8   : > { %7082 = vmatprep.mubr.f32.mxu0 %v14511_v25  ;;  %7171 = vmatprep.mubr.f32.mxu1 %v14511_v25 }
 0x671   : > { %v6266_v38 = vpop.f32.mrf.mxu0  ;;  %v6355_v8 = vpop.f32.mrf.mxu1 }
 0x672   : > { %v6267_v17 = vadd.f32 %v6266_v38, %v13619_v24  ;;  %v6356_v7 = vadd.f32 %v6355_v8, %v13619_v24  ;;  %v13643_v8 = vld [vmem:[#allocation2 + $0xc8] sm:$0xff] }
 0x673   : > { %v6268_v20 = vpop.f32.mrf.mxu0  ;;  %v6357_v4 = vpop.f32.mrf.mxu1 }
 0x674   : > { %v6269_v13 = vadd.f32 %v6268_v20, %v13619_v24  ;;  %v6358_v55 = vadd.f32 %v6357_v4, %v13619_v24  ;;  %v6912_v10 = vmax.f32 %v6267_v17, 0.0  ;;  %v6914_v54 = vmax.f32 %v6356_v7, 0.0  ;;  %v13684_v17 = vld [vmem:[#allocation2 + $0xd8] sm:$0xff] }
 0x675   : > { %v6272_v34 = vpop.f32.mrf.mxu0  ;;  %v6361_v39 = vpop.f32.mrf.mxu1 }
 0x676   : > { %v6273_v35 = vadd.f32 %v6272_v34, %v13612_v48  ;;  %v6362_v40 = vadd.f32 %v6361_v39, %v13612_v48  ;;  %v6913_v30 = vmax.f32 %v6269_v13, 0.0  ;;  %v6915_v51 = vmax.f32 %v6358_v55, 0.0  ;;  %v13651_v39 = vld [vmem:[#allocation2 + $0xd0] sm:$0xff] }
 0x677   : > { %v6274_v50 = vpop.f32.mrf.mxu0  ;;  %v6363_v62 = vpop.f32.mrf.mxu1 }
 0x678   : > { %v6275_v53 = vadd.f32 %v6274_v50, %v13612_v48  ;;  %v6364_v2 = vadd.f32 %v6363_v62, %v13612_v48  ;;  %v6928_v41 = vmax.f32 %v6273_v35, 0.0  ;;  %v6930_v33 = vmax.f32 %v6362_v40, 0.0 }
 0x679   : > { %v6278_v11 = vpop.f32.mrf.mxu0  ;;  %v6367_v36 = vpop.f32.mrf.mxu1 }
 0x67a   : > { %v6279_v0 = vadd.f32 %v6278_v11, %v13606_v56  ;;  %v6368_v32 = vadd.f32 %v6367_v36, %v13606_v56  ;;  %v6929_v3 = vmax.f32 %v6275_v53, 0.0  ;;  %v6931_v28 = vmax.f32 %v6364_v2, 0.0 }
 0x67b   : > { %v6280_v29 = vpop.f32.mrf.mxu0  ;;  %v6369_v47 = vpop.f32.mrf.mxu1 }
 0x67c   : > { %v6281_v45 = vadd.f32 %v6280_v29, %v13606_v56  ;;  %v6370_v14 = vadd.f32 %v6369_v47, %v13606_v56  ;;  %v6944_v60 = vmax.f32 %v6279_v0, 0.0  ;;  %v6946_v63 = vmax.f32 %v6368_v32, 0.0 }
 0x67e   : > { %v6945_v46 = vmax.f32 %v6281_v45, 0.0  ;;  %v6947_v49 = vmax.f32 %v6370_v14, 0.0 }
 0x67f   : > { %v6284_v16 = vpop.f32.mrf.mxu0 }
 0x680   : > { %v6373_v57 = vpop.f32.mrf.mxu1  ;;  %v6285_v31 = vadd.f32 %v6284_v16, %v13604_v26 }
 0x681   : > { %v6286_v19 = vpop.f32.mrf.mxu0  ;;  %v6374_v21 = vadd.f32 %v6373_v57, %v13604_v26 }
 0x682   : > { %v6287_v61 = vadd.f32 %v6286_v19, %v13604_v26  ;;  %v6375_v6 = vpop.f32.mrf.mxu1  ;;  %v6960_v5 = vmax.f32 %v6285_v31, 0.0 }
 0x683   : > { %v6376_v23 = vadd.f32 %v6375_v6, %v13604_v26  ;;  %v6962_v9 = vmax.f32 %v6374_v21, 0.0 }
 0x684   : > { %v6961_v58 = vmax.f32 %v6287_v61, 0.0 }
 0x685   : > { %v6963_v12 = vmax.f32 %v6376_v23, 0.0  ;;  %v13623_v18 = vpop.f32.mrf.mxu0 }
 0x686   : > { %v13627_v44 = vpop.f32.mrf.mxu1  ;;  %7042 = vmatprep.subr.mxu0 %v6961_v58  ;;  %v6445_v55 = vadd.f32 %v13623_v18, %v13619_v24 }
 0x687   : > { %v13631_v1 = vpop.f32.mrf.mxu0  ;;  %7131 = vmatprep.subr.mxu1 %v6963_v12  ;;  %7043 = vmatpush1.msra.mxu0 %v6960_v5 }
 0x688   : > { %v13634_v37 = vpop.f32.mrf.mxu1  ;;  %7132 = vmatpush1.msra.mxu1 %v6962_v9  ;;  %7044 = vmatprep.subr.mxu0 %v6945_v46  ;;  %v6447_v5 = vadd.f32 %v13631_v1, %v13619_v24 }
 0x689   : > { %v6450_v52 = vpop.f32.mrf.mxu0  ;;  %7133 = vmatprep.subr.mxu1 %v6947_v49  ;;  %7045 = vmatpush1.msra.mxu0 %v6944_v60  ;;  %v6536_v12 = vadd.f32 %v13634_v37, %v13619_v24  ;;  %v6534_v60 = vadd.f32 %v13627_v44, %v13619_v24 }
 0x68a   : > { %v6539_v43 = vpop.f32.mrf.mxu1  ;;  %7134 = vmatpush1.msra.mxu1 %v6946_v63  ;;  %7046 = vmatprep.subr.mxu0 %v6929_v3  ;;  %v6451_v32 = vadd.f32 %v6450_v52, %v13612_v48  ;;  %v6917_v18 = vmax.f32 %v6447_v5, 0.0  ;;  %v6916_v52 = vmax.f32 %v6445_v55, 0.0 }
 0x68b   : > { %v6452_v27 = vpop.f32.mrf.mxu0  ;;  %7135 = vmatprep.subr.mxu1 %v6931_v28  ;;  %7047 = vmatpush1.msra.mxu0 %v6928_v41  ;;  %v6540_v58 = vadd.f32 %v6539_v43, %v13612_v48  ;;  %v6919_v41 = vmax.f32 %v6536_v12, 0.0 }
 0x68c   : > { %v6541_v22 = vpop.f32.mrf.mxu1  ;;  %7136 = vmatpush1.msra.mxu1 %v6930_v33  ;;  %7048 = vmatprep.subr.mxu0 %v6913_v30  ;;  %v6453_v61 = vadd.f32 %v6452_v27, %v13612_v48  ;;  %v6932_v63 = vmax.f32 %v6451_v32, 0.0  ;;  %v6918_v30 = vmax.f32 %v6534_v60, 0.0 }
 0x68d   : > { %v6456_v42 = vpop.f32.mrf.mxu0  ;;  %7137 = vmatprep.subr.mxu1 %v6915_v51  ;;  %7049 = vmatpush1.msra.mxu0 %v6912_v10  ;;  %v6542_v6 = vadd.f32 %v6541_v22, %v13612_v48  ;;  %v6934_v37 = vmax.f32 %v6540_v58, 0.0 }
 0x68e   : > { %v6545_v15 = vpop.f32.mrf.mxu1  ;;  %7138 = vmatpush1.msra.mxu1 %v6914_v54  ;;  %11112 = vmatmul.mubr.msk.f32.vlgmr.msra.gmra.mxu0 %vm1304_vm1, %v13636_v59  ;;  %v6457_v31 = vadd.f32 %v6456_v42, %v13606_v56  ;;  %v6933_v49 = vmax.f32 %v6453_v61, 0.0 }
 0x68f   : > { %v6458_v38 = vpop.f32.mrf.mxu0  ;;  %11116 = vmatmul.mubr.msk.f32.vlgmr.msra.gmra.mxu1 %vm1304_vm1, %v13636_v59  ;;  %7088 = vmatprep.mubr.f32.mxu0 %v14511_v25  ;;  %v6546_v19 = vadd.f32 %v6545_v15, %v13606_v56  ;;  %v6935_v1 = vmax.f32 %v6542_v6, 0.0 }
 0x690   : > { %v6547_v20 = vpop.f32.mrf.mxu1  ;;  %7177 = vmatprep.mubr.f32.mxu1 %v14511_v25  ;;  %v6459_v29 = vadd.f32 %v6458_v38, %v13606_v56  ;;  %v6948_v13 = vmax.f32 %v6457_v31, 0.0 }
 0x691   : > { %v6548_v47 = vadd.f32 %v6547_v20, %v13606_v56  ;;  %v6950_v40 = vmax.f32 %v6546_v19, 0.0 }
 0x692   : > { %11113 = vmatmul.mubr.msk.f32.gmra.mxu0 %vm1304_vm1, %v13643_v8  ;;  %v6949_v35 = vmax.f32 %v6459_v29, 0.0 }
 0x693   : > { %v6462_v4 = vpop.f32.mrf.mxu0  ;;  %v6551_v34 = vpop.f32.mrf.mxu1  ;;  %11117 = vmatmul.mubr.msk.f32.gmra.mxu1 %vm1304_vm1, %v13643_v8  ;;  %7094 = vmatprep.mubr.f32.mxu0 %v14511_v25  ;;  %v6951_v2 = vmax.f32 %v6548_v47, 0.0 }
 0x694   : > { %7183 = vmatprep.mubr.f32.mxu1 %v14511_v25  ;;  %v6463_v50 = vadd.f32 %v6462_v4, %v13604_v26  ;;  %v6552_v62 = vadd.f32 %v6551_v34, %v13604_v26 }
 0x695   : > { %v6464_v11 = vpop.f32.mrf.mxu0  ;;  %v6553_v36 = vpop.f32.mrf.mxu1 }
 0x696   : > { %v6465_v16 = vadd.f32 %v6464_v11, %v13604_v26  ;;  %v6554_v57 = vadd.f32 %v6553_v36, %v13604_v26  ;;  %11114 = vmatmul.mubr.msk.f32.gmra.mxu0 %vm1304_vm1, %v13651_v39  ;;  %v6964_v0 = vmax.f32 %v6463_v50, 0.0  ;;  %v6966_v14 = vmax.f32 %v6552_v62, 0.0 }
 0x697   : > { %11118 = vmatmul.mubr.msk.f32.gmra.mxu1 %vm1304_vm1, %v13651_v39  ;;  %7100 = vmatprep.mubr.f32.mxu0 %v14511_v25 }
 0x698   : > { %v6965_v45 = vmax.f32 %v6465_v16, 0.0  ;;  %v6967_v21 = vmax.f32 %v6554_v57, 0.0  ;;  %7189 = vmatprep.mubr.f32.mxu1 %v14511_v25 }
 0x699   : > { %v13670_v23 = vpop.f32.mrf.mxu0  ;;  %v13672_v53 = vpop.f32.mrf.mxu1 }
 0x69a   : > { %7220 = vmatprep.subr.mxu0 %v6965_v45  ;;  %7309 = vmatprep.subr.mxu1 %v6967_v21 }
 0x69b   : > { %v13680_v46 = vpop.f32.mrf.mxu0  ;;  %v13682_v9 = vpop.f32.mrf.mxu1  ;;  %7221 = vmatpush1.msra.mxu0 %v6964_v0  ;;  %7310 = vmatpush1.msra.mxu1 %v6966_v14 }
 0x69c   : > { %7222 = vmatprep.subr.mxu0 %v6949_v35  ;;  %7311 = vmatprep.subr.mxu1 %v6951_v2  ;;  %v6625_v58 = vadd.f32 %v13680_v46, %v13619_v24  ;;  %v6714_v35 = vadd.f32 %v13682_v9, %v13619_v24  ;;  %v6712_v46 = vadd.f32 %v13672_v53, %v13619_v24 }
 0x69d   : > { %v13690_v7 = vpop.f32.mrf.mxu0  ;;  %v13692_v3 = vpop.f32.mrf.mxu1  ;;  %7223 = vmatpush1.msra.mxu0 %v6948_v13  ;;  %7312 = vmatpush1.msra.mxu1 %v6950_v40  ;;  %v6623_v40 = vadd.f32 %v13670_v23, %v13619_v24 }
 0x69e   : > { %11115 = vmatmul.mubr.msk.f32.gmra.mxu0 %vm1304_vm1, %v13684_v17  ;;  %11119 = vmatmul.mubr.msk.f32.gmra.mxu1 %vm1304_vm1, %v13684_v17  ;;  %v6629_v14 = vadd.f32 %v13690_v7, %v13612_v48  ;;  %v6718_v32 = vadd.f32 %v13692_v3, %v13612_v48  ;;  %v6921_v23 = vmax.f32 %v6625_v58, 0.0  ;;  %v6923_v3 = vmax.f32 %v6714_v35, 0.0 }
 0x69f   : > { %v6630_v28 = vpop.f32.mrf.mxu0  ;;  %v6719_v44 = vpop.f32.mrf.mxu1  ;;  %7224 = vmatprep.subr.mxu0 %v6933_v49  ;;  %7313 = vmatprep.subr.mxu1 %v6935_v1 }
 0x6a0   : > { %7225 = vmatpush1.msra.mxu0 %v6932_v63  ;;  %7314 = vmatpush1.msra.mxu1 %v6934_v37  ;;  %v6631_v19 = vadd.f32 %v6630_v28, %v13612_v48  ;;  %v6720_v45 = vadd.f32 %v6719_v44, %v13612_v48  ;;  %v6936_v1 = vmax.f32 %v6629_v14, 0.0  ;;  %v6938_v7 = vmax.f32 %v6718_v32, 0.0 }
 0x6a1   : > { %v6634_v33 = vpop.f32.mrf.mxu0  ;;  %v6723_v43 = vpop.f32.mrf.mxu1  ;;  %7226 = vmatprep.subr.mxu0 %v6917_v18  ;;  %7315 = vmatprep.subr.mxu1 %v6919_v41  ;;  %v6920_v37 = vmax.f32 %v6623_v40, 0.0  ;;  %v6922_v18 = vmax.f32 %v6712_v46, 0.0 }
 0x6a2   : > { %7227 = vmatpush1.msra.mxu0 %v6916_v52  ;;  %7260 = vmatprep.mubr.f32.mxu0 %v14511_v25  ;;  %v6635_v36 = vadd.f32 %v6634_v33, %v13606_v56  ;;  %v6724_v29 = vadd.f32 %v6723_v43, %v13606_v56  ;;  %v6937_v55 = vmax.f32 %v6631_v19, 0.0  ;;  %v6939_v9 = vmax.f32 %v6720_v45, 0.0 }
 0x6a3   : > { %v6636_v10 = vpop.f32.mrf.mxu0  ;;  %v6725_v51 = vpop.f32.mrf.mxu1  ;;  %7316 = vmatpush1.msra.mxu1 %v6918_v30  ;;  %7349 = vmatprep.mubr.f32.mxu1 %v14511_v25 }
 0x6a4   : > { %11120 = vmatmul.mubr.msk.f32.vlgmr.msra.gmra.mxu0 %vm1304_vm1, %v13636_v59  ;;  %11124 = vmatmul.mubr.msk.f32.vlgmr.msra.gmra.mxu1 %vm1304_vm1, %v13636_v59  ;;  %v6637_v34 = vadd.f32 %v6636_v10, %v13606_v56  ;;  %v6726_v50 = vadd.f32 %v6725_v51, %v13606_v56  ;;  %v6952_v2 = vmax.f32 %v6635_v36, 0.0  ;;  %v6954_v5 = vmax.f32 %v6724_v29, 0.0 }
 0x6a5   : > { %v6640_v27 = vpop.f32.mrf.mxu0  ;;  %v6729_v54 = vpop.f32.mrf.mxu1  ;;  %7266 = vmatprep.mubr.f32.mxu0 %v14511_v25  ;;  %7355 = vmatprep.mubr.f32.mxu1 %v14511_v25 }
 0x6a6   : > { %v6641_v22 = vadd.f32 %v6640_v27, %v13604_v26  ;;  %v6730_v38 = vadd.f32 %v6729_v54, %v13604_v26  ;;  %v6953_v21 = vmax.f32 %v6637_v34, 0.0  ;;  %v6955_v61 = vmax.f32 %v6726_v50, 0.0 }
 0x6a7   : > { %v6642_v42 = vpop.f32.mrf.mxu0  ;;  %v6731_v15 = vpop.f32.mrf.mxu1 }
 0x6a8   : > { %v6643_v20 = vadd.f32 %v6642_v42, %v13604_v26  ;;  %v6732_v4 = vadd.f32 %v6731_v15, %v13604_v26  ;;  %11121 = vmatmul.mubr.msk.f32.gmra.mxu0 %vm1304_vm1, %v13643_v8  ;;  %11125 = vmatmul.mubr.msk.f32.gmra.mxu1 %vm1304_vm1, %v13643_v8  ;;  %v6968_v57 = vmax.f32 %v6641_v22, 0.0  ;;  %v6970_v31 = vmax.f32 %v6730_v38, 0.0 }
 0x6a9   : > { %7272 = vmatprep.mubr.f32.mxu0 %v14511_v25  ;;  %7361 = vmatprep.mubr.f32.mxu1 %v14511_v25 }
 0x6aa   : > { %v6969_v62 = vmax.f32 %v6643_v20, 0.0  ;;  %v6971_v11 = vmax.f32 %v6732_v4, 0.0 }
 0x6ab   : > { %v13720_v47 = vpop.f32.mrf.mxu0  ;;  %v13722_v16 = vpop.f32.mrf.mxu1 }
 0x6ac   : > { %11122 = vmatmul.mubr.msk.f32.gmra.mxu0 %vm1304_vm1, %v13651_v39  ;;  %11126 = vmatmul.mubr.msk.f32.gmra.mxu1 %vm1304_vm1, %v13651_v39  ;;  %v6801_v45 = vadd.f32 %v13720_v47, %v13619_v24 }
 0x6ad   : > { %v13730_v6 = vpop.f32.mrf.mxu0  ;;  %v13732_v0 = vpop.f32.mrf.mxu1  ;;  %7398 = vmatprep.subr.mxu0 %v6969_v62  ;;  %7487 = vmatprep.subr.mxu1 %v6971_v11 }
 0x6ae   : > { %7399 = vmatpush1.msra.mxu0 %v6968_v57  ;;  %7488 = vmatpush1.msra.mxu1 %v6970_v31  ;;  %v6803_v29 = vadd.f32 %v13730_v6, %v13619_v24  ;;  %v6892_v57 = vadd.f32 %v13732_v0, %v13619_v24  ;;  %v6924_v32 = vmax.f32 %v6801_v45, 0.0 }
 0x6af   : > { %v13742_v12 = vpop.f32.mrf.mxu0  ;;  %v13744_v13 = vpop.f32.mrf.mxu1  ;;  %7400 = vmatprep.subr.mxu0 %v6953_v21  ;;  %7489 = vmatprep.subr.mxu1 %v6955_v61 }
 0x6b0   : > { %7278 = vmatprep.mubr.f32.mxu0 %v14511_v25  ;;  %7367 = vmatprep.mubr.f32.mxu1 %v14511_v25  ;;  %v6807_v36 = vadd.f32 %v13742_v12, %v13612_v48  ;;  %v6925_v47 = vmax.f32 %v6803_v29, 0.0  ;;  %v6927_v14 = vmax.f32 %v6892_v57, 0.0 }
 0x6b1   : > { %v6808_v60 = vpop.f32.mrf.mxu0  ;;  %v6897_v49 = vpop.f32.mrf.mxu1  ;;  %7401 = vmatpush1.msra.mxu0 %v6952_v2  ;;  %7490 = vmatpush1.msra.mxu1 %v6954_v5 }
 0x6b2   : > { %11123 = vmatmul.mubr.msk.f32.gmra.mxu0 %vm1304_vm1, %v13684_v17  ;;  %11127 = vmatmul.mubr.msk.f32.gmra.mxu1 %vm1304_vm1, %v13684_v17  ;;  %v6898_v50 = vadd.f32 %v6897_v49, %v13612_v48  ;;  %v6940_v6 = vmax.f32 %v6807_v36, 0.0 }
 0x6b3   : > { %7402 = vmatprep.subr.mxu0 %v6937_v55  ;;  %7491 = vmatprep.subr.mxu1 %v6939_v9  ;;  %v6812_v63 = vpop.f32.mrf.mxu0  ;;  %v6901_v53 = vpop.f32.mrf.mxu1 }
 0x6b4   : > { %7403 = vmatpush1.msra.mxu0 %v6936_v1  ;;  %7492 = vmatpush1.msra.mxu1 %v6938_v7  ;;  %v6813_v38 = vadd.f32 %v6812_v63, %v13606_v56  ;;  %v6902_v20 = vadd.f32 %v6901_v53, %v13606_v56  ;;  %v6943_v61 = vmax.f32 %v6898_v50, 0.0  ;;  %v13828_v55 = vpop.permute.xlu0 %7003  ;;  %v13830_v9 = vpop.permute.xlu1 %6998 }
 0x6b5   : > { %7404 = vmatprep.subr.mxu0 %v6921_v23  ;;  %7493 = vmatprep.subr.mxu1 %v6923_v3  ;;  %v6814_v41 = vpop.f32.mrf.mxu0  ;;  %v6903_v28 = vpop.f32.mrf.mxu1 }
 0x6b6   : > { %7405 = vmatpush1.msra.mxu0 %v6920_v37  ;;  %7438 = vmatprep.mubr.f32.mxu0 %v14511_v25  ;;  %v6815_v54 = vadd.f32 %v6814_v41, %v13606_v56  ;;  %v6904_v22 = vadd.f32 %v6903_v28, %v13606_v56  ;;  %v6896_v56 = vadd.f32 %v13744_v13, %v13612_v48  ;;  %v6956_v31 = vmax.f32 %v6813_v38, 0.0 }
 0x6b7   : > { %7494 = vmatpush1.msra.mxu1 %v6922_v18  ;;  %7527 = vmatprep.mubr.f32.mxu1 %v14511_v25  ;;  %v6818_v44 = vpop.f32.mrf.mxu0  ;;  %v6907_v52 = vpop.f32.mrf.mxu1  ;;  %v6958_v19 = vmax.f32 %v6902_v20, 0.0 }
 0x6b8   : > { %11128 = vmatmul.mubr.msk.f32.vlgmr.msra.gmra.mxu0 %vm1304_vm1, %v13636_v59  ;;  %11132 = vmatmul.mubr.msk.f32.vlgmr.msra.gmra.mxu1 %vm1304_vm1, %v13636_v59  ;;  %v6819_v30 = vadd.f32 %v6818_v44, %v13604_v26  ;;  %v6908_v33 = vadd.f32 %v6907_v52, %v13604_v26  ;;  %v6957_v62 = vmax.f32 %v6815_v54, 0.0  ;;  %v6959_v11 = vmax.f32 %v6904_v22, 0.0  ;;  %v13838_v18 = vpop.permute.xlu0 %6993  ;;  %v13842_v44 = vpop.permute.xlu1 %6988 }
 0x6b9   : > { %v6820_v43 = vpop.f32.mrf.mxu0  ;;  %v6909_v10 = vpop.f32.mrf.mxu1  ;;  %7444 = vmatprep.mubr.f32.mxu0 %v14511_v25  ;;  %7533 = vmatprep.mubr.f32.mxu1 %v14511_v25  ;;  %v6942_v0 = vmax.f32 %v6896_v56, 0.0 }
 0x6ba   : > { %v6821_v51 = vadd.f32 %v6820_v43, %v13604_v26  ;;  %v6910_v27 = vadd.f32 %v6909_v10, %v13604_v26  ;;  %v6972_v4 = vmax.f32 %v6819_v30, 0.0  ;;  %v6974_v34 = vmax.f32 %v6908_v33, 0.0 }
 0x6bb   : > { %v6809_v26 = vadd.f32 %v6808_v60, %v13612_v48  ;;  %v6890_v48 = vadd.f32 %v13722_v16, %v13619_v24 }
 0x6bc   : > { %v6973_v42 = vmax.f32 %v6821_v51, 0.0  ;;  %v6975_v15 = vmax.f32 %v6910_v27, 0.0  ;;  %11129 = vmatmul.mubr.msk.f32.gmra.mxu0 %vm1304_vm1, %v13643_v8  ;;  %11133 = vmatmul.mubr.msk.f32.gmra.mxu1 %vm1304_vm1, %v13643_v8 }
 0x6bd   : > { %7450 = vmatprep.mubr.f32.mxu0 %v14511_v25  ;;  %7539 = vmatprep.mubr.f32.mxu1 %v14511_v25  ;;  %v6941_v21 = vmax.f32 %v6809_v26, 0.0  ;;  %v6926_v24 = vmax.f32 %v6890_v48, 0.0 }
 0x6be   : > { %7576 = vmatprep.subr.mxu0 %v6973_v42  ;;  %7665 = vmatprep.subr.mxu1 %v6975_v15 }
 0x6bf   : > { %7577 = vmatpush1.msra.mxu0 %v6972_v4  ;;  %7666 = vmatpush1.msra.mxu1 %v6974_v34 }
 0x6c0   : > { %11130 = vmatmul.mubr.msk.f32.gmra.mxu0 %vm1304_vm1, %v13651_v39  ;;  %11134 = vmatmul.mubr.msk.f32.gmra.mxu1 %vm1304_vm1, %v13651_v39 }
 0x6c1   : > { %7578 = vmatprep.subr.mxu0 %v6957_v62  ;;  %7667 = vmatprep.subr.mxu1 %v6959_v11 }
 0x6c2   : > { %7456 = vmatprep.mubr.f32.mxu0 %v14511_v25  ;;  %7545 = vmatprep.mubr.f32.mxu1 %v14511_v25 }
 0x6c3   : > { %7579 = vmatpush1.msra.mxu0 %v6956_v31  ;;  %7668 = vmatpush1.msra.mxu1 %v6958_v19 }
 0x6c4   : > { %11131 = vmatmul.mubr.msk.f32.gmra.mxu0 %vm1304_vm1, %v13684_v17  ;;  %11135 = vmatmul.mubr.msk.f32.gmra.mxu1 %vm1304_vm1, %v13684_v17 }
 0x6c5   : > { %7580 = vmatprep.subr.mxu0 %v6941_v21  ;;  %7669 = vmatprep.subr.mxu1 %v6943_v61 }
 0x6c6   : > { %7581 = vmatpush1.msra.mxu0 %v6940_v6  ;;  %7670 = vmatpush1.msra.mxu1 %v6942_v0 }
 0x6c7   : > { %7582 = vmatprep.subr.mxu0 %v6925_v47  ;;  %7671 = vmatprep.subr.mxu1 %v6927_v14  ;;  %v13863_v14 = vld [vmem:[%s14538_s4] sm:$0xff] }
 0x6c8   : > { %7583 = vmatpush1.msra.mxu0 %v6924_v32  ;;  %7616 = vmatprep.mubr.f32.mxu0 %v14511_v25 }
 0x6c9   : > { %7672 = vmatpush1.msra.mxu1 %v6926_v24  ;;  %7705 = vmatprep.mubr.f32.mxu1 %v14511_v25 }
 0x6ca   : > { %11136 = vmatmul.mubr.msk.f32.vlgmr.msra.gmra.mxu0 %vm1304_vm1, %v13636_v59  ;;  %11140 = vmatmul.mubr.msk.f32.vlgmr.msra.gmra.mxu1 %vm1304_vm1, %v13636_v59 }
 0x6cb   : > { %7622 = vmatprep.mubr.f32.mxu0 %v14511_v25  ;;  %7711 = vmatprep.mubr.f32.mxu1 %v14511_v25 }
 0x6ce   : > { %11137 = vmatmul.mubr.msk.f32.gmra.mxu0 %vm1304_vm1, %v13643_v8  ;;  %11141 = vmatmul.mubr.msk.f32.gmra.mxu1 %vm1304_vm1, %v13643_v8 }
 0x6cf   : > { %7628 = vmatprep.mubr.f32.mxu0 %v14511_v25  ;;  %7717 = vmatprep.mubr.f32.mxu1 %v14511_v25 }
 0x6d2   : > { %11138 = vmatmul.mubr.msk.f32.gmra.mxu0 %vm1304_vm1, %v13651_v39  ;;  %11142 = vmatmul.mubr.msk.f32.gmra.mxu1 %vm1304_vm1, %v13651_v39 }
 0x6d3   : > { %7634 = vmatprep.mubr.f32.mxu0 %v14511_v25  ;;  %7723 = vmatprep.mubr.f32.mxu1 %v14511_v25 }
 0x6d6   : > { %11139 = vmatmul.mubr.msk.f32.gmra.mxu0 %vm1304_vm1, %v13684_v17  ;;  %11143 = vmatmul.mubr.msk.f32.gmra.mxu1 %vm1304_vm1, %v13684_v17 }
 0x6d7   : > { %7888 = vmatprep.mubr.f32.mxu0 %v14511_v25  ;;  %7971 = vmatprep.mubr.f32.mxu1 %v14511_v25 }
 0x74e   : > { %v7084_v59 = vpop.f32.mrf.mxu0 }
 0x74f   : > { %v7173_v8 = vpop.f32.mrf.mxu1  ;;  %v7085_v34 = vadd.f32 %v7084_v59, %v13842_v44 }
 0x750   : > { %v7086_v16 = vpop.f32.mrf.mxu0  ;;  %v7174_v26 = vadd.f32 %v7173_v8, %v13842_v44 }
 0x751   : > { %v7175_v58 = vpop.f32.mrf.mxu1  ;;  %v7087_v15 = vadd.f32 %v7086_v16, %v13842_v44  ;;  %v7730_v61 = vmax.f32 %v7085_v34, 0.0  ;;  %v13874_v16 = vld [vmem:[%s14538_s4 + $0x8] sm:$0xff] }
 0x752   : > { %v7090_v35 = vpop.f32.mrf.mxu0  ;;  %v7176_v38 = vadd.f32 %v7175_v58, %v13842_v44  ;;  %v7732_v6 = vmax.f32 %v7174_v26, 0.0 }
 0x753   : > { %v7179_v39 = vpop.f32.mrf.mxu1  ;;  %v7091_v10 = vadd.f32 %v7090_v35, %v13838_v18  ;;  %v7731_v48 = vmax.f32 %v7087_v15, 0.0 }
 0x754   : > { %v7092_v2 = vpop.f32.mrf.mxu0  ;;  %v7180_v51 = vadd.f32 %v7179_v39, %v13838_v18  ;;  %v7733_v21 = vmax.f32 %v7176_v38, 0.0  ;;  %v13885_v39 = vld [vmem:[%s14538_s4 + $0x10] sm:$0x1] }
 0x755   : > { %v7181_v5 = vpop.f32.mrf.mxu1  ;;  %v7093_v52 = vadd.f32 %v7092_v2, %v13838_v18  ;;  %v7746_v57 = vmax.f32 %v7091_v10, 0.0 }
 0x756   : > { %v7096_v12 = vpop.f32.mrf.mxu0  ;;  %v7182_v30 = vadd.f32 %v7181_v5, %v13838_v18  ;;  %v7748_v31 = vmax.f32 %v7180_v51, 0.0 }
 0x757   : > { %v7185_v13 = vpop.f32.mrf.mxu1  ;;  %v7097_v41 = vadd.f32 %v7096_v12, %v13830_v9  ;;  %v7747_v56 = vmax.f32 %v7093_v52, 0.0 }
 0x758   : > { %v7098_v40 = vpop.f32.mrf.mxu0  ;;  %v7186_v28 = vadd.f32 %v7185_v13, %v13830_v9  ;;  %v7749_v29 = vmax.f32 %v7182_v30, 0.0 }
 0x759   : > { %v7187_v46 = vpop.f32.mrf.mxu1  ;;  %v7099_v3 = vadd.f32 %v7098_v40, %v13830_v9  ;;  %v7762_v50 = vmax.f32 %v7097_v41, 0.0 }
 0x75a   : > { %v7188_v63 = vadd.f32 %v7187_v46, %v13830_v9  ;;  %v7764_v62 = vmax.f32 %v7186_v28, 0.0 }
 0x75b   : > { %v7763_v20 = vmax.f32 %v7099_v3, 0.0 }
 0x75c   : > { %v7765_v4 = vmax.f32 %v7188_v63, 0.0 }
 0x75e   : > { %v7102_v17 = vpop.f32.mrf.mxu0  ;;  %v7191_v60 = vpop.f32.mrf.mxu1 }
 0x75f   : > { %v7103_v49 = vadd.f32 %v7102_v17, %v13828_v55  ;;  %v7192_v1 = vadd.f32 %v7191_v60, %v13828_v55 }
 0x760   : > { %v7104_v7 = vpop.f32.mrf.mxu0  ;;  %v7193_v23 = vpop.f32.mrf.mxu1 }
 0x761   : > { %v7105_v53 = vadd.f32 %v7104_v7, %v13828_v55  ;;  %v7194_v37 = vadd.f32 %v7193_v23, %v13828_v55  ;;  %v7778_v27 = vmax.f32 %v7103_v49, 0.0  ;;  %v7780_v54 = vmax.f32 %v7192_v1, 0.0 }
 0x763   : > { %v7779_v33 = vmax.f32 %v7105_v53, 0.0  ;;  %v7781_v43 = vmax.f32 %v7194_v37, 0.0 }
 0x764   : > { %v13848_v22 = vpop.f32.mrf.mxu0  ;;  %v13850_v42 = vpop.f32.mrf.mxu1 }
 0x765   : > { %7848 = vmatprep.subr.mxu0 %v7779_v33  ;;  %7931 = vmatprep.subr.mxu1 %v7781_v43 }
 0x766   : > { %v13856_v11 = vpop.f32.mrf.mxu0  ;;  %v13858_v36 = vpop.f32.mrf.mxu1  ;;  %7849 = vmatpush1.msra.mxu0 %v7778_v27  ;;  %7932 = vmatpush1.msra.mxu1 %v7780_v54  ;;  %v7263_v27 = vadd.f32 %v13848_v22, %v13842_v44  ;;  %v7352_v54 = vadd.f32 %v13850_v42, %v13842_v44 }
 0x767   : > { %7850 = vmatprep.subr.mxu0 %v7763_v20  ;;  %7933 = vmatprep.subr.mxu1 %v7765_v4  ;;  %v7265_v33 = vadd.f32 %v13856_v11, %v13842_v44  ;;  %v7354_v43 = vadd.f32 %v13858_v36, %v13842_v44 }
 0x768   : > { %v7268_v19 = vpop.f32.mrf.mxu0  ;;  %v7357_v45 = vpop.f32.mrf.mxu1  ;;  %7851 = vmatpush1.msra.mxu0 %v7762_v50  ;;  %7934 = vmatpush1.msra.mxu1 %v7764_v62 }
 0x769   : > { %7852 = vmatprep.subr.mxu0 %v7747_v56  ;;  %7935 = vmatprep.subr.mxu1 %v7749_v29  ;;  %v7269_v53 = vadd.f32 %v7268_v19, %v13838_v18  ;;  %v7358_v37 = vadd.f32 %v7357_v45, %v13838_v18  ;;  %v7735_v22 = vmax.f32 %v7265_v33, 0.0  ;;  %v7737_v42 = vmax.f32 %v7354_v43, 0.0 }
 0x76a   : > { %v7270_v0 = vpop.f32.mrf.mxu0  ;;  %v7359_v47 = vpop.f32.mrf.mxu1  ;;  %7853 = vmatpush1.msra.mxu0 %v7746_v57  ;;  %7936 = vmatpush1.msra.mxu1 %v7748_v31  ;;  %v7734_v56 = vmax.f32 %v7263_v27, 0.0  ;;  %v7736_v29 = vmax.f32 %v7352_v54, 0.0 }
 0x76b   : > { %7854 = vmatprep.subr.mxu0 %v7731_v48  ;;  %7937 = vmatprep.subr.mxu1 %v7733_v21  ;;  %v7271_v7 = vadd.f32 %v7270_v0, %v13838_v18  ;;  %v7360_v23 = vadd.f32 %v7359_v47, %v13838_v18  ;;  %v7750_v50 = vmax.f32 %v7269_v53, 0.0  ;;  %v7752_v62 = vmax.f32 %v7358_v37, 0.0 }
 0x76c   : > { %v7274_v32 = vpop.f32.mrf.mxu0  ;;  %v7363_v24 = vpop.f32.mrf.mxu1  ;;  %7855 = vmatpush1.msra.mxu0 %v7730_v61  ;;  %7938 = vmatpush1.msra.mxu1 %v7732_v6 }
 0x76d   : > { %11144 = vmatmul.mubr.msk.f32.vlgmr.msra.gmra.mxu0 %vm1304_vm1, %v13863_v14  ;;  %11147 = vmatmul.mubr.msk.f32.vlgmr.msra.gmra.mxu1 %vm1304_vm1, %v13863_v14  ;;  %v7275_v49 = vadd.f32 %v7274_v32, %v13830_v9  ;;  %v7364_v1 = vadd.f32 %v7363_v24, %v13830_v9  ;;  %v7751_v34 = vmax.f32 %v7271_v7, 0.0  ;;  %v7753_v26 = vmax.f32 %v7360_v23, 0.0 }
 0x76e   : > { %v7276_v59 = vpop.f32.mrf.mxu0  ;;  %v7365_v8 = vpop.f32.mrf.mxu1  ;;  %7894 = vmatprep.mubr.f32.mxu0 %v14511_v25  ;;  %7977 = vmatprep.mubr.f32.mxu1 %v14511_v25 }
 0x76f   : > { %v7277_v2 = vadd.f32 %v7276_v59, %v13830_v9  ;;  %v7366_v46 = vadd.f32 %v7365_v8, %v13830_v9  ;;  %v7766_v15 = vmax.f32 %v7275_v49, 0.0  ;;  %v7768_v38 = vmax.f32 %v7364_v1, 0.0 }
 0x771   : > { %11145 = vmatmul.mubr.msk.f32.gmra.mxu0 %vm1304_vm1, %v13874_v16  ;;  %11148 = vmatmul.mubr.msk.f32.gmra.mxu1 %vm1304_vm1, %v13874_v16  ;;  %v7767_v10 = vmax.f32 %v7277_v2, 0.0  ;;  %v7769_v51 = vmax.f32 %v7366_v46, 0.0 }
 0x772   : > { %v7280_v58 = vpop.f32.mrf.mxu0  ;;  %v7369_v35 = vpop.f32.mrf.mxu1  ;;  %7900 = vmatprep.mubr.f32.mxu0 %v14511_v25  ;;  %7983 = vmatprep.mubr.f32.mxu1 %v14511_v25 }
 0x773   : > { %v7281_v5 = vadd.f32 %v7280_v58, %v13828_v55  ;;  %v7370_v12 = vadd.f32 %v7369_v35, %v13828_v55 }
 0x774   : > { %v7282_v13 = vpop.f32.mrf.mxu0  ;;  %v7371_v40 = vpop.f32.mrf.mxu1 }
 0x775   : > { %v7283_v17 = vadd.f32 %v7282_v13, %v13828_v55  ;;  %v7372_v60 = vadd.f32 %v7371_v40, %v13828_v55  ;;  %11146 = vmatmul.mubr.msk.f32.gmra.mxu0 %vm1304_vm1, %v13885_v39  ;;  %11149 = vmatmul.mubr.msk.f32.gmra.mxu1 %vm1304_vm1, %v13885_v39  ;;  %v7782_v41 = vmax.f32 %v7281_v5, 0.0  ;;  %v7784_v28 = vmax.f32 %v7370_v12, 0.0 }
 0x776   : > { %8054 = vmatprep.mubr.f32.mxu0 %v14511_v25  ;;  %8137 = vmatprep.mubr.f32.mxu1 %v14511_v25 }
 0x777   : > { %v7783_v3 = vmax.f32 %v7283_v17, 0.0  ;;  %v7785_v63 = vmax.f32 %v7372_v60, 0.0 }
 0x778   : > { %v13905_v52 = vpop.f32.mrf.mxu0  ;;  %v13907_v30 = vpop.f32.mrf.mxu1 }
 0x779   : > { %8014 = vmatprep.subr.mxu0 %v7783_v3  ;;  %8097 = vmatprep.subr.mxu1 %v7785_v63 }
 0x77a   : > { %v13917_v20 = vpop.f32.mrf.mxu0  ;;  %v13919_v4 = vpop.f32.mrf.mxu1  ;;  %8015 = vmatpush1.msra.mxu0 %v7782_v41  ;;  %8098 = vmatpush1.msra.mxu1 %v7784_v28  ;;  %v7441_v41 = vadd.f32 %v13905_v52, %v13842_v44  ;;  %v7530_v28 = vadd.f32 %v13907_v30, %v13842_v44 }
 0x77b   : > { %8016 = vmatprep.subr.mxu0 %v7767_v10  ;;  %8099 = vmatprep.subr.mxu1 %v7769_v51  ;;  %v7443_v3 = vadd.f32 %v13917_v20, %v13842_v44  ;;  %v7532_v63 = vadd.f32 %v13919_v4, %v13842_v44 }
 0x77c   : > { %v7446_v11 = vpop.f32.mrf.mxu0  ;;  %v7535_v36 = vpop.f32.mrf.mxu1  ;;  %8017 = vmatpush1.msra.mxu0 %v7766_v15  ;;  %8100 = vmatpush1.msra.mxu1 %v7768_v38 }
 0x77d   : > { %8018 = vmatprep.subr.mxu0 %v7751_v34  ;;  %8101 = vmatprep.subr.mxu1 %v7753_v26  ;;  %v7447_v17 = vadd.f32 %v7446_v11, %v13838_v18  ;;  %v7536_v60 = vadd.f32 %v7535_v36, %v13838_v18  ;;  %v7739_v52 = vmax.f32 %v7443_v3, 0.0  ;;  %v7741_v30 = vmax.f32 %v7532_v63, 0.0 }
 0x77e   : > { %v7448_v57 = vpop.f32.mrf.mxu0  ;;  %v7537_v31 = vpop.f32.mrf.mxu1  ;;  %8019 = vmatpush1.msra.mxu0 %v7750_v50  ;;  %8102 = vmatpush1.msra.mxu1 %v7752_v62  ;;  %v7738_v34 = vmax.f32 %v7441_v41, 0.0  ;;  %v7740_v26 = vmax.f32 %v7530_v28, 0.0  ;;  %v11378_v41 = vld [vmem:[%s11659_s18] sm:$0xff]  ;;  %v11379_v28 = vld [vmem:[%s11659_s18 + $0x10] sm:$0xff] }
 0x77f   : > { %8020 = vmatprep.subr.mxu0 %v7735_v22  ;;  %8103 = vmatprep.subr.mxu1 %v7737_v42  ;;  %v7449_v12 = vadd.f32 %v7448_v57, %v13838_v18  ;;  %v7538_v13 = vadd.f32 %v7537_v31, %v13838_v18  ;;  %v7754_v15 = vmax.f32 %v7447_v17, 0.0  ;;  %v7756_v38 = vmax.f32 %v7536_v60, 0.0 }
 0x780   : > { %v7452_v19 = vpop.f32.mrf.mxu0  ;;  %v7541_v45 = vpop.f32.mrf.mxu1  ;;  %8021 = vmatpush1.msra.mxu0 %v7734_v56  ;;  %8104 = vmatpush1.msra.mxu1 %v7736_v29 }
 0x781   : > { %11150 = vmatmul.mubr.msk.f32.vlgmr.msra.gmra.mxu0 %vm1304_vm1, %v13863_v14  ;;  %11153 = vmatmul.mubr.msk.f32.vlgmr.msra.gmra.mxu1 %vm1304_vm1, %v13863_v14  ;;  %v7453_v2 = vadd.f32 %v7452_v19, %v13830_v9  ;;  %v7542_v5 = vadd.f32 %v7541_v45, %v13830_v9  ;;  %v7755_v27 = vmax.f32 %v7449_v12, 0.0  ;;  %v7757_v54 = vmax.f32 %v7538_v13, 0.0 }
 0x782   : > { %v7454_v48 = vpop.f32.mrf.mxu0  ;;  %v7543_v21 = vpop.f32.mrf.mxu1  ;;  %8060 = vmatprep.mubr.f32.mxu0 %v14511_v25  ;;  %8143 = vmatprep.mubr.f32.mxu1 %v14511_v25 }
 0x783   : > { %v7455_v59 = vadd.f32 %v7454_v48, %v13830_v9  ;;  %v7544_v8 = vadd.f32 %v7543_v21, %v13830_v9  ;;  %v7770_v33 = vmax.f32 %v7453_v2, 0.0  ;;  %v7772_v43 = vmax.f32 %v7542_v5, 0.0 }
 0x784   : > { %v7458_v61 = vpop.f32.mrf.mxu0  ;;  %v7547_v6 = vpop.f32.mrf.mxu1 }
 0x785   : > { %11151 = vmatmul.mubr.msk.f32.gmra.mxu0 %vm1304_vm1, %v13874_v16  ;;  %11154 = vmatmul.mubr.msk.f32.gmra.mxu1 %vm1304_vm1, %v13874_v16  ;;  %v7459_v0 = vadd.f32 %v7458_v61, %v13828_v55  ;;  %v7548_v47 = vadd.f32 %v7547_v6, %v13828_v55  ;;  %v7771_v53 = vmax.f32 %v7455_v59, 0.0  ;;  %v7773_v37 = vmax.f32 %v7544_v8, 0.0 }
 0x786   : > { %v7460_v32 = vpop.f32.mrf.mxu0  ;;  %v7549_v24 = vpop.f32.mrf.mxu1  ;;  %8066 = vmatprep.mubr.f32.mxu0 %v14511_v25  ;;  %8149 = vmatprep.mubr.f32.mxu1 %v14511_v25 }
 0x787   : > { %v7461_v58 = vadd.f32 %v7460_v32, %v13828_v55  ;;  %v7550_v35 = vadd.f32 %v7549_v24, %v13828_v55  ;;  %v7786_v49 = vmax.f32 %v7459_v0, 0.0  ;;  %v7788_v1 = vmax.f32 %v7548_v47, 0.0 }
 0x789   : > { %v7787_v40 = vmax.f32 %v7461_v58, 0.0  ;;  %v7789_v46 = vmax.f32 %v7550_v35, 0.0  ;;  %11152 = vmatmul.mubr.msk.f32.gmra.mxu0 %vm1304_vm1, %v13885_v39  ;;  %11155 = vmatmul.mubr.msk.f32.gmra.mxu1 %vm1304_vm1, %v13885_v39 }
 0x78a   : > { %v13949_v7 = vpop.f32.mrf.mxu0  ;;  %v13951_v23 = vpop.f32.mrf.mxu1  ;;  %8220 = vmatprep.mubr.f32.mxu0 %v14511_v25  ;;  %8303 = vmatprep.mubr.f32.mxu1 %v14511_v25 }
 0x78b   : > { %8180 = vmatprep.subr.mxu0 %v7787_v40  ;;  %8263 = vmatprep.subr.mxu1 %v7789_v46  ;;  %v7619_v40 = vadd.f32 %v13949_v7, %v13842_v44 }
 0x78c   : > { %v13963_v10 = vpop.f32.mrf.mxu0  ;;  %v13965_v51 = vpop.f32.mrf.mxu1  ;;  %8181 = vmatpush1.msra.mxu0 %v7786_v49  ;;  %8264 = vmatpush1.msra.mxu1 %v7788_v1 }
 0x78d   : > { %8182 = vmatprep.subr.mxu0 %v7771_v53  ;;  %8265 = vmatprep.subr.mxu1 %v7773_v37  ;;  %v7710_v5 = vadd.f32 %v13965_v51, %v13842_v44  ;;  %v7742_v7 = vmax.f32 %v7619_v40, 0.0  ;;  %v11377_v37 = vld [vmem:[%s11659_s18 + $0x18] sm:$0xff]  ;;  %v11384_v51 = vld [vmem:[%s11659_s18 + $0x48] sm:$0xff] }
 0x78e   : > { %v7624_v20 = vpop.f32.mrf.mxu0  ;;  %v7713_v4 = vpop.f32.mrf.mxu1  ;;  %8183 = vmatpush1.msra.mxu0 %v7770_v33  ;;  %8266 = vmatpush1.msra.mxu1 %v7772_v43  ;;  %v11381_v33 = vld [vmem:[%s11659_s18 + $0x38] sm:$0xff]  ;;  %v11382_v43 = vld [vmem:[%s11659_s18 + $0x20] sm:$0xff] }
 0x78f   : > { %8184 = vmatprep.subr.mxu0 %v7755_v27  ;;  %8267 = vmatprep.subr.mxu1 %v7757_v54  ;;  %v7625_v58 = vadd.f32 %v7624_v20, %v13838_v18  ;;  %v7745_v53 = vmax.f32 %v7710_v5, 0.0  ;;  %v11385_v27 = vld [vmem:[%s11659_s18 + $0x58] sm:$0xff]  ;;  %v11386_v54 = vld [vmem:[%s11659_s18 + $0x40] sm:$0xff] }
 0x790   : > { %v7626_v50 = vpop.f32.mrf.mxu0  ;;  %v7715_v62 = vpop.f32.mrf.mxu1  ;;  %8185 = vmatpush1.msra.mxu0 %v7754_v15  ;;  %8268 = vmatpush1.msra.mxu1 %v7756_v38  ;;  %v11387_v15 = vld [vmem:[%s11659_s18 + $0x50] sm:$0xff]  ;;  %v11388_v38 = vld [vmem:[%s11659_s18 + $0x68] sm:$0xff]  ;;  %v11389_v20 = vld [vmem:[%s11659_s18 + $0x78] sm:$0xff] }
 0x791   : > { %8186 = vmatprep.subr.mxu0 %v7739_v52  ;;  %8269 = vmatprep.subr.mxu1 %v7741_v30  ;;  %v7627_v32 = vadd.f32 %v7626_v50, %v13838_v18  ;;  %v7716_v24 = vadd.f32 %v7715_v62, %v13838_v18  ;;  %v7758_v1 = vmax.f32 %v7625_v58, 0.0  ;;  %v11391_v52 = vld [vmem:[%s11659_s18 + $0x70] sm:$0xff] }
 0x792   : > { %v7630_v11 = vpop.f32.mrf.mxu0  ;;  %v7719_v36 = vpop.f32.mrf.mxu1  ;;  %8187 = vmatpush1.msra.mxu0 %v7738_v34  ;;  %8270 = vmatpush1.msra.mxu1 %v7740_v26 }
 0x793   : > { %11156 = vmatmul.mubr.msk.f32.vlgmr.msra.gmra.mxu0 %vm1304_vm1, %v13863_v14  ;;  %11159 = vmatmul.mubr.msk.f32.vlgmr.msra.gmra.mxu1 %vm1304_vm1, %v13863_v14  ;;  %v7631_v0 = vadd.f32 %v7630_v11, %v13830_v9  ;;  %v7720_v47 = vadd.f32 %v7719_v36, %v13830_v9  ;;  %v7759_v60 = vmax.f32 %v7627_v32, 0.0  ;;  %v7761_v49 = vmax.f32 %v7716_v24, 0.0  ;;  %v14089_v36 = vpop.permute.xlu1 %7802 }
 0x794   : > { %v7632_v22 = vpop.f32.mrf.mxu0  ;;  %v7721_v42 = vpop.f32.mrf.mxu1  ;;  %8226 = vmatprep.mubr.f32.mxu0 %v14511_v25  ;;  %8309 = vmatprep.mubr.f32.mxu1 %v14511_v25 }
 0x795   : > { %v7633_v48 = vadd.f32 %v7632_v22, %v13830_v9  ;;  %v7722_v21 = vadd.f32 %v7721_v42, %v13830_v9  ;;  %v7621_v9 = vadd.f32 %v13963_v10, %v13842_v44  ;;  %v7774_v46 = vmax.f32 %v7631_v0, 0.0  ;;  %v11383_v10 = vld [vmem:[%s11659_s18 + $0x30] sm:$0xff] }
 0x796   : > { %v7636_v56 = vpop.f32.mrf.mxu0  ;;  %v7725_v29 = vpop.f32.mrf.mxu1  ;;  %v7776_v17 = vmax.f32 %v7720_v47, 0.0 }
 0x797   : > { %11157 = vmatmul.mubr.msk.f32.gmra.mxu0 %vm1304_vm1, %v13874_v16  ;;  %11160 = vmatmul.mubr.msk.f32.gmra.mxu1 %vm1304_vm1, %v13874_v16  ;;  %v7637_v57 = vadd.f32 %v7636_v56, %v13828_v55  ;;  %v7726_v31 = vadd.f32 %v7725_v29, %v13828_v55  ;;  %v7775_v12 = vmax.f32 %v7633_v48, 0.0  ;;  %v7777_v13 = vmax.f32 %v7722_v21, 0.0 }
 0x798   : > { %v7638_v19 = vpop.f32.mrf.mxu0  ;;  %v7727_v45 = vpop.f32.mrf.mxu1  ;;  %8232 = vmatprep.mubr.f32.mxu0 %v14511_v25  ;;  %8315 = vmatprep.mubr.f32.mxu1 %v14511_v25  ;;  %v7743_v63 = vmax.f32 %v7621_v9, 0.0  ;;  %v8511_v48 = vlaneseq }
 0x799   : > { %v7639_v61 = vadd.f32 %v7638_v19, %v13828_v55  ;;  %v7728_v6 = vadd.f32 %v7727_v45, %v13828_v55  ;;  %v7714_v55 = vadd.f32 %v7713_v4, %v13838_v18  ;;  %v7790_v35 = vmax.f32 %v7637_v57, 0.0  ;;  %v11390_v4 = vld [vmem:[%s11659_s18 + $0x60] sm:$0xff]  ;;  %v14095_v57 = vpop.permute.xlu1 %9300 }
 0x79a   : > { %v7792_v2 = vmax.f32 %v7726_v31, 0.0  ;;  %v7708_v18 = vadd.f32 %v13951_v23, %v13842_v44  ;;  %v11376_v23 = vld [vmem:[%s11659_s18 + $0x8] sm:$0xff]  ;;  %v11519_v19 = vmov 1966171168   ;;  %v8512_v24 = vshrl.u32 %v8511_v48, 7 }
 0x79b   : > { %v7791_v59 = vmax.f32 %v7639_v61, 0.0  ;;  %v7793_v8 = vmax.f32 %v7728_v6, 0.0  ;;  %11158 = vmatmul.mubr.msk.f32.gmra.mxu0 %vm1304_vm1, %v13885_v39  ;;  %11161 = vmatmul.mubr.msk.f32.gmra.mxu1 %vm1304_vm1, %v13885_v39  ;;  %v7760_v3 = vmax.f32 %v7714_v55, 0.0  ;;  %v8509_v45 = vunpack.c.l.s4 %v11519_v19 }
 0x79c   : > { %8386 = vmatprep.mubr.f32.mxu0 %v14511_v25  ;;  %8469 = vmatprep.mubr.f32.mxu1 %v14511_v25  ;;  %v7744_v44 = vmax.f32 %v7708_v18, 0.0 }
 0x79d   : > { %8346 = vmatprep.subr.mxu0 %v7791_v59  ;;  %8429 = vmatprep.subr.mxu1 %v7793_v8  ;;  %v14101_v0 = vpop.permute.xlu1 %7812  ;;  %v8510_v32 = vunpack.c.0.s8 %v8509_v45 }
 0x79e   : > { %8347 = vmatpush1.msra.mxu0 %v7790_v35  ;;  %8430 = vmatpush1.msra.mxu1 %v7792_v2 }
 0x79f   : > { %8348 = vmatprep.subr.mxu0 %v7775_v12  ;;  %8431 = vmatprep.subr.mxu1 %v7777_v13  ;;  %v14115_v12 = vsub.s32 %v8510_v32, %v8512_v24 }
 0x7a0   : > { %8349 = vmatpush1.msra.mxu0 %v7774_v46  ;;  %8432 = vmatpush1.msra.mxu1 %v7776_v17 }
 0x7a1   : > { %8350 = vmatprep.subr.mxu0 %v7759_v60  ;;  %8433 = vmatprep.subr.mxu1 %v7761_v49 }
 0x7a2   : > { %8351 = vmatpush1.msra.mxu0 %v7758_v1  ;;  %8434 = vmatpush1.msra.mxu1 %v7760_v3 }
 0x7a3   : > { %8352 = vmatprep.subr.mxu0 %v7743_v63  ;;  %8435 = vmatprep.subr.mxu1 %v7745_v53 }
 0x7a4   : > { %8353 = vmatpush1.msra.mxu0 %v7742_v7  ;;  %8436 = vmatpush1.msra.mxu1 %v7744_v44 }
 0x7a5   : > { %11162 = vmatmul.mubr.msk.f32.vlgmr.msra.gmra.mxu0 %vm1304_vm1, %v13863_v14  ;;  %11165 = vmatmul.mubr.msk.f32.vlgmr.msra.gmra.mxu1 %vm1304_vm1, %v13863_v14  ;;  %v11380_v14 = vld [vmem:[%s11659_s18 + $0x28] sm:$0xff]  ;;  %s14128_s18 = sand.u32 1, %s11504_s22  }
 0x7a6   : > { %8392 = vmatprep.mubr.f32.mxu0 %v14511_v25  ;;  %8475 = vmatprep.mubr.f32.mxu1 %v14511_v25  ;;  %s10821_s19 = sshll.u32 %s14128_s18, 4  ;;  %s10683_s26 = scalar_lea.sflag [#allocation7], %s14128_s18 }
 0x7a7   : > { %8644 = vmatprep.subr.mxu0 %v11376_v23  ;;  %8721 = vmatprep.subr.mxu1 %v11377_v37  ;;  %s14147_s20 = scalar_lea.vmem [#allocation6], %s10821_s19 }
 0x7a8   : > { %8645 = vmatpush1.msra.mxu0 %v11378_v41  ;;  %8722 = vmatpush1.msra.mxu1 %v11379_v28  ;;  %s10711_s17 = sshll.u32 %s14147_s20, 4  ;;  %s10712_s17 = int_to_ptr.vmem [resolvable:$true] %s10711_s17 }
 0x7a9   : > { %11163 = vmatmul.mubr.msk.f32.gmra.mxu0 %vm1304_vm1, %v13874_v16  ;;  %11166 = vmatmul.mubr.msk.f32.gmra.mxu1 %vm1304_vm1, %v13874_v16  ;;  %v8606_v16 = vld [vmem:[%s14464_s6] sm:$0xff]  ;;  %s11418_s28 = scalar_lea.vmem %s10712_s17, 256  ;;  %p11425_p11 = scmp.lt.s32.totalorder %s10712_s17, %s11423_s15 }
 0x7aa   : > { %8398 = vmatprep.mubr.f32.mxu0 %v14511_v25  ;;  %8481 = vmatprep.mubr.f32.mxu1 %v14511_v25  ;;  %p11419_p6 = scmp.ne.s32.totalorder %s10712_s17, %s11418_s28  ;;  %p11426_p12 = scmp.lt.s32.totalorder %s11424_s1, %s11418_s28 }
 0x7ab   : > { %8798 = vmatprep.subr.mxu0 %v11380_v14  ;;  %8875 = vmatprep.subr.mxu1 %v11381_v33 }
 0x7ac   : > { %p11420_p9 = pnand %p11419_p6, %p11625_p5  ;;  %p11427_p13 = por %p11426_p12, %p11425_p11 }
 0x7ad   : > { %11164 = vmatmul.mubr.msk.f32.gmra.mxu0 %vm1304_vm1, %v13885_v39  ;;  %11167 = vmatmul.mubr.msk.f32.gmra.mxu1 %vm1304_vm1, %v13885_v39  ;;  %v8607_v39 = vld [vmem:[%s14464_s6 + $0x8] sm:$0xff] }
 0x7ae   : > { %8678 = vmatprep.mubr.f32.mxu0 %v14511_v25  ;;  %8755 = vmatprep.mubr.f32.mxu1 %v14511_v25  ;;  %p11421_p10 = pneg %p11420_p9 }
 0x7b0   : > { %p11428_p0 = pnand %p11427_p13, %p11421_p10 }
 0x7b1   : > { %11168 = vmatmul.mubr.msk.f32.vlgmr.msra.gmra.mxu0 %vm486_vm0, %v8606_v16  ;;  %11170 = vmatmul.mubr.msk.f32.vlgmr.msra.gmra.mxu1 %vm486_vm0, %v8606_v16 }
 0x7b2   : > { %8684 = vmatprep.mubr.f32.mxu0 %v14511_v25  ;;  %8761 = vmatprep.mubr.f32.mxu1 %v14511_v25 }
 0x7b3   : > { %8799 = vmatpush1.msra.mxu0 %v11382_v43  ;;  %8876 = vmatpush1.msra.mxu1 %v11383_v10 }
 0x7b4   : > { %8952 = vmatprep.subr.mxu0 %v11384_v51  ;;  %9029 = vmatprep.subr.mxu1 %v11385_v27 }
 0x7b5   : > { %11169 = vmatmul.mubr.msk.f32.gmra.mxu0 %vm486_vm0, %v8607_v39  ;;  %11171 = vmatmul.mubr.msk.f32.gmra.mxu1 %vm486_vm0, %v8607_v39 }
 0x7b6   : > { %8832 = vmatprep.mubr.f32.mxu0 %v14511_v25  ;;  %8909 = vmatprep.mubr.f32.mxu1 %v14511_v25 }
 0x7b9   : > { %11172 = vmatmul.mubr.msk.f32.vlgmr.msra.gmra.mxu0 %vm486_vm0, %v8606_v16  ;;  %11174 = vmatmul.mubr.msk.f32.vlgmr.msra.gmra.mxu1 %vm486_vm0, %v8606_v16 }
 0x7ba   : > { %8838 = vmatprep.mubr.f32.mxu0 %v14511_v25  ;;  %8915 = vmatprep.mubr.f32.mxu1 %v14511_v25 }
 0x7bb   : > { %8953 = vmatpush1.msra.mxu0 %v11386_v54  ;;  %9030 = vmatpush1.msra.mxu1 %v11387_v15 }
 0x7bc   : > { %9106 = vmatprep.subr.mxu0 %v11388_v38  ;;  %9183 = vmatprep.subr.mxu1 %v11389_v20 }
 0x7bd   : > { %11173 = vmatmul.mubr.msk.f32.gmra.mxu0 %vm486_vm0, %v8607_v39  ;;  %11175 = vmatmul.mubr.msk.f32.gmra.mxu1 %vm486_vm0, %v8607_v39 }
 0x7be   : > { %8986 = vmatprep.mubr.f32.mxu0 %v14511_v25  ;;  %9063 = vmatprep.mubr.f32.mxu1 %v14511_v25 }
 0x7c1   : > { %11176 = vmatmul.mubr.msk.f32.vlgmr.msra.gmra.mxu0 %vm486_vm0, %v8606_v16  ;;  %11178 = vmatmul.mubr.msk.f32.vlgmr.msra.gmra.mxu1 %vm486_vm0, %v8606_v16 }
 0x7c2   : > { %8992 = vmatprep.mubr.f32.mxu0 %v14511_v25  ;;  %9069 = vmatprep.mubr.f32.mxu1 %v14511_v25 }
 0x7c3   : > { %9107 = vmatpush1.msra.mxu0 %v11390_v4  ;;  %9184 = vmatpush1.msra.mxu1 %v11391_v52 }
 0x7c5   : > { %11177 = vmatmul.mubr.msk.f32.gmra.mxu0 %vm486_vm0, %v8607_v39  ;;  %11179 = vmatmul.mubr.msk.f32.gmra.mxu1 %vm486_vm0, %v8607_v39 }
 0x7c6   : > { %9140 = vmatprep.mubr.f32.mxu0 %v14511_v25  ;;  %9217 = vmatprep.mubr.f32.mxu1 %v14511_v25 }
 0x7c9   : > { %11180 = vmatmul.mubr.msk.f32.vlgmr.msra.gmra.mxu0 %vm486_vm0, %v8606_v16  ;;  %11182 = vmatmul.mubr.msk.f32.vlgmr.msra.gmra.mxu1 %vm486_vm0, %v8606_v16 }
 0x7ca   : > { %9146 = vmatprep.mubr.f32.mxu0 %v14511_v25  ;;  %9223 = vmatprep.mubr.f32.mxu1 %v14511_v25 }
 0x7cd   : > { %11181 = vmatmul.mubr.msk.f32.gmra.mxu0 %vm486_vm0, %v8607_v39  ;;  %11183 = vmatmul.mubr.msk.f32.gmra.mxu1 %vm486_vm0, %v8607_v39 }
 0x7ce   : > { %9379 = vmatprep.mubr.f32.mxu0 %v14511_v25  ;;  %9456 = vmatprep.mubr.f32.mxu1 %v14511_v25 }
 0x82d   : > { %v14077_v30 = vpop.f32.mrf.mxu0  ;;  %v14079_v34 = vpop.f32.mrf.mxu1 }
 0x82f   : > { %v14081_v26 = vpop.f32.mrf.mxu0  ;;  %v14083_v50 = vpop.f32.mrf.mxu1 }
 0x831   : > { %v14085_v62 = vpop.f32.mrf.mxu0  ;;  %v14087_v11 = vpop.f32.mrf.mxu1 }
 0x833   : > { %v14091_v22 = vpop.f32.mrf.mxu0  ;;  %v14093_v42 = vpop.f32.mrf.mxu1 }
 0x835   : > { %v7902_v56 = vpop.f32.mrf.mxu0  ;;  %v7985_v29 = vpop.f32.mrf.mxu1 }
 0x836   : > { %v7903_v55 = vadd.f32 %v7902_v56, %v14101_v0  ;;  %v7986_v35 = vadd.f32 %v7985_v29, %v14101_v0 }
 0x837   : > { %v7904_v31 = vpop.f32.mrf.mxu0  ;;  %v7987_v21 = vpop.f32.mrf.mxu1 }
 0x838   : > { %v7905_v47 = vadd.f32 %v7904_v31, %v14101_v0  ;;  %v7988_v59 = vadd.f32 %v7987_v21, %v14101_v0 }
 0x83a   : > { %v8504_v5 = vcombine.low %v7903_v55, %v7905_v47  ;;  %v8505_v13 = vcombine.low %v7986_v35, %v7988_v59 }
 0x83c   : > { %v8514_v60 = vrot.slane %v8504_v5, %v14115_v12  ;;  %v8521_v49 = vrot.slane %v8505_v13, %v14115_v12 }
 0x83e   : > { %v8536_v41 = vcombine.low %v8514_v60, %v8521_v49 }
 0x840   : > { %v8544_v43 = vrot.slane %v8536_v41, %v14115_v12 }
 0x841   : > { %v14097_v61 = vpop.f32.mrf.mxu0  ;;  %v14099_v6 = vpop.f32.mrf.mxu1 }
 0x843   : > { %v14105_v8 = vpop.f32.mrf.mxu0  ;;  %v14107_v58 = vpop.f32.mrf.mxu1 }
 0x845   : > { %v14111_v2 = vpop.f32.mrf.mxu0  ;;  %v14113_v9 = vpop.f32.mrf.mxu1 }
 0x847   : > { %v14117_v40 = vpop.f32.mrf.mxu0  ;;  %v14119_v18 = vpop.f32.mrf.mxu1 }
 0x849   : > { %v8068_v46 = vpop.f32.mrf.mxu0  ;;  %v8151_v17 = vpop.f32.mrf.mxu1 }
 0x84a   : > { %v8069_v63 = vadd.f32 %v8068_v46, %v14101_v0  ;;  %v8152_v53 = vadd.f32 %v8151_v17, %v14101_v0 }
 0x84b   : > { %v8070_v1 = vpop.f32.mrf.mxu0  ;;  %v8153_v3 = vpop.f32.mrf.mxu1 }
 0x84c   : > { %v8071_v7 = vadd.f32 %v8070_v1, %v14101_v0  ;;  %v8154_v44 = vadd.f32 %v8153_v3, %v14101_v0 }
 0x84e   : > { %v8506_v23 = vcombine.low %v8069_v63, %v8071_v7  ;;  %v8507_v37 = vcombine.low %v8152_v53, %v8154_v44 }
 0x850   : > { %v8528_v28 = vrot.slane %v8506_v23, %v14115_v12  ;;  %v8535_v14 = vrot.slane %v8507_v37, %v14115_v12 }
 0x852   : > { %v8537_v33 = vcombine.low %v8528_v28, %v8535_v14 }
 0x853   : > { %v14133_v16 = vpop.f32.mrf.mxu0  ;;  %v14135_v39 = vpop.f32.mrf.mxu1 }
 0x854   : > { %v8551_v10 = vrot.slane %v8537_v33, %v14115_v12 }
 0x855   : > { %v14139_v51 = vpop.f32.mrf.mxu0  ;;  %v14141_v27 = vpop.f32.mrf.mxu1 }
 0x856   : > { %v8552_v54 = vcombine.low %v8544_v43, %v8551_v10 }
 0x857   : > { %v14143_v15 = vpop.f32.mrf.mxu0  ;;  %v14145_v38 = vpop.f32.mrf.mxu1 }
 0x858   : > { %8604 = vst [vmem:[%s14147_s20] sm:$0xff] %v8552_v54 }
 0x859   : > { %v14150_v20 = vpop.f32.mrf.mxu0  ;;  %v14152_v4 = vpop.f32.mrf.mxu1 }
 0x85b   : > { %v8234_v52 = vpop.f32.mrf.mxu0  ;;  %v8317_v56 = vpop.f32.mrf.mxu1 }
 0x85c   : > { %v8235_v24 = vadd.f32 %v8234_v52, %v14101_v0  ;;  %v8318_v59 = vadd.f32 %v8317_v56, %v14101_v0  ;;  %v14180_v52 = vpop.permute.xlu0 %7807 }
 0x85d   : > { %v8236_v29 = vpop.f32.mrf.mxu0  ;;  %v8319_v31 = vpop.f32.mrf.mxu1 }
 0x85e   : > { %v8237_v48 = vadd.f32 %v8236_v29, %v14101_v0  ;;  %v8320_v21 = vadd.f32 %v8319_v31, %v14101_v0  ;;  %v7891_v31 = vadd.f32 %v14077_v30, %v14089_v36  ;;  %v7976_v30 = vadd.f32 %v14083_v50, %v14089_v36 }
 0x860   : > { %v8553_v5 = vcombine.low %v8235_v24, %v8237_v48  ;;  %v8554_v13 = vcombine.low %v8318_v59, %v8320_v21  ;;  %v7974_v48 = vadd.f32 %v14079_v34, %v14089_v36  ;;  %v7893_v59 = vadd.f32 %v14081_v26, %v14089_v36 }
 0x861   : > { %v7982_v34 = vadd.f32 %v14093_v42, %v14180_v52 }
 0x862   : > { %v8563_v1 = vrot.slane %v8553_v5, %v14115_v12  ;;  %v8570_v3 = vrot.slane %v8554_v13, %v14115_v12  ;;  %v7980_v5 = vadd.f32 %v14087_v11, %v14180_v52  ;;  %v7899_v13 = vadd.f32 %v14091_v22, %v14180_v52 }
 0x864   : > { %v8585_v43 = vcombine.low %v8563_v1, %v8570_v3 }
 0x865   : > { %v14154_v19 = vpop.f32.mrf.mxu0  ;;  %v14156_v45 = vpop.f32.mrf.mxu1 }
 0x867   : > { %v14160_v47 = vpop.f32.mrf.mxu0  ;;  %v14162_v32 = vpop.f32.mrf.mxu1 }
 0x869   : > { %v14166_v55 = vpop.f32.mrf.mxu0  ;;  %v14168_v35 = vpop.f32.mrf.mxu1 }
 0x86b   : > { %v14170_v46 = vpop.f32.mrf.mxu0  ;;  %v14172_v17 = vpop.f32.mrf.mxu1 }
 0x86d   : > { %v8400_v60 = vpop.f32.mrf.mxu0  ;;  %v8483_v49 = vpop.f32.mrf.mxu1 }
 0x86e   : > { %v8401_v7 = vadd.f32 %v8400_v60, %v14101_v0  ;;  %v8484_v44 = vadd.f32 %v8483_v49, %v14101_v0 }
 0x86f   : > { %v8402_v63 = vpop.f32.mrf.mxu0  ;;  %v8485_v53 = vpop.f32.mrf.mxu1 }
 0x870   : > { %v8403_v23 = vadd.f32 %v8402_v63, %v14101_v0  ;;  %v8486_v37 = vadd.f32 %v8485_v53, %v14101_v0  ;;  %v7897_v0 = vadd.f32 %v14085_v62, %v14180_v52  ;;  %v8593_v62 = vrot.slane %v8585_v43, %v14115_v12 }
 0x871   : > { %v8680_v41 = vpop.f32.mrf.mxu0  ;;  %v8757_v28 = vpop.f32.mrf.mxu1 }
 0x872   : > { %v8555_v14 = vcombine.low %v8401_v7, %v8403_v23  ;;  %v8556_v33 = vcombine.low %v8484_v44, %v8486_v37  ;;  %v9230_v7 = vadd.f32 %v8680_v41, %v7891_v31  ;;  %v8063_v41 = vadd.f32 %v14111_v2, %v14180_v52 }
 0x873   : > { %v8682_v10 = vpop.f32.mrf.mxu0  ;;  %v8759_v54 = vpop.f32.mrf.mxu1  ;;  %v8148_v2 = vadd.f32 %v14119_v18, %v14180_v52  ;;  %v8140_v18 = vadd.f32 %v14099_v6, %v14089_v36 }
 0x874   : > { %v8577_v56 = vrot.slane %v8555_v14, %v14115_v12  ;;  %v8584_v29 = vrot.slane %v8556_v33, %v14115_v12  ;;  %v9231_v63 = vadd.f32 %v8682_v10, %v7893_v59  ;;  %v9233_v22 = vadd.f32 %v8759_v54, %v7976_v30 }
 0x875   : > { %v8686_v21 = vpop.f32.mrf.mxu0  ;;  %v8763_v24 = vpop.f32.mrf.mxu1  ;;  %v9232_v14 = vadd.f32 %v8757_v28, %v7974_v48  ;;  %v9262_v10 = vmax.f32 %v9230_v7, 0.0  ;;  %v14210_v48 = vld [vmem:[%s14465_s7] sm:$0xff] }
 0x876   : > { %v8586_v60 = vcombine.low %v8577_v56, %v8584_v29  ;;  %v9246_v49 = vadd.f32 %v8686_v21, %v7897_v0  ;;  %v9248_v53 = vadd.f32 %v8763_v24, %v7980_v5  ;;  %v9263_v0 = vmax.f32 %v9231_v63, 0.0 }
 0x877   : > { %v8688_v1 = vpop.f32.mrf.mxu0  ;;  %v8765_v3 = vpop.f32.mrf.mxu1  ;;  %v9265_v54 = vmax.f32 %v9233_v22, 0.0  ;;  %v8146_v24 = vadd.f32 %v14113_v9, %v14180_v52  ;;  %v9264_v59 = vmax.f32 %v9232_v14, 0.0  ;;  %v8059_v5 = vadd.f32 %v14105_v8, %v14089_v36 }
 0x878   : > { %v8600_v26 = vrot.slane %v8586_v60, %v14115_v12  ;;  %v9247_v11 = vadd.f32 %v8688_v1, %v7899_v13  ;;  %v9249_v44 = vadd.f32 %v8765_v3, %v7982_v34  ;;  %v9278_v42 = vmax.f32 %v9246_v49, 0.0  ;;  %v14232_v3 = vld [vmem:[%s14465_s7 + $0x8] sm:$0xff] }
 0x879   : > { %v8834_v23 = vpop.f32.mrf.mxu0  ;;  %v8911_v37 = vpop.f32.mrf.mxu1  ;;  %v9280_v21 = vmax.f32 %v9248_v53, 0.0  ;;  %v8057_v12 = vadd.f32 %v14097_v61, %v14089_v36  ;;  %v8065_v61 = vadd.f32 %v14117_v40, %v14180_v52  ;;  %v8142_v13 = vadd.f32 %v14107_v58, %v14089_v36 }
 0x87a   : > { %v8601_v50 = vcombine.low %v8593_v62, %v8600_v26  ;;  %v9279_v33 = vmax.f32 %v9247_v11, 0.0  ;;  %v9281_v56 = vmax.f32 %v9249_v44, 0.0  ;;  %v9236_v6 = vadd.f32 %v8911_v37, %v8140_v18 }
 0x87b   : > { %v8836_v43 = vpop.f32.mrf.mxu0  ;;  %v8913_v29 = vpop.f32.mrf.mxu1  ;;  %v9234_v26 = vadd.f32 %v8834_v23, %v8057_v12  ;;  %v8312_v14 = vadd.f32 %v14145_v38, %v14180_v52  ;;  %v8308_v38 = vadd.f32 %v14141_v27, %v14089_v36 }
 0x87c   : > { %9343 = vmatprep.subr.mxu0 %v9279_v33  ;;  %8605 = vst [vmem:[%s14147_s20 + $0x8] sm:$0xff] %v8601_v50  ;;  %9420 = vmatprep.subr.mxu1 %v9281_v56  ;;  %v9235_v49 = vadd.f32 %v8836_v43, %v8059_v5  ;;  %v9237_v8 = vadd.f32 %v8913_v29, %v8142_v13 }
 0x87d   : > { %v8840_v28 = vpop.f32.mrf.mxu0  ;;  %v8917_v31 = vpop.f32.mrf.mxu1  ;;  %9344 = vmatpush1.msra.mxu0 %v9278_v42  ;;  %9421 = vmatpush1.msra.mxu1 %v9280_v21  ;;  %v8229_v50 = vadd.f32 %v14143_v15, %v14180_v52  ;;  %v8225_v56 = vadd.f32 %v14139_v51, %v14089_v36  ;;  %v8231_v43 = vadd.f32 %v14150_v20, %v14180_v52  ;;  %v9266_v29 = vmax.f32 %v9234_v26, 0.0 }
 0x87e   : > { %9345 = vmatprep.subr.mxu0 %v9263_v0  ;;  %v9250_v60 = vadd.f32 %v8840_v28, %v8063_v41  ;;  %9422 = vmatprep.subr.mxu1 %v9265_v54  ;;  %v9252_v9 = vadd.f32 %v8917_v31, %v8146_v24  ;;  %v9267_v23 = vmax.f32 %v9235_v49, 0.0  ;;  %v9269_v33 = vmax.f32 %v9237_v8, 0.0 }
 0x87f   : > { %v8842_v30 = vpop.f32.mrf.mxu0  ;;  %v8919_v34 = vpop.f32.mrf.mxu1  ;;  %9346 = vmatpush1.msra.mxu0 %v9262_v10  ;;  %9423 = vmatpush1.msra.mxu1 %v9264_v59  ;;  %v8314_v15 = vadd.f32 %v14152_v4, %v14180_v52  ;;  %v9268_v0 = vmax.f32 %v9236_v6, 0.0  ;;  %v8223_v51 = vadd.f32 %v14133_v16, %v14089_v36  ;;  %v8306_v4 = vadd.f32 %v14135_v39, %v14089_v36 }
 0x880   : > { %v9251_v62 = vadd.f32 %v8842_v30, %v8065_v61  ;;  %v9253_v40 = vadd.f32 %v8919_v34, %v8148_v2  ;;  %11184 = vmatmul.mubr.msk.f32.vlgmr.msra.gmra.mxu0 %vm9308_vm2, %v14210_v48  ;;  %11186 = vmatmul.mubr.msk.f32.vlgmr.msra.gmra.mxu1 %vm9308_vm2, %v14210_v48  ;;  %v9282_v22 = vmax.f32 %v9250_v60, 0.0  ;;  %v9284_v44 = vmax.f32 %v9252_v9, 0.0 }
 0x881   : > { %v8988_v58 = vpop.f32.mrf.mxu0  ;;  %v9065_v1 = vpop.f32.mrf.mxu1  ;;  %9385 = vmatprep.mubr.f32.mxu0 %v14511_v25  ;;  %9462 = vmatprep.mubr.f32.mxu1 %v14511_v25  ;;  %v8395_v30 = vadd.f32 %v14166_v55, %v14180_v52  ;;  %v8478_v34 = vadd.f32 %v14168_v35, %v14180_v52  ;;  %v8391_v49 = vadd.f32 %v14160_v47, %v14089_v36 }
 0x882   : > { %v9283_v63 = vmax.f32 %v9251_v62, 0.0  ;;  %v9285_v53 = vmax.f32 %v9253_v40, 0.0  ;;  %v9238_v61 = vadd.f32 %v8988_v58, %v8223_v51  ;;  %v9240_v16 = vadd.f32 %v9065_v1, %v8306_v4 }
 0x883   : > { %v8990_v11 = vpop.f32.mrf.mxu0  ;;  %v9067_v7 = vpop.f32.mrf.mxu1  ;;  %v8397_v8 = vadd.f32 %v14170_v46, %v14180_v52  ;;  %v8480_v58 = vadd.f32 %v14172_v17, %v14180_v52  ;;  %v8474_v55 = vadd.f32 %v14162_v32, %v14089_v36  ;;  %v8389_v17 = vadd.f32 %v14154_v19, %v14089_v36 }
 0x884   : > { %11185 = vmatmul.mubr.msk.f32.gmra.mxu0 %vm9308_vm2, %v14232_v3  ;;  %9497 = vmatprep.subr.mxu0 %v9283_v63  ;;  %v9239_v28 = vadd.f32 %v8990_v11, %v8225_v56  ;;  %v9241_v27 = vadd.f32 %v9067_v7, %v8308_v38  ;;  %v9270_v1 = vmax.f32 %v9238_v61, 0.0  ;;  %v9272_v35 = vmax.f32 %v9240_v16, 0.0 }
 0x885   : > { %11187 = vmatmul.mubr.msk.f32.gmra.mxu1 %vm9308_vm2, %v14232_v3  ;;  %9574 = vmatprep.subr.mxu1 %v9285_v53  ;;  %v8994_v37 = vpop.f32.mrf.mxu0  ;;  %v9071_v42 = vpop.f32.mrf.mxu1  ;;  %v8472_v6 = vadd.f32 %v14156_v45, %v14089_v36 }
 0x886   : > { %9498 = vmatpush1.msra.mxu0 %v9282_v22  ;;  %9575 = vmatpush1.msra.mxu1 %v9284_v44  ;;  %v9254_v21 = vadd.f32 %v8994_v37, %v8229_v50  ;;  %v9256_v12 = vadd.f32 %v9071_v42, %v8312_v14  ;;  %v9271_v9 = vmax.f32 %v9239_v28, 0.0  ;;  %v9273_v62 = vmax.f32 %v9241_v27, 0.0 }
 0x887   : > { %9499 = vmatprep.subr.mxu0 %v9267_v23  ;;  %9576 = vmatprep.subr.mxu1 %v9269_v33  ;;  %v8996_v41 = vpop.f32.mrf.mxu0  ;;  %v9073_v10 = vpop.f32.mrf.mxu1 }
 0x888   : > { %v9255_v20 = vadd.f32 %v8996_v41, %v8231_v43  ;;  %v9257_v54 = vadd.f32 %v9073_v10, %v8314_v15  ;;  %9500 = vmatpush1.msra.mxu0 %v9266_v29  ;;  %9533 = vmatprep.mubr.f32.mxu0 %v14511_v25  ;;  %v9286_v5 = vmax.f32 %v9254_v21, 0.0  ;;  %v9288_v13 = vmax.f32 %v9256_v12, 0.0 }
 0x889   : > { %9577 = vmatpush1.msra.mxu1 %v9268_v0  ;;  %9610 = vmatprep.mubr.f32.mxu1 %v14511_v25  ;;  %v9142_v31 = vpop.f32.mrf.mxu0  ;;  %v9219_v24 = vpop.f32.mrf.mxu1 }
 0x88a   : > { %v9287_v2 = vmax.f32 %v9255_v20, 0.0  ;;  %v9289_v59 = vmax.f32 %v9257_v54, 0.0  ;;  %11188 = vmatmul.mubr.msk.f32.vlgmr.msra.gmra.mxu0 %vm9308_vm2, %v14210_v48  ;;  %11190 = vmatmul.mubr.msk.f32.vlgmr.msra.gmra.mxu1 %vm9308_vm2, %v14210_v48  ;;  %v9242_v7 = vadd.f32 %v9142_v31, %v8389_v17  ;;  %v9244_v19 = vadd.f32 %v9219_v24, %v8472_v6 }
 0x88b   : > { %v9144_v39 = vpop.f32.mrf.mxu0  ;;  %v9221_v60 = vpop.f32.mrf.mxu1  ;;  %9539 = vmatprep.mubr.f32.mxu0 %v14511_v25  ;;  %9616 = vmatprep.mubr.f32.mxu1 %v14511_v25 }
 0x88c   : > { %9651 = vmatprep.subr.mxu0 %v9287_v2  ;;  %9728 = vmatprep.subr.mxu1 %v9289_v59  ;;  %v9243_v11 = vadd.f32 %v9144_v39, %v8391_v49  ;;  %v9245_v32 = vadd.f32 %v9221_v60, %v8474_v55  ;;  %v9274_v23 = vmax.f32 %v9242_v7, 0.0  ;;  %v9276_v33 = vmax.f32 %v9244_v19, 0.0  ;;  %v14322_v39 = vld [vmem:[%s14467_s9] sm:$0x7] }
 0x88d   : > { %v9148_v40 = vpop.f32.mrf.mxu0  ;;  %v9225_v18 = vpop.f32.mrf.mxu1  ;;  %9652 = vmatpush1.msra.mxu0 %v9286_v5  ;;  %9729 = vmatpush1.msra.mxu1 %v9288_v13 }
 0x88e   : > { %11189 = vmatmul.mubr.msk.f32.gmra.mxu0 %vm9308_vm2, %v14232_v3  ;;  %11191 = vmatmul.mubr.msk.f32.gmra.mxu1 %vm9308_vm2, %v14232_v3  ;;  %v9258_v26 = vadd.f32 %v9148_v40, %v8395_v30  ;;  %v9260_v63 = vadd.f32 %v9225_v18, %v8478_v34  ;;  %v9275_v36 = vmax.f32 %v9243_v11, 0.0  ;;  %v9277_v45 = vmax.f32 %v9245_v32, 0.0 }
 0x88f   : > { %9653 = vmatprep.subr.mxu0 %v9271_v9  ;;  %9730 = vmatprep.subr.mxu1 %v9273_v62  ;;  %v9150_v47 = vpop.f32.mrf.mxu0  ;;  %v9227_v46 = vpop.f32.mrf.mxu1 }
 0x890   : > { %v9259_v52 = vadd.f32 %v9150_v47, %v8397_v8  ;;  %v9261_v53 = vadd.f32 %v9227_v46, %v8480_v58  ;;  %9654 = vmatpush1.msra.mxu0 %v9270_v1  ;;  %9687 = vmatprep.mubr.f32.mxu0 %v14511_v25  ;;  %v9290_v50 = vmax.f32 %v9258_v26, 0.0  ;;  %v9292_v14 = vmax.f32 %v9260_v63, 0.0 }
 0x891   : > { %9731 = vmatpush1.msra.mxu1 %v9272_v35  ;;  %9764 = vmatprep.mubr.f32.mxu1 %v14511_v25 }
 0x892   : > { %v9291_v22 = vmax.f32 %v9259_v52, 0.0  ;;  %v9293_v44 = vmax.f32 %v9261_v53, 0.0  ;;  %11192 = vmatmul.mubr.msk.f32.vlgmr.msra.gmra.mxu0 %vm9308_vm2, %v14210_v48  ;;  %11194 = vmatmul.mubr.msk.f32.vlgmr.msra.gmra.mxu1 %vm9308_vm2, %v14210_v48 }
 0x893   : > { %9693 = vmatprep.mubr.f32.mxu0 %v14511_v25  ;;  %9770 = vmatprep.mubr.f32.mxu1 %v14511_v25 }
 0x894   : > { %9805 = vmatprep.subr.mxu0 %v9291_v22  ;;  %9882 = vmatprep.subr.mxu1 %v9293_v44 }
 0x895   : > { %9806 = vmatpush1.msra.mxu0 %v9290_v50  ;;  %9883 = vmatpush1.msra.mxu1 %v9292_v14 }
 0x896   : > { %11193 = vmatmul.mubr.msk.f32.gmra.mxu0 %vm9308_vm2, %v14232_v3  ;;  %11195 = vmatmul.mubr.msk.f32.gmra.mxu1 %vm9308_vm2, %v14232_v3 }
 0x897   : > { %9807 = vmatprep.subr.mxu0 %v9275_v36  ;;  %9884 = vmatprep.subr.mxu1 %v9277_v45 }
 0x898   : > { %9808 = vmatpush1.msra.mxu0 %v9274_v23  ;;  %9841 = vmatprep.mubr.f32.mxu0 %v14511_v25 }
 0x899   : > { %9885 = vmatpush1.msra.mxu1 %v9276_v33  ;;  %9918 = vmatprep.mubr.f32.mxu1 %v14511_v25 }
 0x89a   : > { %11196 = vmatmul.mubr.msk.f32.vlgmr.msra.gmra.mxu0 %vm9308_vm2, %v14210_v48  ;;  %11198 = vmatmul.mubr.msk.f32.vlgmr.msra.gmra.mxu1 %vm9308_vm2, %v14210_v48  ;;  %v14309_v48 = vpop.permute.xlu0 %9305 }
 0x89b   : > { %9847 = vmatprep.mubr.f32.mxu0 %v14511_v25  ;;  %9924 = vmatprep.mubr.f32.mxu1 %v14511_v25 }
 0x89e   : > { %11197 = vmatmul.mubr.msk.f32.gmra.mxu0 %vm9308_vm2, %v14232_v3  ;;  %11199 = vmatmul.mubr.msk.f32.gmra.mxu1 %vm9308_vm2, %v14232_v3 }
 0x89f   : > { %10037 = vmatprep.mubr.f32.mxu0 %v14511_v25  ;;  %10108 = vmatprep.mubr.f32.mxu1 %v14511_v25 }
 0x940   : > { %v9381_v37 = vpop.f32.mrf.mxu0  ;;  %v9458_v42 = vpop.f32.mrf.mxu1 }
 0x941   : > { %v9382_v10 = vadd.f32 %v9381_v37, %v14095_v57  ;;  %v9459_v54 = vadd.f32 %v9458_v42, %v14095_v57 }
 0x942   : > { %v9383_v56 = vpop.f32.mrf.mxu0  ;;  %v9460_v43 = vpop.f32.mrf.mxu1 }
 0x943   : > { %v9384_v21 = vadd.f32 %v9383_v56, %v14095_v57  ;;  %v9461_v51 = vadd.f32 %v9460_v43, %v14095_v57  ;;  %v9931_v59 = vmax.f32 %v9382_v10, 0.0  ;;  %v9933_v60 = vmax.f32 %v9459_v54, 0.0 }
 0x944   : > { %v9387_v15 = vpop.f32.mrf.mxu0 }
 0x945   : > { %v9464_v29 = vpop.f32.mrf.mxu1  ;;  %v9388_v38 = vadd.f32 %v9387_v15, %v14309_v48  ;;  %v9932_v61 = vmax.f32 %v9384_v21, 0.0  ;;  %v9934_v16 = vmax.f32 %v9461_v51, 0.0 }
 0x946   : > { %v9389_v0 = vpop.f32.mrf.mxu0  ;;  %v9465_v12 = vadd.f32 %v9464_v29, %v14309_v48 }
 0x947   : > { %v9390_v3 = vadd.f32 %v9389_v0, %v14309_v48  ;;  %v9466_v41 = vpop.f32.mrf.mxu1  ;;  %v9947_v28 = vmax.f32 %v9388_v38, 0.0 }
 0x948   : > { %v9467_v20 = vadd.f32 %v9466_v41, %v14309_v48  ;;  %v9949_v2 = vmax.f32 %v9465_v12, 0.0 }
 0x949   : > { %v9948_v4 = vmax.f32 %v9390_v3, 0.0 }
 0x94a   : > { %v9950_v27 = vmax.f32 %v9467_v20, 0.0  ;;  %v9535_v31 = vpop.f32.mrf.mxu0  ;;  %v9612_v24 = vpop.f32.mrf.mxu1 }
 0x94b   : > { %10001 = vmatprep.subr.mxu0 %v9948_v4  ;;  %v9536_v55 = vadd.f32 %v9535_v31, %v14095_v57  ;;  %v9613_v35 = vadd.f32 %v9612_v24, %v14095_v57 }
 0x94c   : > { %v9537_v5 = vpop.f32.mrf.mxu0  ;;  %v9614_v13 = vpop.f32.mrf.mxu1  ;;  %10072 = vmatprep.subr.mxu1 %v9950_v27  ;;  %10002 = vmatpush1.msra.mxu0 %v9947_v28 }
 0x94d   : > { %10073 = vmatpush1.msra.mxu1 %v9949_v2  ;;  %10003 = vmatprep.subr.mxu0 %v9932_v61  ;;  %v9538_v49 = vadd.f32 %v9537_v5, %v14095_v57  ;;  %v9615_v8 = vadd.f32 %v9614_v13, %v14095_v57  ;;  %v9935_v7 = vmax.f32 %v9536_v55, 0.0  ;;  %v9937_v22 = vmax.f32 %v9613_v35, 0.0 }
 0x94e   : > { %v9541_v30 = vpop.f32.mrf.mxu0  ;;  %v9618_v34 = vpop.f32.mrf.mxu1  ;;  %10074 = vmatprep.subr.mxu1 %v9934_v16  ;;  %10004 = vmatpush1.msra.mxu0 %v9931_v59 }
 0x94f   : > { %10075 = vmatpush1.msra.mxu1 %v9933_v60  ;;  %11200 = vmatmul.mubr.msk.f32.vlgmr.msra.gmra.mxu0 %vm9308_vm2, %v14322_v39  ;;  %v9542_v9 = vadd.f32 %v9541_v30, %v14309_v48  ;;  %v9619_v62 = vadd.f32 %v9618_v34, %v14309_v48  ;;  %v9936_v11 = vmax.f32 %v9538_v49, 0.0  ;;  %v9938_v32 = vmax.f32 %v9615_v8, 0.0 }
 0x950   : > { %v9543_v40 = vpop.f32.mrf.mxu0  ;;  %v9620_v18 = vpop.f32.mrf.mxu1  ;;  %11201 = vmatmul.mubr.msk.f32.vlgmr.msra.gmra.mxu1 %vm9308_vm2, %v14322_v39  ;;  %10179 = vmatprep.mubr.f32.mxu0 %v14511_v25 }
 0x951   : > { %v9544_v58 = vadd.f32 %v9543_v40, %v14309_v48  ;;  %v9621_v1 = vadd.f32 %v9620_v18, %v14309_v48  ;;  %10250 = vmatprep.mubr.f32.mxu1 %v14511_v25  ;;  %v9951_v17 = vmax.f32 %v9542_v9, 0.0  ;;  %v9953_v52 = vmax.f32 %v9619_v62, 0.0 }
 0x952   : > { %v9689_v26 = vpop.f32.mrf.mxu0  ;;  %v9766_v63 = vpop.f32.mrf.mxu1 }
 0x953   : > { %v9952_v47 = vmax.f32 %v9544_v58, 0.0  ;;  %v9954_v46 = vmax.f32 %v9621_v1, 0.0  ;;  %v9690_v56 = vadd.f32 %v9689_v26, %v14095_v57  ;;  %v9767_v43 = vadd.f32 %v9766_v63, %v14095_v57 }
 0x954   : > { %v9691_v53 = vpop.f32.mrf.mxu0  ;;  %v9768_v6 = vpop.f32.mrf.mxu1 }
 0x955   : > { %10143 = vmatprep.subr.mxu0 %v9952_v47  ;;  %10214 = vmatprep.subr.mxu1 %v9954_v46  ;;  %v9692_v50 = vadd.f32 %v9691_v53, %v14095_v57  ;;  %v9769_v33 = vadd.f32 %v9768_v6, %v14095_v57  ;;  %v9939_v20 = vmax.f32 %v9690_v56, 0.0  ;;  %v9941_v54 = vmax.f32 %v9767_v43, 0.0 }
 0x956   : > { %v9695_v44 = vpop.f32.mrf.mxu0  ;;  %v9772_v19 = vpop.f32.mrf.mxu1  ;;  %10144 = vmatpush1.msra.mxu0 %v9951_v17  ;;  %10215 = vmatpush1.msra.mxu1 %v9953_v52 }
 0x957   : > { %10145 = vmatprep.subr.mxu0 %v9936_v11  ;;  %10216 = vmatprep.subr.mxu1 %v9938_v32  ;;  %v9696_v14 = vadd.f32 %v9695_v44, %v14309_v48  ;;  %v9773_v36 = vadd.f32 %v9772_v19, %v14309_v48  ;;  %v9940_v10 = vmax.f32 %v9692_v50, 0.0  ;;  %v9942_v51 = vmax.f32 %v9769_v33, 0.0 }
 0x958   : > { %v9697_v45 = vpop.f32.mrf.mxu0  ;;  %v9774_v23 = vpop.f32.mrf.mxu1  ;;  %10146 = vmatpush1.msra.mxu0 %v9935_v7  ;;  %10217 = vmatpush1.msra.mxu1 %v9937_v22 }
 0x959   : > { %v9698_v37 = vadd.f32 %v9697_v45, %v14309_v48  ;;  %v9775_v42 = vadd.f32 %v9774_v23, %v14309_v48  ;;  %11202 = vmatmul.mubr.msk.f32.vlgmr.msra.gmra.mxu0 %vm9308_vm2, %v14322_v39  ;;  %11203 = vmatmul.mubr.msk.f32.vlgmr.msra.gmra.mxu1 %vm9308_vm2, %v14322_v39  ;;  %v9955_v21 = vmax.f32 %v9696_v14, 0.0  ;;  %v9957_v12 = vmax.f32 %v9773_v36, 0.0 }
 0x95a   : > { %v9843_v15 = vpop.f32.mrf.mxu0  ;;  %v9920_v29 = vpop.f32.mrf.mxu1  ;;  %10321 = vmatprep.mubr.f32.mxu0 %v14511_v25  ;;  %10392 = vmatprep.mubr.f32.mxu1 %v14511_v25 }
 0x95b   : > { %v9956_v38 = vmax.f32 %v9698_v37, 0.0  ;;  %v9958_v0 = vmax.f32 %v9775_v42, 0.0  ;;  %v9844_v13 = vadd.f32 %v9843_v15, %v14095_v57  ;;  %v9921_v60 = vadd.f32 %v9920_v29, %v14095_v57 }
 0x95c   : > { %v9845_v3 = vpop.f32.mrf.mxu0  ;;  %v9922_v41 = vpop.f32.mrf.mxu1 }
 0x95d   : > { %10285 = vmatprep.subr.mxu0 %v9956_v38  ;;  %10356 = vmatprep.subr.mxu1 %v9958_v0  ;;  %v9846_v27 = vadd.f32 %v9845_v3, %v14095_v57  ;;  %v9923_v59 = vadd.f32 %v9922_v41, %v14095_v57  ;;  %v9943_v18 = vmax.f32 %v9844_v13, 0.0  ;;  %v9945_v49 = vmax.f32 %v9921_v60, 0.0 }
 0x95e   : > { %v9849_v4 = vpop.f32.mrf.mxu0  ;;  %v9926_v28 = vpop.f32.mrf.mxu1  ;;  %10286 = vmatpush1.msra.mxu0 %v9955_v21  ;;  %10357 = vmatpush1.msra.mxu1 %v9957_v12 }
 0x95f   : > { %10287 = vmatprep.subr.mxu0 %v9940_v10  ;;  %10358 = vmatprep.subr.mxu1 %v9942_v51  ;;  %v9850_v31 = vadd.f32 %v9849_v4, %v14309_v48  ;;  %v9927_v24 = vadd.f32 %v9926_v28, %v14309_v48  ;;  %v9946_v40 = vmax.f32 %v9923_v59, 0.0 }
 0x960   : > { %v9851_v61 = vpop.f32.mrf.mxu0  ;;  %v9928_v2 = vpop.f32.mrf.mxu1  ;;  %10288 = vmatpush1.msra.mxu0 %v9939_v20  ;;  %10359 = vmatpush1.msra.mxu1 %v9941_v54 }
 0x961   : > { %v9852_v16 = vadd.f32 %v9851_v61, %v14309_v48  ;;  %v9929_v5 = vadd.f32 %v9928_v2, %v14309_v48  ;;  %11204 = vmatmul.mubr.msk.f32.vlgmr.msra.gmra.mxu0 %vm9308_vm2, %v14322_v39  ;;  %11205 = vmatmul.mubr.msk.f32.vlgmr.msra.gmra.mxu1 %vm9308_vm2, %v14322_v39  ;;  %v9959_v9 = vmax.f32 %v9850_v31, 0.0  ;;  %v9961_v62 = vmax.f32 %v9927_v24, 0.0 }
 0x962   : > { %10463 = vmatprep.mubr.f32.mxu0 %v14511_v25  ;;  %10534 = vmatprep.mubr.f32.mxu1 %v14511_v25  ;;  %v9944_v48 = vmax.f32 %v9846_v27, 0.0 }
 0x963   : > { %v9960_v30 = vmax.f32 %v9852_v16, 0.0  ;;  %v9962_v34 = vmax.f32 %v9929_v5, 0.0 }
 0x965   : > { %10427 = vmatprep.subr.mxu0 %v9960_v30  ;;  %10498 = vmatprep.subr.mxu1 %v9962_v34 }
 0x966   : > { %10428 = vmatpush1.msra.mxu0 %v9959_v9  ;;  %10499 = vmatpush1.msra.mxu1 %v9961_v62 }
 0x967   : > { %10429 = vmatprep.subr.mxu0 %v9944_v48  ;;  %10500 = vmatprep.subr.mxu1 %v9946_v40 }
 0x968   : > { %10430 = vmatpush1.msra.mxu0 %v9943_v18  ;;  %10501 = vmatpush1.msra.mxu1 %v9945_v49 }
 0x969   : > { %11206 = vmatmul.mubr.msk.f32.vlgmr.msra.gmra.mxu0 %vm9308_vm2, %v14322_v39  ;;  %11207 = vmatmul.mubr.msk.f32.vlgmr.msra.gmra.mxu1 %vm9308_vm2, %v14322_v39 }
 0x96a   : > { %11431 = shalt.err (!%p11428_p0)
}
 0x96b   : > { %s11432_s20 = scalar_lea.hbm %s10709_s2, 256  ;;  %s11436_s0 = scalar_lea.hbm %s14470_s12, 512 }
 0x96c   : > { %p11433_p1 = scmp.ne.s32.totalorder %s10709_s2, %s11432_s20  ;;  %p11437_p4 = scmp.lt.s32.totalorder %s10709_s2, %s14470_s12 }
 0x96d   : > { %p11438_p7 = scmp.lt.s32.totalorder %s11436_s0, %s11432_s20 }
 0x96e   : > { %p11434_p2 = pnand %p11433_p1, %p11625_p5 }
 0x96f   : > { %p11439_p8 = por %p11438_p7, %p11437_p4 }
 0x970   : > { %p11435_p3 = pneg %p11434_p2 }
 0x972   : > { %p11440_p6 = pnand %p11439_p8, %p11435_p3 }
 0x974   : > { %11443 = shalt.err (!%p11440_p6)
}
 0x975   : > { %11239 = dma.vmem_to_hbm [thread:$0]  (%p11625_p5), %s10712_s17, 256, %s10709_s2, %s10683_s26   ;;  %v14388_v25 = vpop.permute.xlu0 %9967 }
 0x976   : > { %s10820_s1 = sshll.u32 %s14128_s18, 6  ;;  %s11232_s4 = sshll.u32 %s11608_s25, 10 }
 0x977   : > { %s14407_s3 = scalar_lea.vmem [#allocation5], %s10820_s1  ;;  %s14420_s28 = scalar_lea.hbm %s14469_s11, %s11232_s4 }
 0x978   : > { %s10697_s17 = sshll.u32 %s14407_s3, 4  ;;  %s10678_s29 = scalar_lea.sflag [#allocation4], %s14128_s18  ;;  %s10698_s17 = int_to_ptr.vmem [resolvable:$true] %s10697_s17 }
 0x979   : > { %s11444_s15 = scalar_lea.vmem %s10698_s17, 1024  ;;  %s11521_s25 = smov [#allocation5]  }
 0x97a   : > { %p11445_p9 = scmp.ne.s32.totalorder %s10698_s17, %s11444_s15  ;;  %s11448_s20 = sshll.u32 %s11521_s25, 4  ;;  %s11449_s20 = int_to_ptr.vmem [resolvable:$false] %s11448_s20 }
 0x97b   : > { %s11450_s16 = scalar_lea.vmem %s11449_s20, 2048  ;;  %p11451_p12 = scmp.lt.s32.totalorder %s10698_s17, %s11449_s20 }
 0x97c   : > { %p11446_p10 = pnand %p11445_p9, %p11625_p5  ;;  %p11452_p13 = scmp.lt.s32.totalorder %s11450_s16, %s11444_s15 }
 0x97e   : > { %p11447_p11 = pneg %p11446_p10  ;;  %p11453_p0 = por %p11452_p13, %p11451_p12 }
 0x980   : > { %p11454_p1 = pnand %p11453_p0, %p11447_p11 }
 0xa0f   : > { %v10039_v57 = vpop.f32.mrf.mxu0 }
 0xa10   : > { %v10040_v39 = vadd.f32 %v10039_v57, %v14388_v25  ;;  %v10110_v8 = vpop.f32.mrf.mxu1 }
 0xa11   : > { %v10111_v58 = vadd.f32 %v10110_v8, %v14388_v25  ;;  %v10041_v1 = vpop.f32.mrf.mxu0 }
 0xa12   : > { %v11208_v55 = vmul.f32 -1.442695, %v10040_v39  ;;  %v10042_v35 = vadd.f32 %v10041_v1, %v14388_v25  ;;  %v10112_v26 = vpop.f32.mrf.mxu1 }
 0xa13   : > { %v11210_v63 = vmul.f32 -1.442695, %v10111_v58  ;;  %v10113_v47 = vadd.f32 %v10112_v26, %v14388_v25 }
 0xa14   : > { %11296 = vpow2.f32 %v11208_v55  ;;  %v11209_v46 = vmul.f32 -1.442695, %v10042_v35 }
 0xa15   : > { %11298 = vpow2.f32 %v11210_v63  ;;  %v11211_v17 = vmul.f32 -1.442695, %v10113_v47 }
 0xa16   : > { %11300 = vpow2.f32 %v11209_v46 }
 0xa17   : > { %11302 = vpow2.f32 %v11211_v17 }
 0xa19   : > { %v10181_v52 = vpop.f32.mrf.mxu0  ;;  %v10252_v53 = vpop.f32.mrf.mxu1 }
 0xa1a   : > { %v10182_v6 = vadd.f32 %v10181_v52, %v14388_v25  ;;  %v10253_v11 = vadd.f32 %v10252_v53, %v14388_v25 }
 0xa1b   : > { %v10183_v32 = vpop.f32.mrf.mxu0  ;;  %v10254_v7 = vpop.f32.mrf.mxu1 }
 0xa1c   : > { %v11212_v22 = vmul.f32 -1.442695, %v10182_v6  ;;  %v11214_v44 = vmul.f32 -1.442695, %v10253_v11  ;;  %v10184_v19 = vadd.f32 %v10183_v32, %v14388_v25  ;;  %v10255_v50 = vadd.f32 %v10254_v7, %v14388_v25 }
 0xa1e   : > { %11304 = vpow2.f32 %v11212_v22  ;;  %v11213_v14 = vmul.f32 -1.442695, %v10184_v19  ;;  %v11215_v36 = vmul.f32 -1.442695, %v10255_v50 }
 0xa1f   : > { %11306 = vpow2.f32 %v11214_v44 }
 0xa20   : > { %11308 = vpow2.f32 %v11213_v14 }
 0xa21   : > { %v11297_v45 = vpop.eup %11296  ;;  %11310 = vpow2.f32 %v11215_v36  ;;  %v10323_v23 = vpop.f32.mrf.mxu0 }
 0xa22   : > { %v10394_v33 = vpop.f32.mrf.mxu1  ;;  %v11299_v37 = vpop.eup %11298  ;;  %v10589_v42 = vadd.f32 1.0, %v11297_v45  ;;  %v10324_v56 = vadd.f32 %v10323_v23, %v14388_v25 }
 0xa23   : > { %v10395_v43 = vadd.f32 %v10394_v33, %v14388_v25  ;;  %v11301_v15 = vpop.eup %11300  ;;  %v10591_v29 = vadd.f32 1.0, %v11299_v37  ;;  %v10325_v38 = vpop.f32.mrf.mxu0 }
 0xa24   : > { %v10396_v0 = vpop.f32.mrf.mxu1  ;;  %v11303_v21 = vpop.eup %11302  ;;  %11312 = vrcp.f32 %v10589_v42  ;;  %v10590_v12 = vadd.f32 1.0, %v11301_v15  ;;  %v11216_v3 = vmul.f32 -1.442695, %v10324_v56  ;;  %v10326_v51 = vadd.f32 %v10325_v38, %v14388_v25 }
 0xa25   : > { %v11218_v41 = vmul.f32 -1.442695, %v10395_v43  ;;  %11314 = vrcp.f32 %v10591_v29  ;;  %v10592_v10 = vadd.f32 1.0, %v11303_v21  ;;  %v10397_v20 = vadd.f32 %v10396_v0, %v14388_v25 }
 0xa26   : > { %11316 = vrcp.f32 %v10590_v12  ;;  %v11217_v54 = vmul.f32 -1.442695, %v10326_v51 }
 0xa27   : > { %11318 = vrcp.f32 %v10592_v10  ;;  %v11219_v4 = vmul.f32 -1.442695, %v10397_v20 }
 0xa28   : > { %11320 = vpow2.f32 %v11216_v3 }
 0xa29   : > { %11322 = vpow2.f32 %v11218_v41  ;;  %v10465_v28 = vpop.f32.mrf.mxu0  ;;  %v10536_v27 = vpop.f32.mrf.mxu1 }
 0xa2a   : > { %11324 = vpow2.f32 %v11217_v54  ;;  %v10466_v31 = vadd.f32 %v10465_v28, %v14388_v25  ;;  %v10537_v61 = vadd.f32 %v10536_v27, %v14388_v25 }
 0xa2b   : > { %v11305_v24 = vpop.eup %11304  ;;  %11326 = vpow2.f32 %v11219_v4  ;;  %v10467_v2 = vpop.f32.mrf.mxu0 }
 0xa2c   : > { %v10538_v59 = vpop.f32.mrf.mxu1  ;;  %v11307_v16 = vpop.eup %11306  ;;  %v10593_v5 = vadd.f32 1.0, %v11305_v24  ;;  %v10468_v13 = vadd.f32 %v10467_v2, %v14388_v25  ;;  %v11220_v48 = vmul.f32 -1.442695, %v10466_v31  ;;  %v11222_v18 = vmul.f32 -1.442695, %v10537_v61 }
 0xa2d   : > { %v11309_v60 = vpop.eup %11308  ;;  %v10595_v30 = vadd.f32 1.0, %v11307_v16  ;;  %v10539_v34 = vadd.f32 %v10538_v59, %v14388_v25 }
 0xa2e   : > { %v11311_v9 = vpop.eup %11310  ;;  %11328 = vrcp.f32 %v10593_v5  ;;  %v10594_v62 = vadd.f32 1.0, %v11309_v60  ;;  %v11221_v49 = vmul.f32 -1.442695, %v10468_v13 }
 0xa2f   : > { %11330 = vrcp.f32 %v10595_v30  ;;  %v10596_v40 = vadd.f32 1.0, %v11311_v9  ;;  %v11223_v39 = vmul.f32 -1.442695, %v10539_v34 }
 0xa30   : > { %11332 = vrcp.f32 %v10594_v62 }
 0xa31   : > { %v11313_v57 = vpop.eup %11312  ;;  %11334 = vrcp.f32 %v10596_v40 }
 0xa32   : > { %v11315_v8 = vpop.eup %11314  ;;  %11336 = vpow2.f32 %v11220_v48 }
 0xa33   : > { %v11317_v58 = vpop.eup %11316  ;;  %11338 = vpow2.f32 %v11222_v18 }
 0xa34   : > { %v11319_v1 = vpop.eup %11318  ;;  %v10653_v55 = vcombine.low %v11313_v57, %v11317_v58  ;;  %11340 = vpow2.f32 %v11221_v49 }
 0xa35   : > { %v11321_v25 = vpop.eup %11320  ;;  %v10654_v35 = vcombine.low %v11315_v8, %v11319_v1  ;;  %11342 = vpow2.f32 %v11223_v39 }
 0xa36   : > { %v11323_v26 = vpop.eup %11322  ;;  %10669 = vst [vmem:[%s14407_s3] sm:$0x77] %v10653_v55  ;;  %v10597_v63 = vadd.f32 1.0, %v11321_v25 }
 0xa37   : > { %v11325_v47 = vpop.eup %11324  ;;  %10670 = vst [vmem:[%s14407_s3 + $0x8] sm:$0x77] %v10654_v35  ;;  %v10599_v46 = vadd.f32 1.0, %v11323_v26 }
 0xa38   : > { %v11327_v17 = vpop.eup %11326  ;;  %11344 = vrcp.f32 %v10597_v63  ;;  %v10598_v52 = vadd.f32 1.0, %v11325_v47 }
 0xa39   : > { %11346 = vrcp.f32 %v10599_v46  ;;  %v10600_v53 = vadd.f32 1.0, %v11327_v17 }
 0xa3a   : > { %11348 = vrcp.f32 %v10598_v52 }
 0xa3b   : > { %v11329_v6 = vpop.eup %11328  ;;  %11350 = vrcp.f32 %v10600_v53 }
 0xa3c   : > { %v11331_v11 = vpop.eup %11330 }
 0xa3d   : > { %v11333_v32 = vpop.eup %11332 }
 0xa3e   : > { %v11335_v7 = vpop.eup %11334  ;;  %v10655_v22 = vcombine.low %v11329_v6, %v11333_v32 }
 0xa3f   : > { %v11337_v44 = vpop.eup %11336  ;;  %v10656_v19 = vcombine.low %v11331_v11, %v11335_v7 }
 0xa40   : > { %v11339_v50 = vpop.eup %11338  ;;  %10671 = vst [vmem:[%s14407_s3 + $0x10] sm:$0x77] %v10655_v22  ;;  %v10601_v14 = vadd.f32 1.0, %v11337_v44 }
 0xa41   : > { %v11341_v36 = vpop.eup %11340  ;;  %10672 = vst [vmem:[%s14407_s3 + $0x18] sm:$0x77] %v10656_v19  ;;  %v10603_v45 = vadd.f32 1.0, %v11339_v50 }
 0xa42   : > { %v11343_v23 = vpop.eup %11342  ;;  %11352 = vrcp.f32 %v10601_v14  ;;  %v10602_v33 = vadd.f32 1.0, %v11341_v36 }
 0xa43   : > { %11354 = vrcp.f32 %v10603_v45  ;;  %v10604_v37 = vadd.f32 1.0, %v11343_v23 }
 0xa44   : > { %11356 = vrcp.f32 %v10602_v33 }
 0xa45   : > { %v11345_v42 = vpop.eup %11344  ;;  %11358 = vrcp.f32 %v10604_v37 }
 0xa46   : > { %v11347_v56 = vpop.eup %11346 }
 0xa47   : > { %v11349_v43 = vpop.eup %11348 }
 0xa48   : > { %v11351_v15 = vpop.eup %11350  ;;  %v10657_v29 = vcombine.low %v11345_v42, %v11349_v43 }
 0xa49   : > { %v10658_v38 = vcombine.low %v11347_v56, %v11351_v15 }
 0xa4a   : > { %10673 = vst [vmem:[%s14407_s3 + $0x20] sm:$0x77] %v10657_v29 }
 0xa4b   : > { %10674 = vst [vmem:[%s14407_s3 + $0x28] sm:$0x77] %v10658_v38 }
 0xa4f   : > { %v11353_v0 = vpop.eup %11352 }
 0xa50   : > { %v11355_v21 = vpop.eup %11354 }
 0xa51   : > { %v11357_v12 = vpop.eup %11356 }
 0xa52   : > { %v11359_v3 = vpop.eup %11358  ;;  %v10659_v41 = vcombine.low %v11353_v0, %v11357_v12 }
 0xa53   : > { %v10660_v10 = vcombine.low %v11355_v21, %v11359_v3 }
 0xa54   : > { %10675 = vst [vmem:[%s14407_s3 + $0x30] sm:$0x77] %v10659_v41 }
 0xa55   : > { %10676 = vst [vmem:[%s14407_s3 + $0x38] sm:$0x77] %v10660_v10 }
 0xa56   : > { %11457 = shalt.err (!%p11454_p1)
}
 0xa57   : > { %s11458_s19 = scalar_lea.hbm %s14420_s28, 1024  ;;  %s11462_s1 = scalar_lea.hbm %s14469_s11, 2048 }
 0xa58   : > { %p11459_p2 = scmp.ne.s32.totalorder %s14420_s28, %s11458_s19  ;;  %p11463_p7 = scmp.lt.s32.totalorder %s14420_s28, %s14469_s11 }
 0xa59   : > { %p11464_p8 = scmp.lt.s32.totalorder %s11462_s1, %s11458_s19 }
 0xa5a   : > { %p11460_p3 = pnand %p11459_p2, %p11625_p5 }
 0xa5b   : > { %p11465_p6 = por %p11464_p8, %p11463_p7 }
 0xa5c   : > { %p11461_p4 = pneg %p11460_p3 }
 0xa5e   : > { %p11466_p9 = pnand %p11465_p6, %p11461_p4 }
 0xa60   : > { %11469 = shalt.err (!%p11466_p9)
}
 0xa61   : > { %11238 = dma.vmem_to_hbm [thread:$0]  (%p11625_p5), %s10698_s17, 1024, %s14420_s28, %s10678_s29  }
 0xa62 PF: > { %p11255_p10 = scmp.ge.s32.totalorder %s11512_s24, 2  ;;  %s10723_s2 = sand.u32 1, %s11500_s21  }
 0xa63   : > { %p14539_p11 = scmp.ne.s32.totalorder %s14479_s14, 0  ;;  %s10724_s26 = scalar_lea.sflag [#allocation4], %s10723_s2 }
 0xa65   : > { %p11247_p12 = pnand %p11255_p10, %p14539_p11 }
 0xa67   : > { %p11248_p13 = pneg %p11247_p12 }
 0xa69   : > { %11491 = dma.done.wait (%p11248_p13), %s10724_s26, 1024  }
 0xa6a   : > { %11493 = vsyncadd (%p11248_p13), %s10724_s26, 4294966272  ;;  %s10733_s15 = scalar_lea.sflag [#allocation7], %s10723_s2 }
 0xa6b   : > { %11495 = dma.done.wait (%p11248_p13), %s10733_s15, 256  }
 0xa6c   : > { %11497 = vsyncadd (%p11248_p13), %s10733_s15, 4294967040  ;;  %p27_p5 = scmp.ge.s32.totalorder %s11612_s27, 4   ;;  %s14540_s21 = smov %s11504_s22 }
 0xa6d   : > { %s14541_s22 = smov %s11508_s23  ;;  %s14542_s23 = smov %s11623_s30 }
 0xa6e   : > { %s14543_s24 = smov %s11612_s27  ;;  %29 = sbr.rel (!%p27_p5) target bundleno = 12 (0xc), region = 135 }
 0xa73   :  { %10738 = vsyncpa [#allocation3], 1 }
 0xa74   :  { %10740 = vsyncpa [#allocation3 + $0x1], 1 }
 0xa75   :  { %10741 = vsyncpa [#allocation4], 1 }
 0xa76   :  { %10743 = vsyncpa [#allocation4 + $0x1], 1 }
 0xa77   :  { %10744 = vsyncpa [#allocation7], 1 }
 0xa78   :  { %10746 = vsyncpa [#allocation7 + $0x1], 1 }

</bundles_post_ra>
